<compile_context>
chip_gen: v7x
topology: tpu7x:2x2x1
jax: 0.10.0
libtpu: 0.0.40
codegen_flags: <defaults>
</compile_context>

<pallas_src>
import jax
import jax.numpy as jnp
from jax.experimental import pallas as pl
from jax.experimental.pallas import tpu as pltpu


# ------------------------------ fused forward -------------------------------

def generator_forward(z_ncl, params):
    """z_ncl: (N, latent, 1) NCL -> (N, channels, 1024) NCL (for K1=16)."""
    w1, w2, w3, w4 = params["w1"], params["w2"], params["w3"], params["w4"]
    N, latent, Lz = z_ncl.shape
    assert Lz == 1
    C1, K1 = w1.shape[1], w1.shape[2]
    C2, K2 = w2.shape[1], w2.shape[2]
    C3, K3 = w3.shape[1], w3.shape[2]
    C4, K4 = w4.shape[1], w4.shape[2]
    assert K2 == 6 and K3 == 6 and K4 == 6   # stride-4 / pad-1 stages

    # ConvTranspose1d lengths: L_out = (L_in - 1) * s - 2p + K.
    L1 = K1                        # stage 1: L_in=1, s=1, p=0
    L2f = (L1 - 1) * 4 + K2        # stage 2 full (pre-trim) length
    L2 = L2f - 2
    L3f = (L2 - 1) * 4 + K3
    L3 = L3f - 2
    L4 = 4 * L3                    # final length

    f32 = jnp.float32
    z2d = z_ncl[:, :, 0].astype(f32)                                       # (N, latent)
    # Weights tap-major: columns = k*Cout + c  -> one matmul per layer covers all taps.
    w1r = jnp.transpose(w1, (0, 2, 1)).reshape(latent, K1 * C1).astype(f32)
    w2r = jnp.transpose(w2, (0, 2, 1)).reshape(C1, K2 * C2).astype(f32)
    w3r = jnp.transpose(w3, (0, 2, 1)).reshape(C2, K3 * C3).astype(f32)
    w4t = jnp.transpose(w4, (1, 2, 0)).reshape(C4 * K4, C3).astype(f32)    # (Cout*K, Cin)
    g1 = params["g1"].reshape(1, C1).astype(f32)
    b1 = params["b1"].reshape(1, C1).astype(f32)
    g2 = params["g2"].reshape(1, C2).astype(f32)
    b2 = params["b2"].reshape(1, C2).astype(f32)
    g3 = params["g3"].reshape(1, C3).astype(f32)
    b3 = params["b3"].reshape(1, C3).astype(f32)

    def kernel(z_ref, w1_ref, w2_ref, w3_ref, w4_ref,
               g1_ref, b1_ref, g2_ref, b2_ref, g3_ref, b3_ref,
               o_ref, acc1, acc2, acc3):

        def bn_lrelu(xs, g_ref, b_ref, count):
            # BatchNorm1d training-mode batch stats over all N*L rows (biased
            # variance, eps=1e-5), fused with LeakyReLU(0.01).
            mean = sum(jnp.sum(x, axis=0, keepdims=True) for x in xs) / count
            var = sum(jnp.sum((x - mean) * (x - mean), axis=0, keepdims=True)
                      for x in xs) / count
            scale = jax.lax.rsqrt(var + 1e-5) * g_ref[...]
            shift = b_ref[...] - mean * scale
            out = []
            for x in xs:
                h = x * scale + shift
                out.append(jnp.where(h >= 0.0, h, 0.01 * h))
            return out

        # -------- stage 1: ConvT(latent -> C1, k=K1, s=1, p=0) --------
        for n in range(N):
            y = jnp.dot(z_ref[pl.ds(n, 1), :], w1_ref[...],
                        preferred_element_type=f32)                        # (1, K1*C1)
            for k in range(K1):                                            # tap k -> time k
                acc1[pl.ds(n * L1 + k, 1), :] = y[:, k * C1:(k + 1) * C1]
        h1 = bn_lrelu([acc1[pl.ds(n * L1, L1), :] for n in range(N)],
                      g1_ref, b1_ref, float(N * L1))

        # -------- stage 2: ConvT(C1 -> C2, k=6, s=4, p=1) --------
        acc2[...] = jnp.zeros_like(acc2)
        for n in range(N):
            y = jnp.dot(h1[n], w2_ref[...], preferred_element_type=f32)    # (L1, K2*C2)
            for j in range(K2):                                            # overlap-add
                sl = pl.ds(n * L2f + j, L1, 4)                             # rows j, j+4, ...
                acc2[sl, :] = acc2[sl, :] + y[:, j * C2:(j + 1) * C2]
        h2 = bn_lrelu([acc2[pl.ds(n * L2f + 1, L2), :] for n in range(N)],  # trim p=1
                      g2_ref, b2_ref, float(N * L2))

        # -------- stage 3: ConvT(C2 -> C3, k=6, s=4, p=1) --------
        acc3[...] = jnp.zeros_like(acc3)
        for n in range(N):
            y = jnp.dot(h2[n], w3_ref[...], preferred_element_type=f32)    # (L2, K3*C3)
            for j in range(K3):
                sl = pl.ds(n * L3f + j, L2, 4)
                acc3[sl, :] = acc3[sl, :] + y[:, j * C3:(j + 1) * C3]
        h3 = bn_lrelu([acc3[pl.ds(n * L3f + 1, L3), :] for n in range(N)],
                      g3_ref, b3_ref, float(N * L3))

        # -------- stage 4: ConvT(C3 -> C4, k=6, s=4, p=1) + tanh --------
        # Time-on-lanes: yt[j, i] = tap-j contribution at input step i.
        # With s=4, K=6, p=1 the trimmed output splits into 4 phases out[4a+b]:
        #   b=0: yt[1,a] + yt[5,a-1]   b=1: yt[2,a]
        #   b=2: yt[3,a]               b=3: yt[4,a] + yt[0,a+1]
        # so tanh and the output stores are fully lane-dense (L3 lanes / row).
        zero_col = jnp.zeros((1, 1), f32)
        for n in range(N):
            yt = jax.lax.dot_general(w4_ref[...], h3[n],
                                     (((1,), (1,)), ((), ())),
                                     preferred_element_type=f32)           # (C4*K4, L3)
            for co in range(C4):
                y = yt[co * K4:(co + 1) * K4, :]                           # (6, L3)
                s5 = jnp.concatenate([zero_col, y[5:6, :L3 - 1]], axis=1)  # yt[5, a-1]
                s0 = jnp.concatenate([y[0:1, 1:], zero_col], axis=1)       # yt[0, a+1]
                ph = jnp.concatenate([y[1:2, :] + s5,
                                      y[2:3, :],
                                      y[3:4, :],
                                      y[4:5, :] + s0], axis=0)             # (4, L3)
                o_ref[pl.ds((n * C4 + co) * 4, 4), :] = jnp.tanh(ph)

    kernel_out = pl.pallas_call(
        kernel,
        out_shape=jax.ShapeDtypeStruct((N * C4 * 4, L3), f32),
        grid=(1,),
        in_specs=[
            pl.BlockSpec((N, latent), lambda i: (0, 0)),
            pl.BlockSpec(w1r.shape, lambda i: (0, 0)),
            pl.BlockSpec(w2r.shape, lambda i: (0, 0)),
            pl.BlockSpec(w3r.shape, lambda i: (0, 0)),
            pl.BlockSpec(w4t.shape, lambda i: (0, 0)),
            pl.BlockSpec((1, C1), lambda i: (0, 0)),
            pl.BlockSpec((1, C1), lambda i: (0, 0)),
            pl.BlockSpec((1, C2), lambda i: (0, 0)),
            pl.BlockSpec((1, C2), lambda i: (0, 0)),
            pl.BlockSpec((1, C3), lambda i: (0, 0)),
            pl.BlockSpec((1, C3), lambda i: (0, 0)),
        ],
        out_specs=pl.BlockSpec((N * C4 * 4, L3), lambda i: (0, 0)),
        scratch_shapes=[
            pltpu.VMEM((N * L1, C1), f32),     # stage-1 output
            pltpu.VMEM((N * L2f, C2), f32),    # stage-2 overlap-add accumulator
            pltpu.VMEM((N * L3f, C3), f32),    # stage-3 overlap-add accumulator
        ],
        compiler_params=pltpu.CompilerParams(dimension_semantics=("arbitrary",)),
    )(z2d, w1r, w2r, w3r, w4t, g1, b1, g2, b2, g3, b3)

    # (N*C4*4, L3) phase rows -> (N, C4, L4) NCL time order (tiny host fixup).
    out = kernel_out.reshape(N, C4, 4, L3)
    return jnp.transpose(out, (0, 1, 3, 2)).reshape(N, C4, L4)


# ------------------------------- param setup --------------------------------

def init_params(key, latent_dim, num_gf, channels):
    ks = jax.random.split(key, 10)

    def w(k, cin, cout, ksz):
        return (0.02 * jax.random.normal(k, (cin, cout, ksz))).astype(jnp.float32)

    def affine(k, c):
        kg, kb = jax.random.split(k)
        gamma = 1.0 + 0.1 * jax.random.normal(kg, (c,))
        beta = 0.1 * jax.random.normal(kb, (c,))
        return gamma.astype(jnp.float32), beta.astype(jnp.float32)

    g1, b1 = affine(ks[4], num_gf * 4)
    g2, b2 = affine(ks[5], num_gf * 2)
    g3, b3 = affine(ks[6], num_gf)
    return dict(
        w1=w(ks[0], latent_dim, num_gf * 4, 16),
        w2=w(ks[1], num_gf * 4, num_gf * 2, 6),
        w3=w(ks[2], num_gf * 2, num_gf, 6),
        w4=w(ks[3], num_gf, channels, 6),
        g1=g1, b1=b1, g2=g2, b2=b2, g3=g3, b3=b3,
    )


# ------------------------ pure-JAX reference (checker) -----------------------

def _reference_forward(z_ncl, params):
    hi = jax.lax.Precision.HIGHEST

    def convT(x_cl, w, stride, padding):
        N, L_in, Cin = x_cl.shape
        _, Cout, K = w.shape
        Y = jnp.einsum("nlc,cok->nlok", x_cl, w, precision=hi)
        L_full = (L_in - 1) * stride + K
        y_full = jnp.zeros((N, L_full, Cout), jnp.float32)
        for j in range(K):
            y_full = y_full.at[:, j:j + stride * (L_in - 1) + 1:stride, :].add(Y[:, :, :, j])
        L_out = L_full - 2 * padding
        return y_full[:, padding:padding + L_out, :]

    def bn_lrelu(x_cl, g, b):
        N, L, C = x_cl.shape
        xf = x_cl.reshape(N * L, C)
        m = jnp.mean(xf, 0, keepdims=True)
        xc = xf - m
        v = jnp.mean(xc * xc, 0, keepdims=True)
        y = xc * jax.lax.rsqrt(v + 1e-5) * g.reshape(1, C) + b.reshape(1, C)
        y = jnp.where(y >= 0.0, y, 0.01 * y)
        return y.reshape(N, L, C)

    x = jnp.transpose(z_ncl, (0, 2, 1)).astype(jnp.float32)
    x = convT(x, params["w1"], 1, 0); x = bn_lrelu(x, params["g1"], params["b1"])
    x = convT(x, params["w2"], 4, 1); x = bn_lrelu(x, params["g2"], params["b2"])
    x = convT(x, params["w3"], 4, 1); x = bn_lrelu(x, params["g3"], params["b3"])
    x = convT(x, params["w4"], 4, 1)
    return jnp.transpose(jnp.tanh(x), (0, 2, 1))


if __name__ == "__main__":
    # Small, structure-preserving config: latent_dim=32, num_gf=8, channels=1.
    batch, latent_dim, num_gf, channels = 2, 32, 8, 1
    key = jax.random.PRNGKey(0)
    kz, kp = jax.random.split(key)

    z = jax.random.normal(kz, (batch, latent_dim, 1), dtype=jnp.float32)   # NCL like PyTorch
    params = init_params(kp, latent_dim, num_gf, channels)

    out = jax.jit(generator_forward)(z, params)
    out = jax.block_until_ready(out)

    expected_L = 1024                                    # 1 -> 16 -> 64 -> 256 -> 1024
    assert out.shape == (batch, channels, expected_L), out.shape
    assert bool(jnp.all(jnp.isfinite(out)))
    assert bool(jnp.all(jnp.abs(out) <= 1.0 + 1e-6))     # tanh range

    ref = jax.jit(_reference_forward)(z, params)
    max_err = float(jnp.max(jnp.abs(out - ref)))
    assert max_err < 2e-2, f"mismatch vs reference: {max_err}"

    print("KERNEL_OK")
</pallas_src>

<mosaic_0001>
module attributes {stable_mosaic.version = 11 : i64} {
  func.func @kernel(%arg0: i32, %arg1: memref<2x32xf32, #tpu.memory_space<vmem>>, %arg2: memref<32x512xf32, #tpu.memory_space<vmem>>, %arg3: memref<32x96xf32, #tpu.memory_space<vmem>>, %arg4: memref<16x48xf32, #tpu.memory_space<vmem>>, %arg5: memref<6x8xf32, #tpu.memory_space<vmem>>, %arg6: memref<1x32xf32, #tpu.memory_space<vmem>>, %arg7: memref<1x32xf32, #tpu.memory_space<vmem>>, %arg8: memref<1x16xf32, #tpu.memory_space<vmem>>, %arg9: memref<1x16xf32, #tpu.memory_space<vmem>>, %arg10: memref<1x8xf32, #tpu.memory_space<vmem>>, %arg11: memref<1x8xf32, #tpu.memory_space<vmem>>, %arg12: memref<8x256xf32, #tpu.memory_space<vmem>>, %arg13: memref<32x32xf32, #tpu.memory_space<vmem>>, %arg14: memref<132x16xf32, #tpu.memory_space<vmem>>, %arg15: memref<516x8xf32, #tpu.memory_space<vmem>>) attributes {dimension_semantics = [#tpu.dimension_semantics<arbitrary>], iteration_bounds = array<i64: 1>, scalar_prefetch = 0 : i64, scratch_operands = 3 : i64, tpu.core_type = #tpu.core_type<tc>, window_params = [{pipeline_mode = #tpu.pipeline_mode<synchronous>, transform_indices = @transform_0, window_bounds = array<i64: 2, 32>}, {pipeline_mode = #tpu.pipeline_mode<synchronous>, transform_indices = @transform_1, window_bounds = array<i64: 32, 512>}, {pipeline_mode = #tpu.pipeline_mode<synchronous>, transform_indices = @transform_2, window_bounds = array<i64: 32, 96>}, {pipeline_mode = #tpu.pipeline_mode<synchronous>, transform_indices = @transform_3, window_bounds = array<i64: 16, 48>}, {pipeline_mode = #tpu.pipeline_mode<synchronous>, transform_indices = @transform_4, window_bounds = array<i64: 6, 8>}, {pipeline_mode = #tpu.pipeline_mode<synchronous>, transform_indices = @transform_5, window_bounds = array<i64: 1, 32>}, {pipeline_mode = #tpu.pipeline_mode<synchronous>, transform_indices = @transform_6, window_bounds = array<i64: 1, 32>}, {pipeline_mode = #tpu.pipeline_mode<synchronous>, transform_indices = @transform_7, window_bounds = array<i64: 1, 16>}, {pipeline_mode = #tpu.pipeline_mode<synchronous>, transform_indices = @transform_8, window_bounds = array<i64: 1, 16>}, {pipeline_mode = #tpu.pipeline_mode<synchronous>, transform_indices = @transform_9, window_bounds = array<i64: 1, 8>}, {pipeline_mode = #tpu.pipeline_mode<synchronous>, transform_indices = @transform_10, window_bounds = array<i64: 1, 8>}, {pipeline_mode = #tpu.pipeline_mode<synchronous>, transform_indices = @transform_11, window_bounds = array<i64: 8, 256>}]} {
    %c0 = arith.constant 0 : index
    %c0_0 = arith.constant 0 : index
    %0 = vector.load %arg1[%c0, %c0_0] : memref<2x32xf32, #tpu.memory_space<vmem>>, vector<1x32xf32>
    %c0_1 = arith.constant 0 : index
    %c0_2 = arith.constant 0 : index
    %1 = vector.load %arg2[%c0_1, %c0_2] : memref<32x512xf32, #tpu.memory_space<vmem>>, vector<32x512xf32>
    %cst = arith.constant dense<0.000000e+00> : vector<1x512xf32>
    %2 = tpu.matmul %0, %1, %cst {dimension_numbers = #tpu.dot_dimension_numbers<[1], [0], [0], [1], [0, 0, 1, 1], [], []>} : vector<1x32xf32>, vector<32x512xf32>, vector<1x512xf32> -> vector<1x512xf32>
    %3 = vector.extract_strided_slice %2 {offsets = [0, 0], sizes = [1, 32], strides = [1, 1]} : vector<1x512xf32> to vector<1x32xf32>
    %c0_3 = arith.constant 0 : index
    %c0_4 = arith.constant 0 : index
    %4 = vector.load %arg13[%c0_3, %c0_4] : memref<32x32xf32, #tpu.memory_space<vmem>>, vector<1x32xf32>
    tpu.vector_store %arg13[%c0_3, %c0_4], %3 {strides = array<i32>} : memref<32x32xf32, #tpu.memory_space<vmem>>, vector<1x32xf32>,
    %5 = vector.extract_strided_slice %2 {offsets = [0, 32], sizes = [1, 32], strides = [1, 1]} : vector<1x512xf32> to vector<1x32xf32>
    %c1 = arith.constant 1 : index
    %c0_5 = arith.constant 0 : index
    %6 = vector.load %arg13[%c1, %c0_5] : memref<32x32xf32, #tpu.memory_space<vmem>>, vector<1x32xf32>
    tpu.vector_store %arg13[%c1, %c0_5], %5 {strides = array<i32>} : memref<32x32xf32, #tpu.memory_space<vmem>>, vector<1x32xf32>,
    %7 = vector.extract_strided_slice %2 {offsets = [0, 64], sizes = [1, 32], strides = [1, 1]} : vector<1x512xf32> to vector<1x32xf32>
    %c2 = arith.constant 2 : index
    %c0_6 = arith.constant 0 : index
    %8 = vector.load %arg13[%c2, %c0_6] : memref<32x32xf32, #tpu.memory_space<vmem>>, vector<1x32xf32>
    tpu.vector_store %arg13[%c2, %c0_6], %7 {strides = array<i32>} : memref<32x32xf32, #tpu.memory_space<vmem>>, vector<1x32xf32>,
    %9 = vector.extract_strided_slice %2 {offsets = [0, 96], sizes = [1, 32], strides = [1, 1]} : vector<1x512xf32> to vector<1x32xf32>
    %c3 = arith.constant 3 : index
    %c0_7 = arith.constant 0 : index
    %10 = vector.load %arg13[%c3, %c0_7] : memref<32x32xf32, #tpu.memory_space<vmem>>, vector<1x32xf32>
    tpu.vector_store %arg13[%c3, %c0_7], %9 {strides = array<i32>} : memref<32x32xf32, #tpu.memory_space<vmem>>, vector<1x32xf32>,
    %11 = vector.extract_strided_slice %2 {offsets = [0, 128], sizes = [1, 32], strides = [1, 1]} : vector<1x512xf32> to vector<1x32xf32>
    %c4 = arith.constant 4 : index
    %c0_8 = arith.constant 0 : index
    %12 = vector.load %arg13[%c4, %c0_8] : memref<32x32xf32, #tpu.memory_space<vmem>>, vector<1x32xf32>
    tpu.vector_store %arg13[%c4, %c0_8], %11 {strides = array<i32>} : memref<32x32xf32, #tpu.memory_space<vmem>>, vector<1x32xf32>,
    %13 = vector.extract_strided_slice %2 {offsets = [0, 160], sizes = [1, 32], strides = [1, 1]} : vector<1x512xf32> to vector<1x32xf32>
    %c5 = arith.constant 5 : index
    %c0_9 = arith.constant 0 : index
    %14 = vector.load %arg13[%c5, %c0_9] : memref<32x32xf32, #tpu.memory_space<vmem>>, vector<1x32xf32>
    tpu.vector_store %arg13[%c5, %c0_9], %13 {strides = array<i32>} : memref<32x32xf32, #tpu.memory_space<vmem>>, vector<1x32xf32>,
    %15 = vector.extract_strided_slice %2 {offsets = [0, 192], sizes = [1, 32], strides = [1, 1]} : vector<1x512xf32> to vector<1x32xf32>
    %c6 = arith.constant 6 : index
    %c0_10 = arith.constant 0 : index
    %16 = vector.load %arg13[%c6, %c0_10] : memref<32x32xf32, #tpu.memory_space<vmem>>, vector<1x32xf32>
    tpu.vector_store %arg13[%c6, %c0_10], %15 {strides = array<i32>} : memref<32x32xf32, #tpu.memory_space<vmem>>, vector<1x32xf32>,
    %17 = vector.extract_strided_slice %2 {offsets = [0, 224], sizes = [1, 32], strides = [1, 1]} : vector<1x512xf32> to vector<1x32xf32>
    %c7 = arith.constant 7 : index
    %c0_11 = arith.constant 0 : index
    %18 = vector.load %arg13[%c7, %c0_11] : memref<32x32xf32, #tpu.memory_space<vmem>>, vector<1x32xf32>
    tpu.vector_store %arg13[%c7, %c0_11], %17 {strides = array<i32>} : memref<32x32xf32, #tpu.memory_space<vmem>>, vector<1x32xf32>,
    %19 = vector.extract_strided_slice %2 {offsets = [0, 256], sizes = [1, 32], strides = [1, 1]} : vector<1x512xf32> to vector<1x32xf32>
    %c8 = arith.constant 8 : index
    %c0_12 = arith.constant 0 : index
    %20 = vector.load %arg13[%c8, %c0_12] : memref<32x32xf32, #tpu.memory_space<vmem>>, vector<1x32xf32>
    tpu.vector_store %arg13[%c8, %c0_12], %19 {strides = array<i32>} : memref<32x32xf32, #tpu.memory_space<vmem>>, vector<1x32xf32>,
    %21 = vector.extract_strided_slice %2 {offsets = [0, 288], sizes = [1, 32], strides = [1, 1]} : vector<1x512xf32> to vector<1x32xf32>
    %c9 = arith.constant 9 : index
    %c0_13 = arith.constant 0 : index
    %22 = vector.load %arg13[%c9, %c0_13] : memref<32x32xf32, #tpu.memory_space<vmem>>, vector<1x32xf32>
    tpu.vector_store %arg13[%c9, %c0_13], %21 {strides = array<i32>} : memref<32x32xf32, #tpu.memory_space<vmem>>, vector<1x32xf32>,
    %23 = vector.extract_strided_slice %2 {offsets = [0, 320], sizes = [1, 32], strides = [1, 1]} : vector<1x512xf32> to vector<1x32xf32>
    %c10 = arith.constant 10 : index
    %c0_14 = arith.constant 0 : index
    %24 = vector.load %arg13[%c10, %c0_14] : memref<32x32xf32, #tpu.memory_space<vmem>>, vector<1x32xf32>
    tpu.vector_store %arg13[%c10, %c0_14], %23 {strides = array<i32>} : memref<32x32xf32, #tpu.memory_space<vmem>>, vector<1x32xf32>,
    %25 = vector.extract_strided_slice %2 {offsets = [0, 352], sizes = [1, 32], strides = [1, 1]} : vector<1x512xf32> to vector<1x32xf32>
    %c11 = arith.constant 11 : index
    %c0_15 = arith.constant 0 : index
    %26 = vector.load %arg13[%c11, %c0_15] : memref<32x32xf32, #tpu.memory_space<vmem>>, vector<1x32xf32>
    tpu.vector_store %arg13[%c11, %c0_15], %25 {strides = array<i32>} : memref<32x32xf32, #tpu.memory_space<vmem>>, vector<1x32xf32>,
    %27 = vector.extract_strided_slice %2 {offsets = [0, 384], sizes = [1, 32], strides = [1, 1]} : vector<1x512xf32> to vector<1x32xf32>
    %c12 = arith.constant 12 : index
    %c0_16 = arith.constant 0 : index
    %28 = vector.load %arg13[%c12, %c0_16] : memref<32x32xf32, #tpu.memory_space<vmem>>, vector<1x32xf32>
    tpu.vector_store %arg13[%c12, %c0_16], %27 {strides = array<i32>} : memref<32x32xf32, #tpu.memory_space<vmem>>, vector<1x32xf32>,
    %29 = vector.extract_strided_slice %2 {offsets = [0, 416], sizes = [1, 32], strides = [1, 1]} : vector<1x512xf32> to vector<1x32xf32>
    %c13 = arith.constant 13 : index
    %c0_17 = arith.constant 0 : index
    %30 = vector.load %arg13[%c13, %c0_17] : memref<32x32xf32, #tpu.memory_space<vmem>>, vector<1x32xf32>
    tpu.vector_store %arg13[%c13, %c0_17], %29 {strides = array<i32>} : memref<32x32xf32, #tpu.memory_space<vmem>>, vector<1x32xf32>,
    %31 = vector.extract_strided_slice %2 {offsets = [0, 448], sizes = [1, 32], strides = [1, 1]} : vector<1x512xf32> to vector<1x32xf32>
    %c14 = arith.constant 14 : index
    %c0_18 = arith.constant 0 : index
    %32 = vector.load %arg13[%c14, %c0_18] : memref<32x32xf32, #tpu.memory_space<vmem>>, vector<1x32xf32>
    tpu.vector_store %arg13[%c14, %c0_18], %31 {strides = array<i32>} : memref<32x32xf32, #tpu.memory_space<vmem>>, vector<1x32xf32>,
    %33 = vector.extract_strided_slice %2 {offsets = [0, 480], sizes = [1, 32], strides = [1, 1]} : vector<1x512xf32> to vector<1x32xf32>
    %c15 = arith.constant 15 : index
    %c0_19 = arith.constant 0 : index
    %34 = vector.load %arg13[%c15, %c0_19] : memref<32x32xf32, #tpu.memory_space<vmem>>, vector<1x32xf32>
    tpu.vector_store %arg13[%c15, %c0_19], %33 {strides = array<i32>} : memref<32x32xf32, #tpu.memory_space<vmem>>, vector<1x32xf32>,
    %c1_20 = arith.constant 1 : index
    %c0_21 = arith.constant 0 : index
    %35 = vector.load %arg1[%c1_20, %c0_21] : memref<2x32xf32, #tpu.memory_space<vmem>>, vector<1x32xf32>
    %c0_22 = arith.constant 0 : index
    %c0_23 = arith.constant 0 : index
    %36 = vector.load %arg2[%c0_22, %c0_23] : memref<32x512xf32, #tpu.memory_space<vmem>>, vector<32x512xf32>
    %cst_24 = arith.constant dense<0.000000e+00> : vector<1x512xf32>
    %37 = tpu.matmul %35, %36, %cst_24 {dimension_numbers = #tpu.dot_dimension_numbers<[1], [0], [0], [1], [0, 0, 1, 1], [], []>} : vector<1x32xf32>, vector<32x512xf32>, vector<1x512xf32> -> vector<1x512xf32>
    %38 = vector.extract_strided_slice %37 {offsets = [0, 0], sizes = [1, 32], strides = [1, 1]} : vector<1x512xf32> to vector<1x32xf32>
    %c16 = arith.constant 16 : index
    %c0_25 = arith.constant 0 : index
    %39 = vector.load %arg13[%c16, %c0_25] : memref<32x32xf32, #tpu.memory_space<vmem>>, vector<1x32xf32>
    tpu.vector_store %arg13[%c16, %c0_25], %38 {strides = array<i32>} : memref<32x32xf32, #tpu.memory_space<vmem>>, vector<1x32xf32>,
    %40 = vector.extract_strided_slice %37 {offsets = [0, 32], sizes = [1, 32], strides = [1, 1]} : vector<1x512xf32> to vector<1x32xf32>
    %c17 = arith.constant 17 : index
    %c0_26 = arith.constant 0 : index
    %41 = vector.load %arg13[%c17, %c0_26] : memref<32x32xf32, #tpu.memory_space<vmem>>, vector<1x32xf32>
    tpu.vector_store %arg13[%c17, %c0_26], %40 {strides = array<i32>} : memref<32x32xf32, #tpu.memory_space<vmem>>, vector<1x32xf32>,
    %42 = vector.extract_strided_slice %37 {offsets = [0, 64], sizes = [1, 32], strides = [1, 1]} : vector<1x512xf32> to vector<1x32xf32>
    %c18 = arith.constant 18 : index
    %c0_27 = arith.constant 0 : index
    %43 = vector.load %arg13[%c18, %c0_27] : memref<32x32xf32, #tpu.memory_space<vmem>>, vector<1x32xf32>
    tpu.vector_store %arg13[%c18, %c0_27], %42 {strides = array<i32>} : memref<32x32xf32, #tpu.memory_space<vmem>>, vector<1x32xf32>,
    %44 = vector.extract_strided_slice %37 {offsets = [0, 96], sizes = [1, 32], strides = [1, 1]} : vector<1x512xf32> to vector<1x32xf32>
    %c19 = arith.constant 19 : index
    %c0_28 = arith.constant 0 : index
    %45 = vector.load %arg13[%c19, %c0_28] : memref<32x32xf32, #tpu.memory_space<vmem>>, vector<1x32xf32>
    tpu.vector_store %arg13[%c19, %c0_28], %44 {strides = array<i32>} : memref<32x32xf32, #tpu.memory_space<vmem>>, vector<1x32xf32>,
    %46 = vector.extract_strided_slice %37 {offsets = [0, 128], sizes = [1, 32], strides = [1, 1]} : vector<1x512xf32> to vector<1x32xf32>
    %c20 = arith.constant 20 : index
    %c0_29 = arith.constant 0 : index
    %47 = vector.load %arg13[%c20, %c0_29] : memref<32x32xf32, #tpu.memory_space<vmem>>, vector<1x32xf32>
    tpu.vector_store %arg13[%c20, %c0_29], %46 {strides = array<i32>} : memref<32x32xf32, #tpu.memory_space<vmem>>, vector<1x32xf32>,
    %48 = vector.extract_strided_slice %37 {offsets = [0, 160], sizes = [1, 32], strides = [1, 1]} : vector<1x512xf32> to vector<1x32xf32>
    %c21 = arith.constant 21 : index
    %c0_30 = arith.constant 0 : index
    %49 = vector.load %arg13[%c21, %c0_30] : memref<32x32xf32, #tpu.memory_space<vmem>>, vector<1x32xf32>
    tpu.vector_store %arg13[%c21, %c0_30], %48 {strides = array<i32>} : memref<32x32xf32, #tpu.memory_space<vmem>>, vector<1x32xf32>,
    %50 = vector.extract_strided_slice %37 {offsets = [0, 192], sizes = [1, 32], strides = [1, 1]} : vector<1x512xf32> to vector<1x32xf32>
    %c22 = arith.constant 22 : index
    %c0_31 = arith.constant 0 : index
    %51 = vector.load %arg13[%c22, %c0_31] : memref<32x32xf32, #tpu.memory_space<vmem>>, vector<1x32xf32>
    tpu.vector_store %arg13[%c22, %c0_31], %50 {strides = array<i32>} : memref<32x32xf32, #tpu.memory_space<vmem>>, vector<1x32xf32>,
    %52 = vector.extract_strided_slice %37 {offsets = [0, 224], sizes = [1, 32], strides = [1, 1]} : vector<1x512xf32> to vector<1x32xf32>
    %c23 = arith.constant 23 : index
    %c0_32 = arith.constant 0 : index
    %53 = vector.load %arg13[%c23, %c0_32] : memref<32x32xf32, #tpu.memory_space<vmem>>, vector<1x32xf32>
    tpu.vector_store %arg13[%c23, %c0_32], %52 {strides = array<i32>} : memref<32x32xf32, #tpu.memory_space<vmem>>, vector<1x32xf32>,
    %54 = vector.extract_strided_slice %37 {offsets = [0, 256], sizes = [1, 32], strides = [1, 1]} : vector<1x512xf32> to vector<1x32xf32>
    %c24 = arith.constant 24 : index
    %c0_33 = arith.constant 0 : index
    %55 = vector.load %arg13[%c24, %c0_33] : memref<32x32xf32, #tpu.memory_space<vmem>>, vector<1x32xf32>
    tpu.vector_store %arg13[%c24, %c0_33], %54 {strides = array<i32>} : memref<32x32xf32, #tpu.memory_space<vmem>>, vector<1x32xf32>,
    %56 = vector.extract_strided_slice %37 {offsets = [0, 288], sizes = [1, 32], strides = [1, 1]} : vector<1x512xf32> to vector<1x32xf32>
    %c25 = arith.constant 25 : index
    %c0_34 = arith.constant 0 : index
    %57 = vector.load %arg13[%c25, %c0_34] : memref<32x32xf32, #tpu.memory_space<vmem>>, vector<1x32xf32>
    tpu.vector_store %arg13[%c25, %c0_34], %56 {strides = array<i32>} : memref<32x32xf32, #tpu.memory_space<vmem>>, vector<1x32xf32>,
    %58 = vector.extract_strided_slice %37 {offsets = [0, 320], sizes = [1, 32], strides = [1, 1]} : vector<1x512xf32> to vector<1x32xf32>
    %c26 = arith.constant 26 : index
    %c0_35 = arith.constant 0 : index
    %59 = vector.load %arg13[%c26, %c0_35] : memref<32x32xf32, #tpu.memory_space<vmem>>, vector<1x32xf32>
    tpu.vector_store %arg13[%c26, %c0_35], %58 {strides = array<i32>} : memref<32x32xf32, #tpu.memory_space<vmem>>, vector<1x32xf32>,
    %60 = vector.extract_strided_slice %37 {offsets = [0, 352], sizes = [1, 32], strides = [1, 1]} : vector<1x512xf32> to vector<1x32xf32>
    %c27 = arith.constant 27 : index
    %c0_36 = arith.constant 0 : index
    %61 = vector.load %arg13[%c27, %c0_36] : memref<32x32xf32, #tpu.memory_space<vmem>>, vector<1x32xf32>
    tpu.vector_store %arg13[%c27, %c0_36], %60 {strides = array<i32>} : memref<32x32xf32, #tpu.memory_space<vmem>>, vector<1x32xf32>,
    %62 = vector.extract_strided_slice %37 {offsets = [0, 384], sizes = [1, 32], strides = [1, 1]} : vector<1x512xf32> to vector<1x32xf32>
    %c28 = arith.constant 28 : index
    %c0_37 = arith.constant 0 : index
    %63 = vector.load %arg13[%c28, %c0_37] : memref<32x32xf32, #tpu.memory_space<vmem>>, vector<1x32xf32>
    tpu.vector_store %arg13[%c28, %c0_37], %62 {strides = array<i32>} : memref<32x32xf32, #tpu.memory_space<vmem>>, vector<1x32xf32>,
    %64 = vector.extract_strided_slice %37 {offsets = [0, 416], sizes = [1, 32], strides = [1, 1]} : vector<1x512xf32> to vector<1x32xf32>
    %c29 = arith.constant 29 : index
    %c0_38 = arith.constant 0 : index
    %65 = vector.load %arg13[%c29, %c0_38] : memref<32x32xf32, #tpu.memory_space<vmem>>, vector<1x32xf32>
    tpu.vector_store %arg13[%c29, %c0_38], %64 {strides = array<i32>} : memref<32x32xf32, #tpu.memory_space<vmem>>, vector<1x32xf32>,
    %66 = vector.extract_strided_slice %37 {offsets = [0, 448], sizes = [1, 32], strides = [1, 1]} : vector<1x512xf32> to vector<1x32xf32>
    %c30 = arith.constant 30 : index
    %c0_39 = arith.constant 0 : index
    %67 = vector.load %arg13[%c30, %c0_39] : memref<32x32xf32, #tpu.memory_space<vmem>>, vector<1x32xf32>
    tpu.vector_store %arg13[%c30, %c0_39], %66 {strides = array<i32>} : memref<32x32xf32, #tpu.memory_space<vmem>>, vector<1x32xf32>,
    %68 = vector.extract_strided_slice %37 {offsets = [0, 480], sizes = [1, 32], strides = [1, 1]} : vector<1x512xf32> to vector<1x32xf32>
    %c31 = arith.constant 31 : index
    %c0_40 = arith.constant 0 : index
    %69 = vector.load %arg13[%c31, %c0_40] : memref<32x32xf32, #tpu.memory_space<vmem>>, vector<1x32xf32>
    tpu.vector_store %arg13[%c31, %c0_40], %68 {strides = array<i32>} : memref<32x32xf32, #tpu.memory_space<vmem>>, vector<1x32xf32>,
    %c0_41 = arith.constant 0 : index
    %c0_42 = arith.constant 0 : index
    %70 = vector.load %arg13[%c0_41, %c0_42] : memref<32x32xf32, #tpu.memory_space<vmem>>, vector<16x32xf32>
    %c16_43 = arith.constant 16 : index
    %c0_44 = arith.constant 0 : index
    %71 = vector.load %arg13[%c16_43, %c0_44] : memref<32x32xf32, #tpu.memory_space<vmem>>, vector<16x32xf32>
    %cst_45 = arith.constant dense<0.000000e+00> : vector<32xf32>
    %72 = vector.multi_reduction <add>, %70, %cst_45 [0] : vector<16x32xf32> to vector<32xf32>
    %73 = vector.shape_cast %72 : vector<32xf32> to vector<1x32xf32>
    %cst_46 = arith.constant 0.000000e+00 : f32
    %74 = vector.broadcast %cst_46 : f32 to vector<1x32xf32>
    %75 = arith.addf %74, %73 : vector<1x32xf32>
    %cst_47 = arith.constant dense<0.000000e+00> : vector<32xf32>
    %76 = vector.multi_reduction <add>, %71, %cst_47 [0] : vector<16x32xf32> to vector<32xf32>
    %77 = vector.shape_cast %76 : vector<32xf32> to vector<1x32xf32>
    %78 = arith.addf %75, %77 : vector<1x32xf32>
    %cst_48 = arith.constant 3.200000e+01 : f32
    %79 = vector.broadcast %cst_48 : f32 to vector<1x32xf32>
    %80 = arith.divf %78, %79 : vector<1x32xf32>
    %81 = vector.broadcast %80 : vector<1x32xf32> to vector<16x32xf32>
    %82 = arith.subf %70, %81 : vector<16x32xf32>
    %83 = vector.broadcast %80 : vector<1x32xf32> to vector<16x32xf32>
    %84 = arith.subf %70, %83 : vector<16x32xf32>
    %85 = arith.mulf %82, %84 : vector<16x32xf32>
    %cst_49 = arith.constant dense<0.000000e+00> : vector<32xf32>
    %86 = vector.multi_reduction <add>, %85, %cst_49 [0] : vector<16x32xf32> to vector<32xf32>
    %87 = vector.shape_cast %86 : vector<32xf32> to vector<1x32xf32>
    %cst_50 = arith.constant 0.000000e+00 : f32
    %88 = vector.broadcast %cst_50 : f32 to vector<1x32xf32>
    %89 = arith.addf %88, %87 : vector<1x32xf32>
    %90 = vector.broadcast %80 : vector<1x32xf32> to vector<16x32xf32>
    %91 = arith.subf %71, %90 : vector<16x32xf32>
    %92 = vector.broadcast %80 : vector<1x32xf32> to vector<16x32xf32>
    %93 = arith.subf %71, %92 : vector<16x32xf32>
    %94 = arith.mulf %91, %93 : vector<16x32xf32>
    %cst_51 = arith.constant dense<0.000000e+00> : vector<32xf32>
    %95 = vector.multi_reduction <add>, %94, %cst_51 [0] : vector<16x32xf32> to vector<32xf32>
    %96 = vector.shape_cast %95 : vector<32xf32> to vector<1x32xf32>
    %97 = arith.addf %89, %96 : vector<1x32xf32>
    %cst_52 = arith.constant 3.200000e+01 : f32
    %98 = vector.broadcast %cst_52 : f32 to vector<1x32xf32>
    %99 = arith.divf %97, %98 : vector<1x32xf32>
    %cst_53 = arith.constant 9.99999974E-6 : f32
    %100 = vector.broadcast %cst_53 : f32 to vector<1x32xf32>
    %101 = arith.addf %99, %100 : vector<1x32xf32>
    %102 = math.rsqrt %101 : vector<1x32xf32>
    %c0_54 = arith.constant 0 : index
    %c0_55 = arith.constant 0 : index
    %103 = vector.load %arg6[%c0_54, %c0_55] : memref<1x32xf32, #tpu.memory_space<vmem>>, vector<1x32xf32>
    %104 = arith.mulf %102, %103 : vector<1x32xf32>
    %c0_56 = arith.constant 0 : index
    %c0_57 = arith.constant 0 : index
    %105 = vector.load %arg7[%c0_56, %c0_57] : memref<1x32xf32, #tpu.memory_space<vmem>>, vector<1x32xf32>
    %106 = arith.mulf %80, %104 : vector<1x32xf32>
    %107 = arith.subf %105, %106 : vector<1x32xf32>
    %108 = vector.broadcast %104 : vector<1x32xf32> to vector<16x32xf32>
    %109 = arith.mulf %70, %108 : vector<16x32xf32>
    %110 = vector.broadcast %107 : vector<1x32xf32> to vector<16x32xf32>
    %111 = arith.addf %109, %110 : vector<16x32xf32>
    %cst_58 = arith.constant 0.000000e+00 : f32
    %112 = vector.broadcast %cst_58 : f32 to vector<16x32xf32>
    %113 = arith.cmpf oge, %111, %112 : vector<16x32xf32>
    %cst_59 = arith.constant 0.00999999977 : f32
    %114 = vector.broadcast %cst_59 : f32 to vector<16x32xf32>
    %115 = arith.mulf %114, %111 : vector<16x32xf32>
    %116 = arith.select %113, %111, %115 : vector<16x32xi1>, vector<16x32xf32>
    %117 = vector.broadcast %104 : vector<1x32xf32> to vector<16x32xf32>
    %118 = arith.mulf %71, %117 : vector<16x32xf32>
    %119 = vector.broadcast %107 : vector<1x32xf32> to vector<16x32xf32>
    %120 = arith.addf %118, %119 : vector<16x32xf32>
    %cst_60 = arith.constant 0.000000e+00 : f32
    %121 = vector.broadcast %cst_60 : f32 to vector<16x32xf32>
    %122 = arith.cmpf oge, %120, %121 : vector<16x32xf32>
    %cst_61 = arith.constant 0.00999999977 : f32
    %123 = vector.broadcast %cst_61 : f32 to vector<16x32xf32>
    %124 = arith.mulf %123, %120 : vector<16x32xf32>
    %125 = arith.select %122, %120, %124 : vector<16x32xi1>, vector<16x32xf32>
    %cst_62 = arith.constant 0.000000e+00 : f32
    %126 = vector.broadcast %cst_62 : f32 to vector<132x16xf32>
    %c0_63 = arith.constant 0 : index
    %c0_64 = arith.constant 0 : index
    %127 = vector.load %arg14[%c0_63, %c0_64] : memref<132x16xf32, #tpu.memory_space<vmem>>, vector<132x16xf32>
    tpu.vector_store %arg14[%c0_63, %c0_64], %126 {strides = array<i32>} : memref<132x16xf32, #tpu.memory_space<vmem>>, vector<132x16xf32>,
    %c0_65 = arith.constant 0 : index
    %c0_66 = arith.constant 0 : index
    %128 = vector.load %arg3[%c0_65, %c0_66] : memref<32x96xf32, #tpu.memory_space<vmem>>, vector<32x96xf32>
    %cst_67 = arith.constant dense<0.000000e+00> : vector<16x96xf32>
    %129 = tpu.matmul %116, %128, %cst_67 {dimension_numbers = #tpu.dot_dimension_numbers<[1], [0], [0], [1], [0, 0, 1, 1], [], []>} : vector<16x32xf32>, vector<32x96xf32>, vector<16x96xf32> -> vector<16x96xf32>
    %c0_68 = arith.constant 0 : index
    %c0_69 = arith.constant 0 : index
    %130 = tpu.strided_load %arg14[%c0_68, %c0_69] {strides = array<i32: 4, 1>} : memref<132x16xf32, #tpu.memory_space<vmem>>, vector<16x16xf32>
    %131 = vector.extract_strided_slice %129 {offsets = [0, 0], sizes = [16, 16], strides = [1, 1]} : vector<16x96xf32> to vector<16x16xf32>
    %132 = arith.addf %130, %131 : vector<16x16xf32>
    %c0_70 = arith.constant 0 : index
    %c0_71 = arith.constant 0 : index
    %133 = tpu.strided_load %arg14[%c0_70, %c0_71] {strides = array<i32: 4, 1>} : memref<132x16xf32, #tpu.memory_space<vmem>>, vector<16x16xf32>
    tpu.strided_store %arg14[%c0_70, %c0_71], %132 {strides = array<i32: 4, 1>} : memref<132x16xf32, #tpu.memory_space<vmem>>, vector<16x16xf32>
    %c1_72 = arith.constant 1 : index
    %c0_73 = arith.constant 0 : index
    %134 = tpu.strided_load %arg14[%c1_72, %c0_73] {strides = array<i32: 4, 1>} : memref<132x16xf32, #tpu.memory_space<vmem>>, vector<16x16xf32>
    %135 = vector.extract_strided_slice %129 {offsets = [0, 16], sizes = [16, 16], strides = [1, 1]} : vector<16x96xf32> to vector<16x16xf32>
    %136 = arith.addf %134, %135 : vector<16x16xf32>
    %c1_74 = arith.constant 1 : index
    %c0_75 = arith.constant 0 : index
    %137 = tpu.strided_load %arg14[%c1_74, %c0_75] {strides = array<i32: 4, 1>} : memref<132x16xf32, #tpu.memory_space<vmem>>, vector<16x16xf32>
    tpu.strided_store %arg14[%c1_74, %c0_75], %136 {strides = array<i32: 4, 1>} : memref<132x16xf32, #tpu.memory_space<vmem>>, vector<16x16xf32>
    %c2_76 = arith.constant 2 : index
    %c0_77 = arith.constant 0 : index
    %138 = tpu.strided_load %arg14[%c2_76, %c0_77] {strides = array<i32: 4, 1>} : memref<132x16xf32, #tpu.memory_space<vmem>>, vector<16x16xf32>
    %139 = vector.extract_strided_slice %129 {offsets = [0, 32], sizes = [16, 16], strides = [1, 1]} : vector<16x96xf32> to vector<16x16xf32>
    %140 = arith.addf %138, %139 : vector<16x16xf32>
    %c2_78 = arith.constant 2 : index
    %c0_79 = arith.constant 0 : index
    %141 = tpu.strided_load %arg14[%c2_78, %c0_79] {strides = array<i32: 4, 1>} : memref<132x16xf32, #tpu.memory_space<vmem>>, vector<16x16xf32>
    tpu.strided_store %arg14[%c2_78, %c0_79], %140 {strides = array<i32: 4, 1>} : memref<132x16xf32, #tpu.memory_space<vmem>>, vector<16x16xf32>
    %c3_80 = arith.constant 3 : index
    %c0_81 = arith.constant 0 : index
    %142 = tpu.strided_load %arg14[%c3_80, %c0_81] {strides = array<i32: 4, 1>} : memref<132x16xf32, #tpu.memory_space<vmem>>, vector<16x16xf32>
    %143 = vector.extract_strided_slice %129 {offsets = [0, 48], sizes = [16, 16], strides = [1, 1]} : vector<16x96xf32> to vector<16x16xf32>
    %144 = arith.addf %142, %143 : vector<16x16xf32>
    %c3_82 = arith.constant 3 : index
    %c0_83 = arith.constant 0 : index
    %145 = tpu.strided_load %arg14[%c3_82, %c0_83] {strides = array<i32: 4, 1>} : memref<132x16xf32, #tpu.memory_space<vmem>>, vector<16x16xf32>
    tpu.strided_store %arg14[%c3_82, %c0_83], %144 {strides = array<i32: 4, 1>} : memref<132x16xf32, #tpu.memory_space<vmem>>, vector<16x16xf32>
    %c4_84 = arith.constant 4 : index
    %c0_85 = arith.constant 0 : index
    %146 = tpu.strided_load %arg14[%c4_84, %c0_85] {strides = array<i32: 4, 1>} : memref<132x16xf32, #tpu.memory_space<vmem>>, vector<16x16xf32>
    %147 = vector.extract_strided_slice %129 {offsets = [0, 64], sizes = [16, 16], strides = [1, 1]} : vector<16x96xf32> to vector<16x16xf32>
    %148 = arith.addf %146, %147 : vector<16x16xf32>
    %c4_86 = arith.constant 4 : index
    %c0_87 = arith.constant 0 : index
    %149 = tpu.strided_load %arg14[%c4_86, %c0_87] {strides = array<i32: 4, 1>} : memref<132x16xf32, #tpu.memory_space<vmem>>, vector<16x16xf32>
    tpu.strided_store %arg14[%c4_86, %c0_87], %148 {strides = array<i32: 4, 1>} : memref<132x16xf32, #tpu.memory_space<vmem>>, vector<16x16xf32>
    %c5_88 = arith.constant 5 : index
    %c0_89 = arith.constant 0 : index
    %150 = tpu.strided_load %arg14[%c5_88, %c0_89] {strides = array<i32: 4, 1>} : memref<132x16xf32, #tpu.memory_space<vmem>>, vector<16x16xf32>
    %151 = vector.extract_strided_slice %129 {offsets = [0, 80], sizes = [16, 16], strides = [1, 1]} : vector<16x96xf32> to vector<16x16xf32>
    %152 = arith.addf %150, %151 : vector<16x16xf32>
    %c5_90 = arith.constant 5 : index
    %c0_91 = arith.constant 0 : index
    %153 = tpu.strided_load %arg14[%c5_90, %c0_91] {strides = array<i32: 4, 1>} : memref<132x16xf32, #tpu.memory_space<vmem>>, vector<16x16xf32>
    tpu.strided_store %arg14[%c5_90, %c0_91], %152 {strides = array<i32: 4, 1>} : memref<132x16xf32, #tpu.memory_space<vmem>>, vector<16x16xf32>
    %c0_92 = arith.constant 0 : index
    %c0_93 = arith.constant 0 : index
    %154 = vector.load %arg3[%c0_92, %c0_93] : memref<32x96xf32, #tpu.memory_space<vmem>>, vector<32x96xf32>
    %cst_94 = arith.constant dense<0.000000e+00> : vector<16x96xf32>
    %155 = tpu.matmul %125, %154, %cst_94 {dimension_numbers = #tpu.dot_dimension_numbers<[1], [0], [0], [1], [0, 0, 1, 1], [], []>} : vector<16x32xf32>, vector<32x96xf32>, vector<16x96xf32> -> vector<16x96xf32>
    %c66 = arith.constant 66 : index
    %c0_95 = arith.constant 0 : index
    %156 = tpu.strided_load %arg14[%c66, %c0_95] {strides = array<i32: 4, 1>} : memref<132x16xf32, #tpu.memory_space<vmem>>, vector<16x16xf32>
    %157 = vector.extract_strided_slice %155 {offsets = [0, 0], sizes = [16, 16], strides = [1, 1]} : vector<16x96xf32> to vector<16x16xf32>
    %158 = arith.addf %156, %157 : vector<16x16xf32>
    %c66_96 = arith.constant 66 : index
    %c0_97 = arith.constant 0 : index
    %159 = tpu.strided_load %arg14[%c66_96, %c0_97] {strides = array<i32: 4, 1>} : memref<132x16xf32, #tpu.memory_space<vmem>>, vector<16x16xf32>
    tpu.strided_store %arg14[%c66_96, %c0_97], %158 {strides = array<i32: 4, 1>} : memref<132x16xf32, #tpu.memory_space<vmem>>, vector<16x16xf32>
    %c67 = arith.constant 67 : index
    %c0_98 = arith.constant 0 : index
    %160 = tpu.strided_load %arg14[%c67, %c0_98] {strides = array<i32: 4, 1>} : memref<132x16xf32, #tpu.memory_space<vmem>>, vector<16x16xf32>
    %161 = vector.extract_strided_slice %155 {offsets = [0, 16], sizes = [16, 16], strides = [1, 1]} : vector<16x96xf32> to vector<16x16xf32>
    %162 = arith.addf %160, %161 : vector<16x16xf32>
    %c67_99 = arith.constant 67 : index
    %c0_100 = arith.constant 0 : index
    %163 = tpu.strided_load %arg14[%c67_99, %c0_100] {strides = array<i32: 4, 1>} : memref<132x16xf32, #tpu.memory_space<vmem>>, vector<16x16xf32>
    tpu.strided_store %arg14[%c67_99, %c0_100], %162 {strides = array<i32: 4, 1>} : memref<132x16xf32, #tpu.memory_space<vmem>>, vector<16x16xf32>
    %c68 = arith.constant 68 : index
    %c0_101 = arith.constant 0 : index
    %164 = tpu.strided_load %arg14[%c68, %c0_101] {strides = array<i32: 4, 1>} : memref<132x16xf32, #tpu.memory_space<vmem>>, vector<16x16xf32>
    %165 = vector.extract_strided_slice %155 {offsets = [0, 32], sizes = [16, 16], strides = [1, 1]} : vector<16x96xf32> to vector<16x16xf32>
    %166 = arith.addf %164, %165 : vector<16x16xf32>
    %c68_102 = arith.constant 68 : index
    %c0_103 = arith.constant 0 : index
    %167 = tpu.strided_load %arg14[%c68_102, %c0_103] {strides = array<i32: 4, 1>} : memref<132x16xf32, #tpu.memory_space<vmem>>, vector<16x16xf32>
    tpu.strided_store %arg14[%c68_102, %c0_103], %166 {strides = array<i32: 4, 1>} : memref<132x16xf32, #tpu.memory_space<vmem>>, vector<16x16xf32>
    %c69 = arith.constant 69 : index
    %c0_104 = arith.constant 0 : index
    %168 = tpu.strided_load %arg14[%c69, %c0_104] {strides = array<i32: 4, 1>} : memref<132x16xf32, #tpu.memory_space<vmem>>, vector<16x16xf32>
    %169 = vector.extract_strided_slice %155 {offsets = [0, 48], sizes = [16, 16], strides = [1, 1]} : vector<16x96xf32> to vector<16x16xf32>
    %170 = arith.addf %168, %169 : vector<16x16xf32>
    %c69_105 = arith.constant 69 : index
    %c0_106 = arith.constant 0 : index
    %171 = tpu.strided_load %arg14[%c69_105, %c0_106] {strides = array<i32: 4, 1>} : memref<132x16xf32, #tpu.memory_space<vmem>>, vector<16x16xf32>
    tpu.strided_store %arg14[%c69_105, %c0_106], %170 {strides = array<i32: 4, 1>} : memref<132x16xf32, #tpu.memory_space<vmem>>, vector<16x16xf32>
    %c70 = arith.constant 70 : index
    %c0_107 = arith.constant 0 : index
    %172 = tpu.strided_load %arg14[%c70, %c0_107] {strides = array<i32: 4, 1>} : memref<132x16xf32, #tpu.memory_space<vmem>>, vector<16x16xf32>
    %173 = vector.extract_strided_slice %155 {offsets = [0, 64], sizes = [16, 16], strides = [1, 1]} : vector<16x96xf32> to vector<16x16xf32>
    %174 = arith.addf %172, %173 : vector<16x16xf32>
    %c70_108 = arith.constant 70 : index
    %c0_109 = arith.constant 0 : index
    %175 = tpu.strided_load %arg14[%c70_108, %c0_109] {strides = array<i32: 4, 1>} : memref<132x16xf32, #tpu.memory_space<vmem>>, vector<16x16xf32>
    tpu.strided_store %arg14[%c70_108, %c0_109], %174 {strides = array<i32: 4, 1>} : memref<132x16xf32, #tpu.memory_space<vmem>>, vector<16x16xf32>
    %c71 = arith.constant 71 : index
    %c0_110 = arith.constant 0 : index
    %176 = tpu.strided_load %arg14[%c71, %c0_110] {strides = array<i32: 4, 1>} : memref<132x16xf32, #tpu.memory_space<vmem>>, vector<16x16xf32>
    %177 = vector.extract_strided_slice %155 {offsets = [0, 80], sizes = [16, 16], strides = [1, 1]} : vector<16x96xf32> to vector<16x16xf32>
    %178 = arith.addf %176, %177 : vector<16x16xf32>
    %c71_111 = arith.constant 71 : index
    %c0_112 = arith.constant 0 : index
    %179 = tpu.strided_load %arg14[%c71_111, %c0_112] {strides = array<i32: 4, 1>} : memref<132x16xf32, #tpu.memory_space<vmem>>, vector<16x16xf32>
    tpu.strided_store %arg14[%c71_111, %c0_112], %178 {strides = array<i32: 4, 1>} : memref<132x16xf32, #tpu.memory_space<vmem>>, vector<16x16xf32>
    %c1_113 = arith.constant 1 : index
    %c0_114 = arith.constant 0 : index
    %180 = vector.load %arg14[%c1_113, %c0_114] : memref<132x16xf32, #tpu.memory_space<vmem>>, vector<64x16xf32>
    %c67_115 = arith.constant 67 : index
    %c0_116 = arith.constant 0 : index
    %181 = vector.load %arg14[%c67_115, %c0_116] : memref<132x16xf32, #tpu.memory_space<vmem>>, vector<64x16xf32>
    %cst_117 = arith.constant dense<0.000000e+00> : vector<16xf32>
    %182 = vector.multi_reduction <add>, %180, %cst_117 [0] : vector<64x16xf32> to vector<16xf32>
    %183 = vector.shape_cast %182 : vector<16xf32> to vector<1x16xf32>
    %cst_118 = arith.constant 0.000000e+00 : f32
    %184 = vector.broadcast %cst_118 : f32 to vector<1x16xf32>
    %185 = arith.addf %184, %183 : vector<1x16xf32>
    %cst_119 = arith.constant dense<0.000000e+00> : vector<16xf32>
    %186 = vector.multi_reduction <add>, %181, %cst_119 [0] : vector<64x16xf32> to vector<16xf32>
    %187 = vector.shape_cast %186 : vector<16xf32> to vector<1x16xf32>
    %188 = arith.addf %185, %187 : vector<1x16xf32>
    %cst_120 = arith.constant 1.280000e+02 : f32
    %189 = vector.broadcast %cst_120 : f32 to vector<1x16xf32>
    %190 = arith.divf %188, %189 : vector<1x16xf32>
    %191 = vector.broadcast %190 : vector<1x16xf32> to vector<64x16xf32>
    %192 = arith.subf %180, %191 : vector<64x16xf32>
    %193 = vector.broadcast %190 : vector<1x16xf32> to vector<64x16xf32>
    %194 = arith.subf %180, %193 : vector<64x16xf32>
    %195 = arith.mulf %192, %194 : vector<64x16xf32>
    %cst_121 = arith.constant dense<0.000000e+00> : vector<16xf32>
    %196 = vector.multi_reduction <add>, %195, %cst_121 [0] : vector<64x16xf32> to vector<16xf32>
    %197 = vector.shape_cast %196 : vector<16xf32> to vector<1x16xf32>
    %cst_122 = arith.constant 0.000000e+00 : f32
    %198 = vector.broadcast %cst_122 : f32 to vector<1x16xf32>
    %199 = arith.addf %198, %197 : vector<1x16xf32>
    %200 = vector.broadcast %190 : vector<1x16xf32> to vector<64x16xf32>
    %201 = arith.subf %181, %200 : vector<64x16xf32>
    %202 = vector.broadcast %190 : vector<1x16xf32> to vector<64x16xf32>
    %203 = arith.subf %181, %202 : vector<64x16xf32>
    %204 = arith.mulf %201, %203 : vector<64x16xf32>
    %cst_123 = arith.constant dense<0.000000e+00> : vector<16xf32>
    %205 = vector.multi_reduction <add>, %204, %cst_123 [0] : vector<64x16xf32> to vector<16xf32>
    %206 = vector.shape_cast %205 : vector<16xf32> to vector<1x16xf32>
    %207 = arith.addf %199, %206 : vector<1x16xf32>
    %cst_124 = arith.constant 1.280000e+02 : f32
    %208 = vector.broadcast %cst_124 : f32 to vector<1x16xf32>
    %209 = arith.divf %207, %208 : vector<1x16xf32>
    %cst_125 = arith.constant 9.99999974E-6 : f32
    %210 = vector.broadcast %cst_125 : f32 to vector<1x16xf32>
    %211 = arith.addf %209, %210 : vector<1x16xf32>
    %212 = math.rsqrt %211 : vector<1x16xf32>
    %c0_126 = arith.constant 0 : index
    %c0_127 = arith.constant 0 : index
    %213 = vector.load %arg8[%c0_126, %c0_127] : memref<1x16xf32, #tpu.memory_space<vmem>>, vector<1x16xf32>
    %214 = arith.mulf %212, %213 : vector<1x16xf32>
    %c0_128 = arith.constant 0 : index
    %c0_129 = arith.constant 0 : index
    %215 = vector.load %arg9[%c0_128, %c0_129] : memref<1x16xf32, #tpu.memory_space<vmem>>, vector<1x16xf32>
    %216 = arith.mulf %190, %214 : vector<1x16xf32>
    %217 = arith.subf %215, %216 : vector<1x16xf32>
    %218 = vector.broadcast %214 : vector<1x16xf32> to vector<64x16xf32>
    %219 = arith.mulf %180, %218 : vector<64x16xf32>
    %220 = vector.broadcast %217 : vector<1x16xf32> to vector<64x16xf32>
    %221 = arith.addf %219, %220 : vector<64x16xf32>
    %cst_130 = arith.constant 0.000000e+00 : f32
    %222 = vector.broadcast %cst_130 : f32 to vector<64x16xf32>
    %223 = arith.cmpf oge, %221, %222 : vector<64x16xf32>
    %cst_131 = arith.constant 0.00999999977 : f32
    %224 = vector.broadcast %cst_131 : f32 to vector<64x16xf32>
    %225 = arith.mulf %224, %221 : vector<64x16xf32>
    %226 = arith.select %223, %221, %225 : vector<64x16xi1>, vector<64x16xf32>
    %227 = vector.broadcast %214 : vector<1x16xf32> to vector<64x16xf32>
    %228 = arith.mulf %181, %227 : vector<64x16xf32>
    %229 = vector.broadcast %217 : vector<1x16xf32> to vector<64x16xf32>
    %230 = arith.addf %228, %229 : vector<64x16xf32>
    %cst_132 = arith.constant 0.000000e+00 : f32
    %231 = vector.broadcast %cst_132 : f32 to vector<64x16xf32>
    %232 = arith.cmpf oge, %230, %231 : vector<64x16xf32>
    %cst_133 = arith.constant 0.00999999977 : f32
    %233 = vector.broadcast %cst_133 : f32 to vector<64x16xf32>
    %234 = arith.mulf %233, %230 : vector<64x16xf32>
    %235 = arith.select %232, %230, %234 : vector<64x16xi1>, vector<64x16xf32>
    %cst_134 = arith.constant 0.000000e+00 : f32
    %236 = vector.broadcast %cst_134 : f32 to vector<516x8xf32>
    %c0_135 = arith.constant 0 : index
    %c0_136 = arith.constant 0 : index
    %237 = vector.load %arg15[%c0_135, %c0_136] : memref<516x8xf32, #tpu.memory_space<vmem>>, vector<516x8xf32>
    tpu.vector_store %arg15[%c0_135, %c0_136], %236 {strides = array<i32>} : memref<516x8xf32, #tpu.memory_space<vmem>>, vector<516x8xf32>,
    %c0_137 = arith.constant 0 : index
    %c0_138 = arith.constant 0 : index
    %238 = vector.load %arg4[%c0_137, %c0_138] : memref<16x48xf32, #tpu.memory_space<vmem>>, vector<16x48xf32>
    %cst_139 = arith.constant dense<0.000000e+00> : vector<64x48xf32>
    %239 = tpu.matmul %226, %238, %cst_139 {dimension_numbers = #tpu.dot_dimension_numbers<[1], [0], [0], [1], [0, 0, 1, 1], [], []>} : vector<64x16xf32>, vector<16x48xf32>, vector<64x48xf32> -> vector<64x48xf32>
    %c0_140 = arith.constant 0 : index
    %c0_141 = arith.constant 0 : index
    %240 = tpu.strided_load %arg15[%c0_140, %c0_141] {strides = array<i32: 4, 1>} : memref<516x8xf32, #tpu.memory_space<vmem>>, vector<64x8xf32>
    %241 = vector.extract_strided_slice %239 {offsets = [0, 0], sizes = [64, 8], strides = [1, 1]} : vector<64x48xf32> to vector<64x8xf32>
    %242 = arith.addf %240, %241 : vector<64x8xf32>
    %c0_142 = arith.constant 0 : index
    %c0_143 = arith.constant 0 : index
    %243 = tpu.strided_load %arg15[%c0_142, %c0_143] {strides = array<i32: 4, 1>} : memref<516x8xf32, #tpu.memory_space<vmem>>, vector<64x8xf32>
    tpu.strided_store %arg15[%c0_142, %c0_143], %242 {strides = array<i32: 4, 1>} : memref<516x8xf32, #tpu.memory_space<vmem>>, vector<64x8xf32>
    %c1_144 = arith.constant 1 : index
    %c0_145 = arith.constant 0 : index
    %244 = tpu.strided_load %arg15[%c1_144, %c0_145] {strides = array<i32: 4, 1>} : memref<516x8xf32, #tpu.memory_space<vmem>>, vector<64x8xf32>
    %245 = vector.extract_strided_slice %239 {offsets = [0, 8], sizes = [64, 8], strides = [1, 1]} : vector<64x48xf32> to vector<64x8xf32>
    %246 = arith.addf %244, %245 : vector<64x8xf32>
    %c1_146 = arith.constant 1 : index
    %c0_147 = arith.constant 0 : index
    %247 = tpu.strided_load %arg15[%c1_146, %c0_147] {strides = array<i32: 4, 1>} : memref<516x8xf32, #tpu.memory_space<vmem>>, vector<64x8xf32>
    tpu.strided_store %arg15[%c1_146, %c0_147], %246 {strides = array<i32: 4, 1>} : memref<516x8xf32, #tpu.memory_space<vmem>>, vector<64x8xf32>
    %c2_148 = arith.constant 2 : index
    %c0_149 = arith.constant 0 : index
    %248 = tpu.strided_load %arg15[%c2_148, %c0_149] {strides = array<i32: 4, 1>} : memref<516x8xf32, #tpu.memory_space<vmem>>, vector<64x8xf32>
    %249 = vector.extract_strided_slice %239 {offsets = [0, 16], sizes = [64, 8], strides = [1, 1]} : vector<64x48xf32> to vector<64x8xf32>
    %250 = arith.addf %248, %249 : vector<64x8xf32>
    %c2_150 = arith.constant 2 : index
    %c0_151 = arith.constant 0 : index
    %251 = tpu.strided_load %arg15[%c2_150, %c0_151] {strides = array<i32: 4, 1>} : memref<516x8xf32, #tpu.memory_space<vmem>>, vector<64x8xf32>
    tpu.strided_store %arg15[%c2_150, %c0_151], %250 {strides = array<i32: 4, 1>} : memref<516x8xf32, #tpu.memory_space<vmem>>, vector<64x8xf32>
    %c3_152 = arith.constant 3 : index
    %c0_153 = arith.constant 0 : index
    %252 = tpu.strided_load %arg15[%c3_152, %c0_153] {strides = array<i32: 4, 1>} : memref<516x8xf32, #tpu.memory_space<vmem>>, vector<64x8xf32>
    %253 = vector.extract_strided_slice %239 {offsets = [0, 24], sizes = [64, 8], strides = [1, 1]} : vector<64x48xf32> to vector<64x8xf32>
    %254 = arith.addf %252, %253 : vector<64x8xf32>
    %c3_154 = arith.constant 3 : index
    %c0_155 = arith.constant 0 : index
    %255 = tpu.strided_load %arg15[%c3_154, %c0_155] {strides = array<i32: 4, 1>} : memref<516x8xf32, #tpu.memory_space<vmem>>, vector<64x8xf32>
    tpu.strided_store %arg15[%c3_154, %c0_155], %254 {strides = array<i32: 4, 1>} : memref<516x8xf32, #tpu.memory_space<vmem>>, vector<64x8xf32>
    %c4_156 = arith.constant 4 : index
    %c0_157 = arith.constant 0 : index
    %256 = tpu.strided_load %arg15[%c4_156, %c0_157] {strides = array<i32: 4, 1>} : memref<516x8xf32, #tpu.memory_space<vmem>>, vector<64x8xf32>
    %257 = vector.extract_strided_slice %239 {offsets = [0, 32], sizes = [64, 8], strides = [1, 1]} : vector<64x48xf32> to vector<64x8xf32>
    %258 = arith.addf %256, %257 : vector<64x8xf32>
    %c4_158 = arith.constant 4 : index
    %c0_159 = arith.constant 0 : index
    %259 = tpu.strided_load %arg15[%c4_158, %c0_159] {strides = array<i32: 4, 1>} : memref<516x8xf32, #tpu.memory_space<vmem>>, vector<64x8xf32>
    tpu.strided_store %arg15[%c4_158, %c0_159], %258 {strides = array<i32: 4, 1>} : memref<516x8xf32, #tpu.memory_space<vmem>>, vector<64x8xf32>
    %c5_160 = arith.constant 5 : index
    %c0_161 = arith.constant 0 : index
    %260 = tpu.strided_load %arg15[%c5_160, %c0_161] {strides = array<i32: 4, 1>} : memref<516x8xf32, #tpu.memory_space<vmem>>, vector<64x8xf32>
    %261 = vector.extract_strided_slice %239 {offsets = [0, 40], sizes = [64, 8], strides = [1, 1]} : vector<64x48xf32> to vector<64x8xf32>
    %262 = arith.addf %260, %261 : vector<64x8xf32>
    %c5_162 = arith.constant 5 : index
    %c0_163 = arith.constant 0 : index
    %263 = tpu.strided_load %arg15[%c5_162, %c0_163] {strides = array<i32: 4, 1>} : memref<516x8xf32, #tpu.memory_space<vmem>>, vector<64x8xf32>
    tpu.strided_store %arg15[%c5_162, %c0_163], %262 {strides = array<i32: 4, 1>} : memref<516x8xf32, #tpu.memory_space<vmem>>, vector<64x8xf32>
    %c0_164 = arith.constant 0 : index
    %c0_165 = arith.constant 0 : index
    %264 = vector.load %arg4[%c0_164, %c0_165] : memref<16x48xf32, #tpu.memory_space<vmem>>, vector<16x48xf32>
    %cst_166 = arith.constant dense<0.000000e+00> : vector<64x48xf32>
    %265 = tpu.matmul %235, %264, %cst_166 {dimension_numbers = #tpu.dot_dimension_numbers<[1], [0], [0], [1], [0, 0, 1, 1], [], []>} : vector<64x16xf32>, vector<16x48xf32>, vector<64x48xf32> -> vector<64x48xf32>
    %c258 = arith.constant 258 : index
    %c0_167 = arith.constant 0 : index
    %266 = tpu.strided_load %arg15[%c258, %c0_167] {strides = array<i32: 4, 1>} : memref<516x8xf32, #tpu.memory_space<vmem>>, vector<64x8xf32>
    %267 = vector.extract_strided_slice %265 {offsets = [0, 0], sizes = [64, 8], strides = [1, 1]} : vector<64x48xf32> to vector<64x8xf32>
    %268 = arith.addf %266, %267 : vector<64x8xf32>
    %c258_168 = arith.constant 258 : index
    %c0_169 = arith.constant 0 : index
    %269 = tpu.strided_load %arg15[%c258_168, %c0_169] {strides = array<i32: 4, 1>} : memref<516x8xf32, #tpu.memory_space<vmem>>, vector<64x8xf32>
    tpu.strided_store %arg15[%c258_168, %c0_169], %268 {strides = array<i32: 4, 1>} : memref<516x8xf32, #tpu.memory_space<vmem>>, vector<64x8xf32>
    %c259 = arith.constant 259 : index
    %c0_170 = arith.constant 0 : index
    %270 = tpu.strided_load %arg15[%c259, %c0_170] {strides = array<i32: 4, 1>} : memref<516x8xf32, #tpu.memory_space<vmem>>, vector<64x8xf32>
    %271 = vector.extract_strided_slice %265 {offsets = [0, 8], sizes = [64, 8], strides = [1, 1]} : vector<64x48xf32> to vector<64x8xf32>
    %272 = arith.addf %270, %271 : vector<64x8xf32>
    %c259_171 = arith.constant 259 : index
    %c0_172 = arith.constant 0 : index
    %273 = tpu.strided_load %arg15[%c259_171, %c0_172] {strides = array<i32: 4, 1>} : memref<516x8xf32, #tpu.memory_space<vmem>>, vector<64x8xf32>
    tpu.strided_store %arg15[%c259_171, %c0_172], %272 {strides = array<i32: 4, 1>} : memref<516x8xf32, #tpu.memory_space<vmem>>, vector<64x8xf32>
    %c260 = arith.constant 260 : index
    %c0_173 = arith.constant 0 : index
    %274 = tpu.strided_load %arg15[%c260, %c0_173] {strides = array<i32: 4, 1>} : memref<516x8xf32, #tpu.memory_space<vmem>>, vector<64x8xf32>
    %275 = vector.extract_strided_slice %265 {offsets = [0, 16], sizes = [64, 8], strides = [1, 1]} : vector<64x48xf32> to vector<64x8xf32>
    %276 = arith.addf %274, %275 : vector<64x8xf32>
    %c260_174 = arith.constant 260 : index
    %c0_175 = arith.constant 0 : index
    %277 = tpu.strided_load %arg15[%c260_174, %c0_175] {strides = array<i32: 4, 1>} : memref<516x8xf32, #tpu.memory_space<vmem>>, vector<64x8xf32>
    tpu.strided_store %arg15[%c260_174, %c0_175], %276 {strides = array<i32: 4, 1>} : memref<516x8xf32, #tpu.memory_space<vmem>>, vector<64x8xf32>
    %c261 = arith.constant 261 : index
    %c0_176 = arith.constant 0 : index
    %278 = tpu.strided_load %arg15[%c261, %c0_176] {strides = array<i32: 4, 1>} : memref<516x8xf32, #tpu.memory_space<vmem>>, vector<64x8xf32>
    %279 = vector.extract_strided_slice %265 {offsets = [0, 24], sizes = [64, 8], strides = [1, 1]} : vector<64x48xf32> to vector<64x8xf32>
    %280 = arith.addf %278, %279 : vector<64x8xf32>
    %c261_177 = arith.constant 261 : index
    %c0_178 = arith.constant 0 : index
    %281 = tpu.strided_load %arg15[%c261_177, %c0_178] {strides = array<i32: 4, 1>} : memref<516x8xf32, #tpu.memory_space<vmem>>, vector<64x8xf32>
    tpu.strided_store %arg15[%c261_177, %c0_178], %280 {strides = array<i32: 4, 1>} : memref<516x8xf32, #tpu.memory_space<vmem>>, vector<64x8xf32>
    %c262 = arith.constant 262 : index
    %c0_179 = arith.constant 0 : index
    %282 = tpu.strided_load %arg15[%c262, %c0_179] {strides = array<i32: 4, 1>} : memref<516x8xf32, #tpu.memory_space<vmem>>, vector<64x8xf32>
    %283 = vector.extract_strided_slice %265 {offsets = [0, 32], sizes = [64, 8], strides = [1, 1]} : vector<64x48xf32> to vector<64x8xf32>
    %284 = arith.addf %282, %283 : vector<64x8xf32>
    %c262_180 = arith.constant 262 : index
    %c0_181 = arith.constant 0 : index
    %285 = tpu.strided_load %arg15[%c262_180, %c0_181] {strides = array<i32: 4, 1>} : memref<516x8xf32, #tpu.memory_space<vmem>>, vector<64x8xf32>
    tpu.strided_store %arg15[%c262_180, %c0_181], %284 {strides = array<i32: 4, 1>} : memref<516x8xf32, #tpu.memory_space<vmem>>, vector<64x8xf32>
    %c263 = arith.constant 263 : index
    %c0_182 = arith.constant 0 : index
    %286 = tpu.strided_load %arg15[%c263, %c0_182] {strides = array<i32: 4, 1>} : memref<516x8xf32, #tpu.memory_space<vmem>>, vector<64x8xf32>
    %287 = vector.extract_strided_slice %265 {offsets = [0, 40], sizes = [64, 8], strides = [1, 1]} : vector<64x48xf32> to vector<64x8xf32>
    %288 = arith.addf %286, %287 : vector<64x8xf32>
    %c263_183 = arith.constant 263 : index
    %c0_184 = arith.constant 0 : index
    %289 = tpu.strided_load %arg15[%c263_183, %c0_184] {strides = array<i32: 4, 1>} : memref<516x8xf32, #tpu.memory_space<vmem>>, vector<64x8xf32>
    tpu.strided_store %arg15[%c263_183, %c0_184], %288 {strides = array<i32: 4, 1>} : memref<516x8xf32, #tpu.memory_space<vmem>>, vector<64x8xf32>
    %c1_185 = arith.constant 1 : index
    %c0_186 = arith.constant 0 : index
    %290 = vector.load %arg15[%c1_185, %c0_186] : memref<516x8xf32, #tpu.memory_space<vmem>>, vector<256x8xf32>
    %c259_187 = arith.constant 259 : index
    %c0_188 = arith.constant 0 : index
    %291 = vector.load %arg15[%c259_187, %c0_188] : memref<516x8xf32, #tpu.memory_space<vmem>>, vector<256x8xf32>
    %cst_189 = arith.constant dense<0.000000e+00> : vector<8xf32>
    %292 = vector.multi_reduction <add>, %290, %cst_189 [0] : vector<256x8xf32> to vector<8xf32>
    %293 = vector.shape_cast %292 : vector<8xf32> to vector<1x8xf32>
    %cst_190 = arith.constant 0.000000e+00 : f32
    %294 = vector.broadcast %cst_190 : f32 to vector<1x8xf32>
    %295 = arith.addf %294, %293 : vector<1x8xf32>
    %cst_191 = arith.constant dense<0.000000e+00> : vector<8xf32>
    %296 = vector.multi_reduction <add>, %291, %cst_191 [0] : vector<256x8xf32> to vector<8xf32>
    %297 = vector.shape_cast %296 : vector<8xf32> to vector<1x8xf32>
    %298 = arith.addf %295, %297 : vector<1x8xf32>
    %cst_192 = arith.constant 5.120000e+02 : f32
    %299 = vector.broadcast %cst_192 : f32 to vector<1x8xf32>
    %300 = arith.divf %298, %299 : vector<1x8xf32>
    %301 = vector.broadcast %300 : vector<1x8xf32> to vector<256x8xf32>
    %302 = arith.subf %290, %301 : vector<256x8xf32>
    %303 = vector.broadcast %300 : vector<1x8xf32> to vector<256x8xf32>
    %304 = arith.subf %290, %303 : vector<256x8xf32>
    %305 = arith.mulf %302, %304 : vector<256x8xf32>
    %cst_193 = arith.constant dense<0.000000e+00> : vector<8xf32>
    %306 = vector.multi_reduction <add>, %305, %cst_193 [0] : vector<256x8xf32> to vector<8xf32>
    %307 = vector.shape_cast %306 : vector<8xf32> to vector<1x8xf32>
    %cst_194 = arith.constant 0.000000e+00 : f32
    %308 = vector.broadcast %cst_194 : f32 to vector<1x8xf32>
    %309 = arith.addf %308, %307 : vector<1x8xf32>
    %310 = vector.broadcast %300 : vector<1x8xf32> to vector<256x8xf32>
    %311 = arith.subf %291, %310 : vector<256x8xf32>
    %312 = vector.broadcast %300 : vector<1x8xf32> to vector<256x8xf32>
    %313 = arith.subf %291, %312 : vector<256x8xf32>
    %314 = arith.mulf %311, %313 : vector<256x8xf32>
    %cst_195 = arith.constant dense<0.000000e+00> : vector<8xf32>
    %315 = vector.multi_reduction <add>, %314, %cst_195 [0] : vector<256x8xf32> to vector<8xf32>
    %316 = vector.shape_cast %315 : vector<8xf32> to vector<1x8xf32>
    %317 = arith.addf %309, %316 : vector<1x8xf32>
    %cst_196 = arith.constant 5.120000e+02 : f32
    %318 = vector.broadcast %cst_196 : f32 to vector<1x8xf32>
    %319 = arith.divf %317, %318 : vector<1x8xf32>
    %cst_197 = arith.constant 9.99999974E-6 : f32
    %320 = vector.broadcast %cst_197 : f32 to vector<1x8xf32>
    %321 = arith.addf %319, %320 : vector<1x8xf32>
    %322 = math.rsqrt %321 : vector<1x8xf32>
    %c0_198 = arith.constant 0 : index
    %c0_199 = arith.constant 0 : index
    %323 = vector.load %arg10[%c0_198, %c0_199] : memref<1x8xf32, #tpu.memory_space<vmem>>, vector<1x8xf32>
    %324 = arith.mulf %322, %323 : vector<1x8xf32>
    %c0_200 = arith.constant 0 : index
    %c0_201 = arith.constant 0 : index
    %325 = vector.load %arg11[%c0_200, %c0_201] : memref<1x8xf32, #tpu.memory_space<vmem>>, vector<1x8xf32>
    %326 = arith.mulf %300, %324 : vector<1x8xf32>
    %327 = arith.subf %325, %326 : vector<1x8xf32>
    %328 = vector.broadcast %324 : vector<1x8xf32> to vector<256x8xf32>
    %329 = arith.mulf %290, %328 : vector<256x8xf32>
    %330 = vector.broadcast %327 : vector<1x8xf32> to vector<256x8xf32>
    %331 = arith.addf %329, %330 : vector<256x8xf32>
    %cst_202 = arith.constant 0.000000e+00 : f32
    %332 = vector.broadcast %cst_202 : f32 to vector<256x8xf32>
    %333 = arith.cmpf oge, %331, %332 : vector<256x8xf32>
    %cst_203 = arith.constant 0.00999999977 : f32
    %334 = vector.broadcast %cst_203 : f32 to vector<256x8xf32>
    %335 = arith.mulf %334, %331 : vector<256x8xf32>
    %336 = arith.select %333, %331, %335 : vector<256x8xi1>, vector<256x8xf32>
    %337 = vector.broadcast %324 : vector<1x8xf32> to vector<256x8xf32>
    %338 = arith.mulf %291, %337 : vector<256x8xf32>
    %339 = vector.broadcast %327 : vector<1x8xf32> to vector<256x8xf32>
    %340 = arith.addf %338, %339 : vector<256x8xf32>
    %cst_204 = arith.constant 0.000000e+00 : f32
    %341 = vector.broadcast %cst_204 : f32 to vector<256x8xf32>
    %342 = arith.cmpf oge, %340, %341 : vector<256x8xf32>
    %cst_205 = arith.constant 0.00999999977 : f32
    %343 = vector.broadcast %cst_205 : f32 to vector<256x8xf32>
    %344 = arith.mulf %343, %340 : vector<256x8xf32>
    %345 = arith.select %342, %340, %344 : vector<256x8xi1>, vector<256x8xf32>
    %cst_206 = arith.constant 0.000000e+00 : f32
    %346 = vector.broadcast %cst_206 : f32 to vector<1x1xf32>
    %c0_207 = arith.constant 0 : index
    %c0_208 = arith.constant 0 : index
    %347 = vector.load %arg5[%c0_207, %c0_208] : memref<6x8xf32, #tpu.memory_space<vmem>>, vector<6x8xf32>
    %cst_209 = arith.constant dense<0.000000e+00> : vector<6x256xf32>
    %348 = tpu.matmul %347, %336, %cst_209 {dimension_numbers = #tpu.dot_dimension_numbers<[1], [1], [0], [0], [0, 0, 1, 0], [], []>} : vector<6x8xf32>, vector<256x8xf32>, vector<6x256xf32> -> vector<6x256xf32>
    %349 = vector.extract_strided_slice %348 {offsets = [5, 0], sizes = [1, 255], strides = [1, 1]} : vector<6x256xf32> to vector<1x255xf32>
    %350 = tpu.concatenate %346, %349 in 1 : vector<1x1xf32>, vector<1x255xf32> -> vector<1x256xf32>
    %351 = vector.extract_strided_slice %348 {offsets = [0, 1], sizes = [1, 255], strides = [1, 1]} : vector<6x256xf32> to vector<1x255xf32>
    %352 = tpu.concatenate %351, %346 in 1 : vector<1x255xf32>, vector<1x1xf32> -> vector<1x256xf32>
    %353 = vector.extract_strided_slice %348 {offsets = [1, 0], sizes = [1, 256], strides = [1, 1]} : vector<6x256xf32> to vector<1x256xf32>
    %354 = arith.addf %353, %350 : vector<1x256xf32>
    %355 = vector.extract_strided_slice %348 {offsets = [2, 0], sizes = [1, 256], strides = [1, 1]} : vector<6x256xf32> to vector<1x256xf32>
    %356 = vector.extract_strided_slice %348 {offsets = [3, 0], sizes = [1, 256], strides = [1, 1]} : vector<6x256xf32> to vector<1x256xf32>
    %357 = vector.extract_strided_slice %348 {offsets = [4, 0], sizes = [1, 256], strides = [1, 1]} : vector<6x256xf32> to vector<1x256xf32>
    %358 = arith.addf %357, %352 : vector<1x256xf32>
    %359 = tpu.concatenate %354, %355, %356, %358 in 0 : vector<1x256xf32>, vector<1x256xf32>, vector<1x256xf32>, vector<1x256xf32> -> vector<4x256xf32>
    %360 = math.tanh %359 : vector<4x256xf32>
    %c0_210 = arith.constant 0 : index
    %c0_211 = arith.constant 0 : index
    %361 = vector.load %arg12[%c0_210, %c0_211] : memref<8x256xf32, #tpu.memory_space<vmem>>, vector<4x256xf32>
    tpu.vector_store %arg12[%c0_210, %c0_211], %360 {strides = array<i32>} : memref<8x256xf32, #tpu.memory_space<vmem>>, vector<4x256xf32>,
    %c0_212 = arith.constant 0 : index
    %c0_213 = arith.constant 0 : index
    %362 = vector.load %arg5[%c0_212, %c0_213] : memref<6x8xf32, #tpu.memory_space<vmem>>, vector<6x8xf32>
    %cst_214 = arith.constant dense<0.000000e+00> : vector<6x256xf32>
    %363 = tpu.matmul %362, %345, %cst_214 {dimension_numbers = #tpu.dot_dimension_numbers<[1], [1], [0], [0], [0, 0, 1, 0], [], []>} : vector<6x8xf32>, vector<256x8xf32>, vector<6x256xf32> -> vector<6x256xf32>
    %364 = vector.extract_strided_slice %363 {offsets = [5, 0], sizes = [1, 255], strides = [1, 1]} : vector<6x256xf32> to vector<1x255xf32>
    %365 = tpu.concatenate %346, %364 in 1 : vector<1x1xf32>, vector<1x255xf32> -> vector<1x256xf32>
    %366 = vector.extract_strided_slice %363 {offsets = [0, 1], sizes = [1, 255], strides = [1, 1]} : vector<6x256xf32> to vector<1x255xf32>
    %367 = tpu.concatenate %366, %346 in 1 : vector<1x255xf32>, vector<1x1xf32> -> vector<1x256xf32>
    %368 = vector.extract_strided_slice %363 {offsets = [1, 0], sizes = [1, 256], strides = [1, 1]} : vector<6x256xf32> to vector<1x256xf32>
    %369 = arith.addf %368, %365 : vector<1x256xf32>
    %370 = vector.extract_strided_slice %363 {offsets = [2, 0], sizes = [1, 256], strides = [1, 1]} : vector<6x256xf32> to vector<1x256xf32>
    %371 = vector.extract_strided_slice %363 {offsets = [3, 0], sizes = [1, 256], strides = [1, 1]} : vector<6x256xf32> to vector<1x256xf32>
    %372 = vector.extract_strided_slice %363 {offsets = [4, 0], sizes = [1, 256], strides = [1, 1]} : vector<6x256xf32> to vector<1x256xf32>
    %373 = arith.addf %372, %367 : vector<1x256xf32>
    %374 = tpu.concatenate %369, %370, %371, %373 in 0 : vector<1x256xf32>, vector<1x256xf32>, vector<1x256xf32>, vector<1x256xf32> -> vector<4x256xf32>
    %375 = math.tanh %374 : vector<4x256xf32>
    %c4_215 = arith.constant 4 : index
    %c0_216 = arith.constant 0 : index
    %376 = vector.load %arg12[%c4_215, %c0_216] : memref<8x256xf32, #tpu.memory_space<vmem>>, vector<4x256xf32>
    tpu.vector_store %arg12[%c4_215, %c0_216], %375 {strides = array<i32>} : memref<8x256xf32, #tpu.memory_space<vmem>>, vector<4x256xf32>,
    return
  }
  func.func @transform_0(%arg0: i32) -> (i32, i32) {
    %c0_i32 = arith.constant 0 : i32
    %c0_i32_0 = arith.constant 0 : i32
    %c0_i32_1 = arith.constant 0 : i32
    return %c0_i32, %c0_i32_0 : i32, i32
  }
  func.func @transform_1(%arg0: i32) -> (i32, i32) {
    %c0_i32 = arith.constant 0 : i32
    %c0_i32_0 = arith.constant 0 : i32
    %c0_i32_1 = arith.constant 0 : i32
    return %c0_i32, %c0_i32_0 : i32, i32
  }
  func.func @transform_2(%arg0: i32) -> (i32, i32) {
    %c0_i32 = arith.constant 0 : i32
    %c0_i32_0 = arith.constant 0 : i32
    %c0_i32_1 = arith.constant 0 : i32
    return %c0_i32, %c0_i32_0 : i32, i32
  }
  func.func @transform_3(%arg0: i32) -> (i32, i32) {
    %c0_i32 = arith.constant 0 : i32
    %c0_i32_0 = arith.constant 0 : i32
    %c0_i32_1 = arith.constant 0 : i32
    return %c0_i32, %c0_i32_0 : i32, i32
  }
  func.func @transform_4(%arg0: i32) -> (i32, i32) {
    %c0_i32 = arith.constant 0 : i32
    %c0_i32_0 = arith.constant 0 : i32
    %c0_i32_1 = arith.constant 0 : i32
    return %c0_i32, %c0_i32_0 : i32, i32
  }
  func.func @transform_5(%arg0: i32) -> (i32, i32) {
    %c0_i32 = arith.constant 0 : i32
    %c0_i32_0 = arith.constant 0 : i32
    %c0_i32_1 = arith.constant 0 : i32
    return %c0_i32, %c0_i32_0 : i32, i32
  }
  func.func @transform_6(%arg0: i32) -> (i32, i32) {
    %c0_i32 = arith.constant 0 : i32
    %c0_i32_0 = arith.constant 0 : i32
    %c0_i32_1 = arith.constant 0 : i32
    return %c0_i32, %c0_i32_0 : i32, i32
  }
  func.func @transform_7(%arg0: i32) -> (i32, i32) {
    %c0_i32 = arith.constant 0 : i32
    %c0_i32_0 = arith.constant 0 : i32
    %c0_i32_1 = arith.constant 0 : i32
    return %c0_i32, %c0_i32_0 : i32, i32
  }
  func.func @transform_8(%arg0: i32) -> (i32, i32) {
    %c0_i32 = arith.constant 0 : i32
    %c0_i32_0 = arith.constant 0 : i32
    %c0_i32_1 = arith.constant 0 : i32
    return %c0_i32, %c0_i32_0 : i32, i32
  }
  func.func @transform_9(%arg0: i32) -> (i32, i32) {
    %c0_i32 = arith.constant 0 : i32
    %c0_i32_0 = arith.constant 0 : i32
    %c0_i32_1 = arith.constant 0 : i32
    return %c0_i32, %c0_i32_0 : i32, i32
  }
  func.func @transform_10(%arg0: i32) -> (i32, i32) {
    %c0_i32 = arith.constant 0 : i32
    %c0_i32_0 = arith.constant 0 : i32
    %c0_i32_1 = arith.constant 0 : i32
    return %c0_i32, %c0_i32_0 : i32, i32
  }
  func.func @transform_11(%arg0: i32) -> (i32, i32) {
    %c0_i32 = arith.constant 0 : i32
    %c0_i32_0 = arith.constant 0 : i32
    %c0_i32_1 = arith.constant 0 : i32
    return %c0_i32, %c0_i32_0 : i32, i32
  }
}

</mosaic_0001>

<bundles_post_ra>
// kernel: generator_forward.1
= control target key start
LH: loop header
LB: loop body
LE: loop exit
PB: predicated region body
PF: predicated region fallthrough
CT: control target
= control target key end

     0   :  { %v3876_v3 = vmov 0.0   ;;  %vm55_vm0 = vcmask 261120   ;;  %vm201_vm1 = vcmask 253952   ;;  %s3877_s14 = smov 32   ;;  %s3878_s15 = smov 96   ;;  %vm568_vm2 = vcmask 130048   ;;  %s5452_s1 = inlined_call_operand.vmem [shape: f32[32,512], index: 1, kind: input, shape index: {}]   ;;  %s5453_s0 = inlined_call_operand.vmem [shape: f32[2,32], index: 0, kind: input, shape index: {}]   ;;  %s5454_s2 = inlined_call_operand.vmem [shape: f32[32,96], index: 2, kind: input, shape index: {}]   ;;  %s5455_s5 = inlined_call_operand.vmem [shape: f32[1,32], index: 5, kind: input, shape index: {}]   ;;  %s5456_s6 = inlined_call_operand.vmem [shape: f32[1,32], index: 6, kind: input, shape index: {}]   ;;  %s5457_s3 = inlined_call_operand.vmem [shape: f32[16,48], index: 3, kind: input, shape index: {}]   ;;  %s5458_s7 = inlined_call_operand.vmem [shape: f32[1,16], index: 7, kind: input, shape index: {}]   ;;  %s5459_s8 = inlined_call_operand.vmem [shape: f32[1,16], index: 8, kind: input, shape index: {}]   ;;  %s5460_s4 = inlined_call_operand.vmem [shape: f32[6,8], index: 4, kind: input, shape index: {}]   ;;  %s5461_s9 = inlined_call_operand.vmem [shape: f32[1,8], index: 9, kind: input, shape index: {}]   ;;  %s5462_s10 = inlined_call_operand.vmem [shape: f32[1,8], index: 10, kind: input, shape index: {}]   ;;  %s5463_s11 = inlined_call_operand.vmem [shape: f32[8,256], index: 11, kind: output, shape index: {}]  }
   0x1   :  { %v40_v0 = vld [vmem:[%s5452_s1 + $0x8] sm:$0xff]  ;;  %v39_v2 = vld [vmem:[%s5452_s1] sm:$0xff]  ;;  %123 = vmatprep.mubr.f32.mxu0 %v3876_v3  ;;  %194 = vmatprep.mubr.f32.mxu1 %v3876_v3  ;;  %v42_v6 = vld [vmem:[%s5452_s1 + $0x18] sm:$0xff]  ;;  %573 = vst.msk [vmem:[#allocation3 + $0x20] sm:$0xff] %vm568_vm2, %v3876_v3  ;;  %vm585_vm7 = vcmask 125952   ;;  %s3882_s27 = smov 48  }
   0x2   :  { %v44_v1 = vld [vmem:[%s5452_s1 + $0x28] sm:$0xff]  ;;  %v43_v5 = vld [vmem:[%s5452_s1 + $0x20] sm:$0xff]  ;;  %v46_v7 = vld [vmem:[%s5452_s1 + $0x38] sm:$0xff]  ;;  %574 = vst.msk [vmem:[#allocation3 + $0x28] sm:$0xff] %vm568_vm2, %v3876_v3  ;;  %vm1152_vm8 = vcmask 64512  }
   0x3   :  { %v3649_v4 = vpack.c.bf16 %v44_v1, %v40_v0  ;;  %v3651_v8 = vpack.c.bf16 %v43_v5, %v39_v2  ;;  %v3657_v9 = vpack.c.bf16 %v46_v7, %v42_v6  ;;  %v48_v10 = vld [vmem:[%s5452_s1 + $0x48] sm:$0xff]  ;;  %v41_v12 = vld [vmem:[%s5452_s1 + $0x10] sm:$0xff]  ;;  %v47_v15 = vld [vmem:[%s5452_s1 + $0x40] sm:$0xff]  ;;  %575 = vst.msk [vmem:[#allocation3 + $0x30] sm:$0xff] %vm568_vm2, %v3876_v3 }
   0x4   :  { %v52_v11 = vld [vmem:[%s5452_s1 + $0x68] sm:$0xff]  ;;  %v45_v14 = vld [vmem:[%s5452_s1 + $0x30] sm:$0xff]  ;;  %v51_v16 = vld [vmem:[%s5452_s1 + $0x60] sm:$0xff]  ;;  %576 = vst.msk [vmem:[#allocation3 + $0x38] sm:$0xff] %vm568_vm2, %v3876_v3 }
   0x5   :  { %3650 = vmatprep.subr.bf16.mxu0 %v3649_v4  ;;  %v3653_v13 = vpack.c.bf16 %v52_v11, %v48_v10  ;;  %3658 = vmatprep.subr.bf16.mxu1 %v3657_v9  ;;  %v3659_v17 = vpack.c.bf16 %v45_v14, %v41_v12  ;;  %v3655_v18 = vpack.c.bf16 %v51_v16, %v47_v15  ;;  %v50_v19 = vld [vmem:[%s5452_s1 + $0x58] sm:$0xff]  ;;  %v49_v22 = vld [vmem:[%s5452_s1 + $0x50] sm:$0xff]  ;;  %v38_v25 = vld [vmem:[%s5453_s0] sm:$0x1] }
   0x6   :  { %3652 = vmatpush1.bf16.msra.mxu0 %v3651_v8  ;;  %v54_v20 = vld [vmem:[%s5452_s1 + $0x78] sm:$0xff]  ;;  %v53_v23 = vld [vmem:[%s5452_s1 + $0x70] sm:$0xff]  ;;  %v258_v26 = vld [vmem:[%s5453_s0 + $0x1] sm:$0x1]  ;;  %s3879_s0 = smov 64   ;;  %569 = vst.msk [vmem:[#allocation3] sm:$0xff] %vm568_vm2, %v3876_v3 }
   0x7   :  { %3654 = vmatprep.subr.bf16.mxu0 %v3653_v13  ;;  %v3661_v21 = vpack.c.bf16 %v54_v20, %v50_v19  ;;  %3660 = vmatpush1.bf16.msra.mxu1 %v3659_v17  ;;  %v3663_v24 = vpack.c.bf16 %v53_v23, %v49_v22  ;;  %v587_v35 = vld [vmem:[%s5454_s2] sm:$0xff]  ;;  %v588_v36 = vld [vmem:[%s5454_s2 + $0x8] sm:$0xff]  ;;  %v589_v37 = vld [vmem:[%s5454_s2 + $0x10] sm:$0xff]  ;;  %570 = vst.msk [vmem:[#allocation3 + $0x8] sm:$0xff] %vm568_vm2, %v3876_v3 }
   0x8   :  { %v3681_v38 = vpack.c.bf16 %v588_v36, %v587_v35  ;;  %v590_v39 = vld [vmem:[%s5454_s2 + $0x18] sm:$0xff]  ;;  %571 = vst.msk [vmem:[#allocation3 + $0x10] sm:$0xff] %vm568_vm2, %v3876_v3  ;;  %572 = vst.msk [vmem:[#allocation3 + $0x18] sm:$0xff] %vm568_vm2, %v3876_v3 }
   0x9   :  { %3662 = vmatprep.subr.bf16.mxu1 %v3661_v21  ;;  %v3685_v40 = vpack.c.bf16 %v590_v39, %v589_v37  ;;  %577 = vst.msk [vmem:[#allocation3 + $0x40] sm:$0xff] %vm568_vm2, %v3876_v3  ;;  %578 = vst.msk [vmem:[#allocation3 + $0x48] sm:$0xff] %vm568_vm2, %v3876_v3 }
   0xa   :  { %3656 = vmatpush1.bf16.msra.mxu0 %v3655_v18  ;;  %579 = vst.msk [vmem:[#allocation3 + $0x50] sm:$0xff] %vm568_vm2, %v3876_v3  ;;  %580 = vst.msk [vmem:[#allocation3 + $0x58] sm:$0xff] %vm568_vm2, %v3876_v3 }
   0xb   :  { %3666 = vmatprep.subr.bf16.mxu0 %v3649_v4  ;;  %3664 = vmatpush1.bf16.msra.mxu1 %v3663_v24  ;;  %581 = vst.msk [vmem:[#allocation3 + $0x60] sm:$0xff] %vm568_vm2, %v3876_v3  ;;  %582 = vst.msk [vmem:[#allocation3 + $0x68] sm:$0xff] %vm568_vm2, %v3876_v3 }
   0xc   :  { %3674 = vmatprep.subr.bf16.mxu1 %v3657_v9  ;;  %583 = vst.msk [vmem:[#allocation3 + $0x70] sm:$0xff] %vm568_vm2, %v3876_v3  ;;  %584 = vst.msk [vmem:[#allocation3 + $0x78] sm:$0xff] %vm568_vm2, %v3876_v3 }
   0xd   :  { %3405 = vmatmul.mubr.msk.f32.vlgmr.msra.gmra.mrb[0].mxu0 %vm55_vm0, %v38_v25  ;;  %586 = vst.msk [vmem:[#allocation3 + $0x80] sm:$0xf] %vm585_vm7, %v3876_v3 }
   0xe   :  { %3668 = vmatpush1.bf16.msra.mxu0 %v3651_v8  ;;  %342 = vmatprep.mubr.f32.mxu0 %v3876_v3  ;;  %1157 = vst.msk [vmem:[#allocation4 + $0x20] sm:$0xff] %vm1152_vm8, %v3876_v3  ;;  %1158 = vst.msk [vmem:[#allocation4 + $0x28] sm:$0xff] %vm1152_vm8, %v3876_v3 }
   0xf   :  { %3406 = vmatmul.mubr.msk.f32.vlgmr.msra.gmra.mrb[0].mxu1 %vm55_vm0, %v38_v25  ;;  %3670 = vmatprep.subr.bf16.mxu0 %v3653_v13  ;;  %1159 = vst.msk [vmem:[#allocation4 + $0x30] sm:$0xff] %vm1152_vm8, %v3876_v3  ;;  %1160 = vst.msk [vmem:[#allocation4 + $0x38] sm:$0xff] %vm1152_vm8, %v3876_v3 }
  0x10   :  { %3676 = vmatpush1.bf16.msra.mxu1 %v3659_v17  ;;  %413 = vmatprep.mubr.f32.mxu1 %v3876_v3  ;;  %1153 = vst.msk [vmem:[#allocation4] sm:$0xff] %vm1152_vm8, %v3876_v3  ;;  %1154 = vst.msk [vmem:[#allocation4 + $0x8] sm:$0xff] %vm1152_vm8, %v3876_v3 }
  0x11   :  { %3678 = vmatprep.subr.bf16.mxu1 %v3661_v21  ;;  %1155 = vst.msk [vmem:[#allocation4 + $0x10] sm:$0xff] %vm1152_vm8, %v3876_v3  ;;  %1156 = vst.msk [vmem:[#allocation4 + $0x18] sm:$0xff] %vm1152_vm8, %v3876_v3 }
  0x12   :  { %3672 = vmatpush1.bf16.msra.mxu0 %v3655_v18  ;;  %1161 = vst.msk [vmem:[#allocation4 + $0x40] sm:$0xff] %vm1152_vm8, %v3876_v3  ;;  %1162 = vst.msk [vmem:[#allocation4 + $0x48] sm:$0xff] %vm1152_vm8, %v3876_v3 }
  0x13   :  { %3682 = vmatprep.subr.bf16.mxu0 %v3681_v38  ;;  %1163 = vst.msk [vmem:[#allocation4 + $0x50] sm:$0xff] %vm1152_vm8, %v3876_v3  ;;  %1164 = vst.msk [vmem:[#allocation4 + $0x58] sm:$0xff] %vm1152_vm8, %v3876_v3 }
  0x14   :  { %3680 = vmatpush1.bf16.msra.mxu1 %v3663_v24  ;;  %1165 = vst.msk [vmem:[#allocation4 + $0x60] sm:$0xff] %vm1152_vm8, %v3876_v3  ;;  %1166 = vst.msk [vmem:[#allocation4 + $0x68] sm:$0xff] %vm1152_vm8, %v3876_v3 }
  0x15   :  { %3407 = vmatmul.mubr.msk.f32.vlgmr.msra.gmra.mrb[2].mxu0 %vm55_vm0, %v258_v26  ;;  %3690 = vmatprep.subr.bf16.mxu1 %v3681_v38  ;;  %1167 = vst.msk [vmem:[#allocation4 + $0x70] sm:$0xff] %vm1152_vm8, %v3876_v3  ;;  %1168 = vst.msk [vmem:[#allocation4 + $0x78] sm:$0xff] %vm1152_vm8, %v3876_v3 }
  0x16   :  { %3684 = vmatpush3.bf16.msra.mxu0 %v3681_v38  ;;  %1169 = vst.msk [vmem:[#allocation4 + $0x80] sm:$0xff] %vm1152_vm8, %v3876_v3  ;;  %1170 = vst.msk [vmem:[#allocation4 + $0x88] sm:$0xff] %vm1152_vm8, %v3876_v3 }
  0x17   :  { %3408 = vmatmul.mubr.msk.f32.vlgmr.msra.gmra.mrb[2].mxu1 %vm55_vm0, %v258_v26  ;;  %3686 = vmatprep.subr.bf16.mxu0 %v3685_v40  ;;  %1171 = vst.msk [vmem:[#allocation4 + $0x90] sm:$0xff] %vm1152_vm8, %v3876_v3  ;;  %1172 = vst.msk [vmem:[#allocation4 + $0x98] sm:$0xff] %vm1152_vm8, %v3876_v3 }
  0x18   :  { %3692 = vmatpush3.bf16.msra.mxu1 %v3681_v38  ;;  %1173 = vst.msk [vmem:[#allocation4 + $0xa0] sm:$0xff] %vm1152_vm8, %v3876_v3  ;;  %1174 = vst.msk [vmem:[#allocation4 + $0xa8] sm:$0xff] %vm1152_vm8, %v3876_v3 }
  0x19   :  { %3694 = vmatprep.subr.bf16.mxu1 %v3685_v40  ;;  %1175 = vst.msk [vmem:[#allocation4 + $0xb0] sm:$0xff] %vm1152_vm8, %v3876_v3  ;;  %1176 = vst.msk [vmem:[#allocation4 + $0xb8] sm:$0xff] %vm1152_vm8, %v3876_v3 }
  0x1a   :  { %3688 = vmatpush3.bf16.msra.mxu0 %v3685_v40  ;;  %1177 = vst.msk [vmem:[#allocation4 + $0xc0] sm:$0xff] %vm1152_vm8, %v3876_v3  ;;  %1178 = vst.msk [vmem:[#allocation4 + $0xc8] sm:$0xff] %vm1152_vm8, %v3876_v3 }
  0x1b   :  { %1179 = vst.msk [vmem:[#allocation4 + $0xd0] sm:$0xff] %vm1152_vm8, %v3876_v3  ;;  %1180 = vst.msk [vmem:[#allocation4 + $0xd8] sm:$0xff] %vm1152_vm8, %v3876_v3 }
  0x1c   :  { %3696 = vmatpush3.bf16.msra.mxu1 %v3685_v40  ;;  %1181 = vst.msk [vmem:[#allocation4 + $0xe0] sm:$0xff] %vm1152_vm8, %v3876_v3  ;;  %1182 = vst.msk [vmem:[#allocation4 + $0xe8] sm:$0xff] %vm1152_vm8, %v3876_v3 }
  0x1d   :  { %1183 = vst.msk [vmem:[#allocation4 + $0xf0] sm:$0xff] %vm1152_vm8, %v3876_v3  ;;  %1184 = vst.msk [vmem:[#allocation4 + $0xf8] sm:$0xff] %vm1152_vm8, %v3876_v3 }
  0x1e   :  { %1185 = vst.msk [vmem:[#allocation4 + $0x100] sm:$0xff] %vm1152_vm8, %v3876_v3  ;;  %1186 = vst.msk [vmem:[#allocation4 + $0x108] sm:$0xff] %vm1152_vm8, %v3876_v3 }
  0x1f   :  { %1187 = vst.msk [vmem:[#allocation4 + $0x110] sm:$0xff] %vm1152_vm8, %v3876_v3  ;;  %1188 = vst.msk [vmem:[#allocation4 + $0x118] sm:$0xff] %vm1152_vm8, %v3876_v3 }
  0x20   :  { %1189 = vst.msk [vmem:[#allocation4 + $0x120] sm:$0xff] %vm1152_vm8, %v3876_v3  ;;  %1190 = vst.msk [vmem:[#allocation4 + $0x128] sm:$0xff] %vm1152_vm8, %v3876_v3 }
  0x21   :  { %1191 = vst.msk [vmem:[#allocation4 + $0x130] sm:$0xff] %vm1152_vm8, %v3876_v3  ;;  %1192 = vst.msk [vmem:[#allocation4 + $0x138] sm:$0xff] %vm1152_vm8, %v3876_v3 }
  0x22   :  { %1193 = vst.msk [vmem:[#allocation4 + $0x140] sm:$0xff] %vm1152_vm8, %v3876_v3  ;;  %1194 = vst.msk [vmem:[#allocation4 + $0x148] sm:$0xff] %vm1152_vm8, %v3876_v3 }
  0x23   :  { %1195 = vst.msk [vmem:[#allocation4 + $0x150] sm:$0xff] %vm1152_vm8, %v3876_v3  ;;  %1196 = vst.msk [vmem:[#allocation4 + $0x158] sm:$0xff] %vm1152_vm8, %v3876_v3 }
  0x24   :  { %1197 = vst.msk [vmem:[#allocation4 + $0x160] sm:$0xff] %vm1152_vm8, %v3876_v3  ;;  %1198 = vst.msk [vmem:[#allocation4 + $0x168] sm:$0xff] %vm1152_vm8, %v3876_v3 }
  0x25   :  { %1199 = vst.msk [vmem:[#allocation4 + $0x170] sm:$0xff] %vm1152_vm8, %v3876_v3  ;;  %1200 = vst.msk [vmem:[#allocation4 + $0x178] sm:$0xff] %vm1152_vm8, %v3876_v3 }
  0x26   :  { %1201 = vst.msk [vmem:[#allocation4 + $0x180] sm:$0xff] %vm1152_vm8, %v3876_v3  ;;  %1202 = vst.msk [vmem:[#allocation4 + $0x188] sm:$0xff] %vm1152_vm8, %v3876_v3 }
  0x27   :  { %1203 = vst.msk [vmem:[#allocation4 + $0x190] sm:$0xff] %vm1152_vm8, %v3876_v3  ;;  %1204 = vst.msk [vmem:[#allocation4 + $0x198] sm:$0xff] %vm1152_vm8, %v3876_v3 }
  0x28   :  { %1205 = vst.msk [vmem:[#allocation4 + $0x1a0] sm:$0xff] %vm1152_vm8, %v3876_v3  ;;  %1206 = vst.msk [vmem:[#allocation4 + $0x1a8] sm:$0xff] %vm1152_vm8, %v3876_v3 }
  0x29   :  { %1207 = vst.msk [vmem:[#allocation4 + $0x1b0] sm:$0xff] %vm1152_vm8, %v3876_v3  ;;  %1208 = vst.msk [vmem:[#allocation4 + $0x1b8] sm:$0xff] %vm1152_vm8, %v3876_v3 }
  0x2a   :  { %1209 = vst.msk [vmem:[#allocation4 + $0x1c0] sm:$0xff] %vm1152_vm8, %v3876_v3  ;;  %1210 = vst.msk [vmem:[#allocation4 + $0x1c8] sm:$0xff] %vm1152_vm8, %v3876_v3 }
  0x2b   :  { %1211 = vst.msk [vmem:[#allocation4 + $0x1d0] sm:$0xff] %vm1152_vm8, %v3876_v3  ;;  %1212 = vst.msk [vmem:[#allocation4 + $0x1d8] sm:$0xff] %vm1152_vm8, %v3876_v3 }
  0x2c   :  { %1213 = vst.msk [vmem:[#allocation4 + $0x1e0] sm:$0xff] %vm1152_vm8, %v3876_v3  ;;  %1214 = vst.msk [vmem:[#allocation4 + $0x1e8] sm:$0xff] %vm1152_vm8, %v3876_v3 }
  0x2d   :  { %1215 = vst.msk [vmem:[#allocation4 + $0x1f0] sm:$0xff] %vm1152_vm8, %v3876_v3  ;;  %1216 = vst.msk [vmem:[#allocation4 + $0x1f8] sm:$0xff] %vm1152_vm8, %v3876_v3 }
  0xe0   :  { %v125_v27 = vpop.f32.mrb[0].mxu0 }
  0xe1   :  { %202 = vst.msk [vmem:[#allocation2] sm:$0x1] %vm201_vm1, %v125_v27  ;;  %212 = vrot.lane.b32.xlu1 %v125_v27, %s3877_s14  ;;  %204 = vrot.lane.b32.xlu0 %v125_v27, %s3878_s15  ;;  %v127_v28 = vpop.f32.mrb[1].mxu0 }
  0xe2   :  { %216 = vst.msk [vmem:[#allocation2 + $0x4] sm:$0x1] %vm201_vm1, %v127_v28  ;;  %v196_v29 = vpop.f32.mrb[0].mxu1 }
  0xe3   :  { %230 = vst.msk [vmem:[#allocation2 + $0x8] sm:$0x1] %vm201_vm1, %v196_v29  ;;  %v198_v30 = vpop.f32.mrb[1].mxu1 }
  0xe4   :  { %244 = vst.msk [vmem:[#allocation2 + $0xc] sm:$0x1] %vm201_vm1, %v198_v30 }
  0xe5   :  { %236 = vrot.lane.b32.xlu1 %v196_v29, %s3879_s0  ;;  %208 = vrot.lane.b32.xlu0 %v125_v27, %s3879_s0 }
  0xe8   :  { %v344_v31 = vpop.f32.mrb[2].mxu0 }
  0xe9   :  { %232 = vrot.lane.b32.xlu0 %v196_v29, %s3878_s15  ;;  %218 = vrot.lane.b32.xlu1 %v127_v28, %s3878_s15  ;;  %420 = vst.msk [vmem:[#allocation2 + $0x10] sm:$0x1] %vm201_vm1, %v344_v31  ;;  %v346_v32 = vpop.f32.mrb[3].mxu0 }
  0xea   :  { %434 = vst.msk [vmem:[#allocation2 + $0x14] sm:$0x1] %vm201_vm1, %v346_v32  ;;  %v415_v33 = vpop.f32.mrb[2].mxu1 }
  0xeb   :  { %448 = vst.msk [vmem:[#allocation2 + $0x18] sm:$0x1] %vm201_vm1, %v415_v33  ;;  %v417_v34 = vpop.f32.mrb[3].mxu1 }
  0xec   :  { %462 = vst.msk [vmem:[#allocation2 + $0x1c] sm:$0x1] %vm201_vm1, %v417_v34 }
  0xed   :  { %240 = vrot.lane.b32.xlu0 %v196_v29, %s3877_s14  ;;  %226 = vrot.lane.b32.xlu1 %v127_v28, %s3877_s14 }
  0xf1   :  { %222 = vrot.lane.b32.xlu0 %v127_v28, %s3879_s0  ;;  %246 = vrot.lane.b32.xlu1 %v198_v30, %s3878_s15 }
  0xf5   :  { %250 = vrot.lane.b32.xlu0 %v198_v30, %s3879_s0  ;;  %254 = vrot.lane.b32.xlu1 %v198_v30, %s3877_s14 }
  0xf9   :  { %426 = vrot.lane.b32.xlu1 %v344_v31, %s3879_s0  ;;  %422 = vrot.lane.b32.xlu0 %v344_v31, %s3878_s15 }
  0xfd   :  { %454 = vrot.lane.b32.xlu1 %v415_v33, %s3879_s0  ;;  %430 = vrot.lane.b32.xlu0 %v344_v31, %s3877_s14 }
 0x101   :  { %450 = vrot.lane.b32.xlu0 %v415_v33, %s3878_s15  ;;  %436 = vrot.lane.b32.xlu1 %v346_v32, %s3878_s15 }
 0x105   :  { %458 = vrot.lane.b32.xlu0 %v415_v33, %s3877_s14  ;;  %444 = vrot.lane.b32.xlu1 %v346_v32, %s3877_s14 }
 0x109   :  { %440 = vrot.lane.b32.xlu0 %v346_v32, %s3879_s0  ;;  %464 = vrot.lane.b32.xlu1 %v417_v34, %s3878_s15 }
 0x10d   :  { %468 = vrot.lane.b32.xlu0 %v417_v34, %s3879_s0  ;;  %472 = vrot.lane.b32.xlu1 %v417_v34, %s3877_s14 }
 0x153   :  { %v213_v41 = vpop.permute.xlu1 %212  ;;  %v205_v42 = vpop.permute.xlu0 %204 }
 0x154   :  { %215 = vst.msk [vmem:[#allocation2 + $0x3] sm:$0x1] %vm201_vm1, %v213_v41  ;;  %207 = vst.msk [vmem:[#allocation2 + $0x1] sm:$0x1] %vm201_vm1, %v205_v42 }
 0x157   :  { %v237_v43 = vpop.permute.xlu1 %236  ;;  %v209_v44 = vpop.permute.xlu0 %208 }
 0x158   :  { %239 = vst.msk [vmem:[#allocation2 + $0xa] sm:$0x1] %vm201_vm1, %v237_v43  ;;  %211 = vst.msk [vmem:[#allocation2 + $0x2] sm:$0x1] %vm201_vm1, %v209_v44 }
 0x15b   :  { %v233_v45 = vpop.permute.xlu0 %232  ;;  %v219_v46 = vpop.permute.xlu1 %218 }
 0x15c   :  { %235 = vst.msk [vmem:[#allocation2 + $0x9] sm:$0x1] %vm201_vm1, %v233_v45  ;;  %221 = vst.msk [vmem:[#allocation2 + $0x5] sm:$0x1] %vm201_vm1, %v219_v46 }
 0x15f   :  { %v241_v47 = vpop.permute.xlu0 %240  ;;  %v227_v48 = vpop.permute.xlu1 %226 }
 0x160   :  { %243 = vst.msk [vmem:[#allocation2 + $0xb] sm:$0x1] %vm201_vm1, %v241_v47  ;;  %229 = vst.msk [vmem:[#allocation2 + $0x7] sm:$0x1] %vm201_vm1, %v227_v48 }
 0x163   :  { %v223_v49 = vpop.permute.xlu0 %222  ;;  %v247_v50 = vpop.permute.xlu1 %246 }
 0x164   :  { %225 = vst.msk [vmem:[#allocation2 + $0x6] sm:$0x1] %vm201_vm1, %v223_v49  ;;  %249 = vst.msk [vmem:[#allocation2 + $0xd] sm:$0x1] %vm201_vm1, %v247_v50 }
 0x167   :  { %v251_v51 = vpop.permute.xlu0 %250  ;;  %v255_v52 = vpop.permute.xlu1 %254 }
 0x168   :  { %253 = vst.msk [vmem:[#allocation2 + $0xe] sm:$0x1] %vm201_vm1, %v251_v51  ;;  %257 = vst.msk [vmem:[#allocation2 + $0xf] sm:$0x1] %vm201_vm1, %v255_v52 }
 0x16b   :  { %v427_v53 = vpop.permute.xlu1 %426  ;;  %v423_v54 = vpop.permute.xlu0 %422  ;;  %v4108_v62 = vld [vmem:[#allocation2] sm:$0xff] }
 0x16c   :  { %429 = vst.msk [vmem:[#allocation2 + $0x12] sm:$0x1] %vm201_vm1, %v427_v53  ;;  %425 = vst.msk [vmem:[#allocation2 + $0x11] sm:$0x1] %vm201_vm1, %v423_v54  ;;  %v480_v2 = vsel %vm55_vm0, %v4108_v62, 0.0 }
 0x16f   :  { %v455_v55 = vpop.permute.xlu1 %454  ;;  %v431_v56 = vpop.permute.xlu0 %430  ;;  %v4104_v61 = vld [vmem:[#allocation2 + $0x8] sm:$0xff] }
 0x170   :  { %457 = vst.msk [vmem:[#allocation2 + $0x1a] sm:$0x1] %vm201_vm1, %v455_v55  ;;  %433 = vst.msk [vmem:[#allocation2 + $0x13] sm:$0x1] %vm201_vm1, %v431_v56  ;;  %v481_v63 = vsel %vm55_vm0, %v4104_v61, 0.0  ;;  %v538_v55 = vlaneseq }
 0x171   :  { %v482_v4 = vadd.f32 %v481_v63, %v480_v2  ;;  %v535_v63 = vld [vmem:[%s5456_s6] sm:$0x1]  ;;  %s3881_s6 = smov 80  }
 0x172   :  { %v539_v56 = vshrl.u32 %v538_v55, 7 }
 0x173   :  { %v451_v57 = vpop.permute.xlu0 %450  ;;  %v437_v58 = vpop.permute.xlu1 %436  ;;  %v483_v7 = vrot.slane %v482_v4, 4 }
 0x174   :  { %453 = vst.msk [vmem:[#allocation2 + $0x19] sm:$0x1] %vm201_vm1, %v451_v57  ;;  %439 = vst.msk [vmem:[#allocation2 + $0x15] sm:$0x1] %vm201_vm1, %v437_v58  ;;  %v533_v57 = vld [vmem:[%s5455_s5] sm:$0x1] }
 0x175   :  { %v484_v9 = vadd.f32 %v483_v7, %v482_v4  ;;  %v4129_v58 = vsub.s32 0, %v539_v56  ;;  %s3880_s5 = smov 112  }
 0x177   :  { %v459_v59 = vpop.permute.xlu0 %458  ;;  %v445_v60 = vpop.permute.xlu1 %444  ;;  %v485_v13 = vrot.slane %v484_v9, 2  ;;  %5496 = vst [vmem:[#allocation5_spill] sm:$0xff] %v4129_v58 }
 0x178   :  { %461 = vst.msk [vmem:[#allocation2 + $0x1b] sm:$0x1] %vm201_vm1, %v459_v59  ;;  %447 = vst.msk [vmem:[#allocation2 + $0x17] sm:$0x1] %vm201_vm1, %v445_v60 }
 0x179   :  { %v486_v16 = vadd.f32 %v485_v13, %v484_v9 }
 0x17b   :  { %v441_v0 = vpop.permute.xlu0 %440  ;;  %v465_v1 = vpop.permute.xlu1 %464  ;;  %v487_v19 = vrot.slane %v486_v16, 1 }
 0x17c   :  { %443 = vst.msk [vmem:[#allocation2 + $0x16] sm:$0x1] %vm201_vm1, %v441_v0  ;;  %467 = vst.msk [vmem:[#allocation2 + $0x1d] sm:$0x1] %vm201_vm1, %v465_v1 }
 0x17d   :  { %v488_v22 = vadd.f32 %v487_v19, %v486_v16 }
 0x17f   :  { %v469_v5 = vpop.permute.xlu0 %468  ;;  %v473_v6 = vpop.permute.xlu1 %472 }
 0x180   :  { %471 = vst.msk [vmem:[#allocation2 + $0x1e] sm:$0x1] %vm201_vm1, %v469_v5  ;;  %475 = vst.msk [vmem:[#allocation2 + $0x1f] sm:$0x1] %vm201_vm1, %v473_v6 }
 0x183   :  { %v478_v8 = vld [vmem:[#allocation2 + $0x10] sm:$0xff] }
 0x184   :  { %v490_v11 = vsel %vm55_vm0, %v478_v8, 0.0 }
 0x187   :  { %v479_v10 = vld [vmem:[#allocation2 + $0x18] sm:$0xff] }
 0x188   :  { %v491_v12 = vsel %vm55_vm0, %v479_v10, 0.0 }
 0x189   :  { %v492_v14 = vadd.f32 %v491_v12, %v490_v11 }
 0x18b   :  { %v493_v15 = vrot.slane %v492_v14, 4 }
 0x18d   :  { %v494_v17 = vadd.f32 %v493_v15, %v492_v14 }
 0x18f   :  { %v495_v18 = vrot.slane %v494_v17, 2 }
 0x191   :  { %v496_v20 = vadd.f32 %v495_v18, %v494_v17 }
 0x193   :  { %v497_v21 = vrot.slane %v496_v20, 1 }
 0x195   :  { %v498_v23 = vadd.f32 %v497_v21, %v496_v20  ;;  %v839_v20 = vld [vmem:[#allocation3 + $0x62] ss:$4 sm:$0xff] }
 0x196   :  { %v837_v21 = vld [vmem:[#allocation3 + $0x42] ss:$4 sm:$0xff] }
 0x197   :  { %v499_v24 = vadd.f32 %v498_v23, %v488_v22  ;;  %v672_v22 = vld [vmem:[#allocation3] ss:$4 sm:$0xff] }
 0x199   :  { %v501_v25 = vmul.f32 0.03125, %v499_v24 }
 0x19b   :  { %v502_v26 = vsub.f32 %v4108_v62, %v501_v25  ;;  %v503_v27 = vsub.f32 %v4104_v61, %v501_v25  ;;  %v516_v28 = vsub.f32 %v478_v8, %v501_v25  ;;  %v517_v29 = vsub.f32 %v479_v10, %v501_v25 }
 0x19d   :  { %v504_v30 = vmul.f32 %v502_v26, %v502_v26  ;;  %v505_v31 = vmul.f32 %v503_v27, %v503_v27  ;;  %v518_v32 = vmul.f32 %v516_v28, %v516_v28  ;;  %v519_v33 = vmul.f32 %v517_v29, %v517_v29 }
 0x19f   :  { %v506_v34 = vsel %vm55_vm0, %v504_v30, 0.0  ;;  %v507_v35 = vsel %vm55_vm0, %v505_v31, 0.0  ;;  %v520_v36 = vsel %vm55_vm0, %v518_v32, 0.0  ;;  %v521_v37 = vsel %vm55_vm0, %v519_v33, 0.0  ;;  %v1219_v31 = vld [vmem:[%s5457_s3] sm:$0xff]  ;;  %v1220_v32 = vld [vmem:[%s5457_s3 + $0x8] sm:$0xff] }
 0x1a0   :  { %v508_v38 = vadd.f32 %v507_v35, %v506_v34  ;;  %v522_v39 = vadd.f32 %v521_v37, %v520_v36  ;;  %v3697_v33 = vpack.c.bf16 %v1220_v32, %v1219_v31  ;;  %v698_v34 = vld [vmem:[#allocation3 + $0x22] ss:$4 sm:$0xff]  ;;  %v682_v35 = vld [vmem:[#allocation3 + $0x21] ss:$4 sm:$0xff] }
 0x1a2   :  { %v509_v40 = vrot.slane %v508_v38, 4  ;;  %v523_v41 = vrot.slane %v522_v39, 4  ;;  %3698 = vmatprep.subr.bf16.mxu0 %v3697_v33  ;;  %3702 = vmatprep.subr.bf16.mxu1 %v3697_v33 }
 0x1a4   :  { %v510_v42 = vadd.f32 %v509_v40, %v508_v38  ;;  %v524_v43 = vadd.f32 %v523_v41, %v522_v39  ;;  %v847_v40 = vld [vmem:[#allocation3 + $0x63] ss:$4 sm:$0xff] }
 0x1a6   :  { %v511_v44 = vrot.slane %v510_v42, 2  ;;  %v525_v45 = vrot.slane %v524_v43, 2 }
 0x1a8   :  { %v512_v46 = vadd.f32 %v511_v44, %v510_v42  ;;  %v526_v47 = vadd.f32 %v525_v45, %v524_v43 }
 0x1aa   :  { %v513_v48 = vrot.slane %v512_v46, 1  ;;  %v527_v49 = vrot.slane %v526_v47, 1 }
 0x1ac   :  { %v514_v50 = vadd.f32 %v513_v48, %v512_v46  ;;  %v528_v51 = vadd.f32 %v527_v49, %v526_v47  ;;  %v712_v46 = vld [vmem:[#allocation3 + $0x23] ss:$4 sm:$0xff]  ;;  %v680_v47 = vld [vmem:[#allocation3 + $0x1] ss:$4 sm:$0xff] }
 0x1ae   :  { %v529_v52 = vadd.f32 %v528_v51, %v514_v50 }
 0x1b0   :  { %v530_v53 = vmul.f32 0.03125, %v529_v52  ;;  %v845_v52 = vld [vmem:[#allocation3 + $0x43] ss:$4 sm:$0xff] }
 0x1b2   :  { %v531_v54 = vadd.f32 1e-05, %v530_v53 }
 0x1b4   :  { %3813 = vrsqrt.f32 %v531_v54 }
 0x1be   :  { %v3814_v59 = vpop.eup %3813 }
 0x1bf   :  { %v534_v60 = vmul.f32 %v3814_v59, %v533_v57  ;;  %v710_v59 = vld [vmem:[#allocation3 + $0x3] ss:$4 sm:$0xff] }
 0x1c1   :  { %v536_v0 = vmul.f32 %v534_v60, %v501_v25  ;;  %v541_v1 = vrot.slane %v534_v60, %v4129_v58  ;;  %v696_v60 = vld [vmem:[#allocation3 + $0x2] ss:$4 sm:$0xff] }
 0x1c3   :  { %v537_v2 = vsub.f32 %v535_v63, %v536_v0  ;;  %v542_v4 = vmul.f32 %v541_v1, %v4108_v62  ;;  %v558_v6 = vmul.f32 %v541_v1, %v478_v8  ;;  %v543_v7 = vmul.f32 %v541_v1, %v4104_v61 }
 0x1c4   :  { %v559_v9 = vmul.f32 %v541_v1, %v479_v10  ;;  %v674_v10 = vld [vmem:[#allocation3 + $0x20] ss:$4 sm:$0xff] }
 0x1c5   :  { %v548_v5 = vrot.slane %v537_v2, %v4129_v58 }
 0x1c7   :  { %v550_v11 = vadd.f32 %v548_v5, %v542_v4  ;;  %v560_v12 = vadd.f32 %v558_v6, %v548_v5  ;;  %v551_v13 = vadd.f32 %v548_v5, %v543_v7  ;;  %v561_v14 = vadd.f32 %v559_v9, %v548_v5 }
 0x1c9   :  { %vm552_vm3 = vcmp.ge.f32.partialorder %v550_v11, 0.0  ;;  %v554_v15 = vmul.f32 0.01, %v550_v11  ;;  %vm562_vm4 = vcmp.ge.f32.partialorder %v560_v12, 0.0  ;;  %v564_v16 = vmul.f32 0.01, %v560_v12 }
 0x1ca   :  { %vm553_vm5 = vcmp.ge.f32.partialorder %v551_v13, 0.0  ;;  %v555_v17 = vmul.f32 0.01, %v551_v13  ;;  %vm563_vm6 = vcmp.ge.f32.partialorder %v561_v14, 0.0  ;;  %v565_v18 = vmul.f32 0.01, %v561_v14 }
 0x1cb   :  { %v556_v19 = vsel %vm552_vm3, %v550_v11, %v554_v15  ;;  %v566_v62 = vsel %vm562_vm4, %v560_v12, %v564_v16  ;;  %v875_v12 = vld [vmem:[#allocation3 + $0x45] ss:$4 sm:$0xff] }
 0x1cc   :  { %3603 = vmatprep.mubr.msk.f32.mxu0 %vm55_vm0, %v556_v19  ;;  %3614 = vmatprep.mubr.msk.f32.mxu1 %vm55_vm0, %v566_v62  ;;  %v557_v61 = vsel %vm553_vm5, %v551_v13, %v555_v17  ;;  %v567_v8 = vsel %vm563_vm6, %v561_v14, %v565_v18  ;;  %v861_v13 = vld [vmem:[#allocation3 + $0x44] ss:$4 sm:$0xff] }
 0x1cd   :  { %3604 = vmatmul.mubr.msk.f32.vlgmr.msra.gmra.mrb[4].mxu0 %vm55_vm0, %v557_v61  ;;  %3615 = vmatmul.mubr.msk.f32.vlgmr.msra.gmra.mrb[4].mxu1 %vm55_vm0, %v567_v8 }
 0x1ce   :  { %3700 = vmatpush3.bf16.msra.mxu0 %v3697_v33  ;;  %3704 = vmatpush3.bf16.msra.mxu1 %v3697_v33 }
 0x2a0   :  { %v3605_v23 = vpop.f32.mrb[4].mxu0  ;;  %v3616_v24 = vpop.f32.mrb[4].mxu1 }
 0x2a1   :  { %v676_v25 = vadd.f32 %v3605_v23, %v674_v10  ;;  %v841_v26 = vadd.f32 %v3616_v24, %v839_v20  ;;  %v827_v27 = vpop.f32.mrb[5].mxu1  ;;  %701 = vrot.lane.b32.xlu0 %v3605_v23, %s3878_s15  ;;  %687 = vrot.lane.b32.xlu1 %v3605_v23, %s3880_s5  ;;  %v663_v28 = vpop.f32.mrb[5].mxu0  ;;  %v877_v20 = vld [vmem:[#allocation3 + $0x65] ss:$4 sm:$0xff] }
 0x2a2   :  { %v840_v29 = vadd.f32 %v837_v21, %v827_v27  ;;  %v675_v30 = vadd.f32 %v672_v22, %v663_v28  ;;  %v863_v21 = vld [vmem:[#allocation3 + $0x64] ss:$4 sm:$0xff] }
 0x2a3   :  { %678 = vst [vmem:[#allocation3 + $0x20] ss:$4 sm:$0xff] %v676_v25  ;;  %843 = vst [vmem:[#allocation3 + $0x62] ss:$4 sm:$0xff] %v841_v26 }
 0x2a4   :  { %842 = vst [vmem:[#allocation3 + $0x42] ss:$4 sm:$0xff] %v840_v29  ;;  %677 = vst [vmem:[#allocation3] ss:$4 sm:$0xff] %v675_v30 }
 0x2a5   :  { %729 = vrot.lane.b32.xlu0 %v3605_v23, %s3879_s0  ;;  %852 = vrot.lane.b32.xlu1 %v3616_v24, %s3880_s5 }
 0x2a9   :  { %715 = vrot.lane.b32.xlu1 %v3605_v23, %s3881_s6  ;;  %685 = vrot.lane.b32.xlu0 %v663_v28, %s3880_s5 }
 0x2aa   :  { %v726_v42 = vld [vmem:[#allocation3 + $0x24] ss:$4 sm:$0xff] }
 0x2ab   :  { %v724_v7 = vld [vmem:[#allocation3 + $0x4] ss:$4 sm:$0xff]  ;;  %v4165_v62 = vld [vmem:[#allocation3 + $0x46] ss:$4 sm:$0xff] }
 0x2ad   :  { %743 = vrot.lane.b32.xlu1 %v3605_v23, %s3882_s27  ;;  %850 = vrot.lane.b32.xlu0 %v827_v27, %s3880_s5 }
 0x2b1   :  { %713 = vrot.lane.b32.xlu1 %v663_v28, %s3881_s6  ;;  %699 = vrot.lane.b32.xlu0 %v663_v28, %s3878_s15 }
 0x2b5   :  { %741 = vrot.lane.b32.xlu1 %v663_v28, %s3882_s27  ;;  %727 = vrot.lane.b32.xlu0 %v663_v28, %s3879_s0 }
 0x2b9   :  { %878 = vrot.lane.b32.xlu1 %v827_v27, %s3881_s6  ;;  %864 = vrot.lane.b32.xlu0 %v827_v27, %s3878_s15 }
 0x2bd   :  { %906 = vrot.lane.b32.xlu1 %v827_v27, %s3882_s27  ;;  %892 = vrot.lane.b32.xlu0 %v827_v27, %s3879_s0 }
 0x2c1   :  { %880 = vrot.lane.b32.xlu1 %v3616_v24, %s3881_s6  ;;  %866 = vrot.lane.b32.xlu0 %v3616_v24, %s3878_s15 }
 0x2c5   :  { %908 = vrot.lane.b32.xlu1 %v3616_v24, %s3882_s27  ;;  %894 = vrot.lane.b32.xlu0 %v3616_v24, %s3879_s0  ;;  %s3885_s0 = smov 88  }
 0x313   :  { %v702_v36 = vpop.permute.xlu0 %701  ;;  %v688_v37 = vpop.permute.xlu1 %687 }
 0x314   :  { %v706_v38 = vadd.f32 %v702_v36, %v698_v34  ;;  %v692_v39 = vadd.f32 %v688_v37, %v682_v35 }
 0x316   :  { %708 = vst [vmem:[#allocation3 + $0x22] ss:$4 sm:$0xff] %v706_v38  ;;  %694 = vst [vmem:[#allocation3 + $0x21] ss:$4 sm:$0xff] %v692_v39  ;;  %v891_v39 = vld [vmem:[#allocation3 + $0x66] ss:$4 sm:$0xff] }
 0x317   :  { %v730_v41 = vpop.permute.xlu0 %729  ;;  %v853_v43 = vpop.permute.xlu1 %852 }
 0x318   :  { %v734_v44 = vadd.f32 %v730_v41, %v726_v42  ;;  %v857_v45 = vadd.f32 %v853_v43, %v847_v40 }
 0x31a   :  { %736 = vst [vmem:[#allocation3 + $0x24] ss:$4 sm:$0xff] %v734_v44  ;;  %859 = vst [vmem:[#allocation3 + $0x63] ss:$4 sm:$0xff] %v857_v45 }
 0x31b   :  { %v716_v48 = vpop.permute.xlu1 %715  ;;  %v686_v49 = vpop.permute.xlu0 %685 }
 0x31c   :  { %v720_v50 = vadd.f32 %v716_v48, %v712_v46  ;;  %v691_v51 = vadd.f32 %v686_v49, %v680_v47 }
 0x31d   :  { %v740_v53 = vld [vmem:[#allocation3 + $0x25] ss:$4 sm:$0xff] }
 0x31e   :  { %722 = vst [vmem:[#allocation3 + $0x23] ss:$4 sm:$0xff] %v720_v50  ;;  %693 = vst [vmem:[#allocation3 + $0x1] ss:$4 sm:$0xff] %v691_v51 }
 0x31f   :  { %v744_v54 = vpop.permute.xlu1 %743  ;;  %v851_v55 = vpop.permute.xlu0 %850 }
 0x320   :  { %v748_v56 = vadd.f32 %v744_v54, %v740_v53  ;;  %v856_v57 = vadd.f32 %v851_v55, %v845_v52 }
 0x321   :  { %v905_v37 = vld [vmem:[#allocation3 + $0x67] ss:$4 sm:$0xff] }
 0x322   :  { %750 = vst [vmem:[#allocation3 + $0x25] ss:$4 sm:$0xff] %v748_v56  ;;  %858 = vst [vmem:[#allocation3 + $0x43] ss:$4 sm:$0xff] %v856_v57 }
 0x323   :  { %v714_v63 = vpop.permute.xlu1 %713  ;;  %v700_v0 = vpop.permute.xlu0 %699 }
 0x324   :  { %v719_v1 = vadd.f32 %v714_v63, %v710_v59  ;;  %v705_v2 = vadd.f32 %v700_v0, %v696_v60 }
 0x325   :  { %v738_v5 = vld [vmem:[#allocation3 + $0x5] ss:$4 sm:$0xff] }
 0x326   :  { %721 = vst [vmem:[#allocation3 + $0x3] ss:$4 sm:$0xff] %v719_v1  ;;  %707 = vst [vmem:[#allocation3 + $0x2] ss:$4 sm:$0xff] %v705_v2 }
 0x327   :  { %v742_v4 = vpop.permute.xlu1 %741  ;;  %v728_v6 = vpop.permute.xlu0 %727 }
 0x328   :  { %v747_v9 = vadd.f32 %v742_v4, %v738_v5  ;;  %v733_v11 = vadd.f32 %v728_v6, %v724_v7 }
 0x329   :  { %v4163_v19 = vld [vmem:[#allocation3 + $0x47] ss:$4 sm:$0xff] }
 0x32a   :  { %749 = vst [vmem:[#allocation3 + $0x5] ss:$4 sm:$0xff] %v747_v9  ;;  %735 = vst [vmem:[#allocation3 + $0x4] ss:$4 sm:$0xff] %v733_v11  ;;  %v4319_v41 = vld [vmem:[#allocation3 + $0x29] sm:$0xff]  ;;  %v4321_v45 = vld [vmem:[#allocation3 + $0x31] sm:$0xff] }
 0x32b   :  { %v879_v14 = vpop.permute.xlu1 %878  ;;  %v865_v15 = vpop.permute.xlu0 %864  ;;  %v941_v53 = vsel %vm568_vm2, %v4319_v41, 0.0  ;;  %v4337_v55 = vld [vmem:[#allocation3 + $0x39] sm:$0xff]  ;;  %v943_v59 = vsel %vm568_vm2, %v4321_v45, 0.0 }
 0x32c   :  { %v884_v16 = vadd.f32 %v879_v14, %v875_v12  ;;  %v870_v17 = vadd.f32 %v865_v15, %v861_v13  ;;  %v945_v1 = vsel %vm568_vm2, %v4337_v55, 0.0 }
 0x32e   :  { %886 = vst [vmem:[#allocation3 + $0x45] ss:$4 sm:$0xff] %v884_v16  ;;  %872 = vst [vmem:[#allocation3 + $0x44] ss:$4 sm:$0xff] %v870_v17 }
 0x32f   :  { %v4161_v18 = vpop.permute.xlu1 %906  ;;  %v4167_v61 = vpop.permute.xlu0 %892 }
 0x330   :  { %v912_v8 = vadd.f32 %v4161_v18, %v4163_v19  ;;  %v898_v10 = vadd.f32 %v4167_v61, %v4165_v62 }
 0x331   :  { %v4301_v22 = vld [vmem:[#allocation3 + $0x1] sm:$0xff]  ;;  %v4303_v23 = vld [vmem:[#allocation3 + $0x9] sm:$0xff]  ;;  %v4305_v24 = vld [vmem:[#allocation3 + $0x11] sm:$0xff] }
 0x332   :  { %914 = vst [vmem:[#allocation3 + $0x47] ss:$4 sm:$0xff] %v912_v8  ;;  %900 = vst [vmem:[#allocation3 + $0x46] ss:$4 sm:$0xff] %v898_v10  ;;  %v932_v25 = vsel %vm568_vm2, %v4301_v22, 0.0  ;;  %v933_v26 = vsel %vm568_vm2, %v4303_v23, 0.0 }
 0x333   :  { %v881_v27 = vpop.permute.xlu1 %880  ;;  %v867_v28 = vpop.permute.xlu0 %866  ;;  %v4311_v29 = vld [vmem:[#allocation3 + $0x19] sm:$0xff]  ;;  %v934_v30 = vadd.f32 %v933_v26, %v932_v25  ;;  %v935_v33 = vsel %vm568_vm2, %v4305_v24, 0.0  ;;  %v4315_v34 = vld [vmem:[#allocation3 + $0x21] sm:$0xff] }
 0x334   :  { %v885_v31 = vadd.f32 %v881_v27, %v877_v20  ;;  %v871_v32 = vadd.f32 %v867_v28, %v863_v21  ;;  %v937_v36 = vsel %vm568_vm2, %v4311_v29, 0.0  ;;  %v939_v46 = vsel %vm568_vm2, %v4315_v34, 0.0 }
 0x335   :  { %v936_v35 = vadd.f32 %v935_v33, %v934_v30 }
 0x336   :  { %887 = vst [vmem:[#allocation3 + $0x65] ss:$4 sm:$0xff] %v885_v31  ;;  %873 = vst [vmem:[#allocation3 + $0x64] ss:$4 sm:$0xff] %v871_v32 }
 0x337   :  { %v909_v38 = vpop.permute.xlu1 %908  ;;  %v895_v40 = vpop.permute.xlu0 %894  ;;  %v938_v42 = vadd.f32 %v937_v36, %v936_v35 }
 0x338   :  { %v913_v43 = vadd.f32 %v909_v38, %v905_v37  ;;  %v899_v44 = vadd.f32 %v895_v40, %v891_v39 }
 0x339   :  { %v4325_v47 = vld [vmem:[#allocation3 + $0x43] sm:$0xff]  ;;  %v4327_v48 = vld [vmem:[#allocation3 + $0x4b] sm:$0xff]  ;;  %v4329_v49 = vld [vmem:[#allocation3 + $0x53] sm:$0xff]  ;;  %v940_v50 = vadd.f32 %v939_v46, %v938_v42 }
 0x33a   :  { %v954_v51 = vsel %vm568_vm2, %v4325_v47, 0.0  ;;  %v955_v52 = vsel %vm568_vm2, %v4327_v48, 0.0  ;;  %915 = vst [vmem:[#allocation3 + $0x67] ss:$4 sm:$0xff] %v913_v43  ;;  %901 = vst [vmem:[#allocation3 + $0x66] ss:$4 sm:$0xff] %v899_v44 }
 0x33b   :  { %v956_v54 = vadd.f32 %v955_v52, %v954_v51  ;;  %v942_v56 = vadd.f32 %v941_v53, %v940_v50  ;;  %v957_v57 = vsel %vm568_vm2, %v4329_v49, 0.0  ;;  %v4343_v60 = vld [vmem:[#allocation3 + $0x5b] sm:$0xff] }
 0x33c   :  { %v959_v4 = vsel %vm568_vm2, %v4343_v60, 0.0 }
 0x33d   :  { %v958_v63 = vadd.f32 %v957_v57, %v956_v54  ;;  %v944_v0 = vadd.f32 %v943_v59, %v942_v56 }
 0x33f   :  { %v946_v2 = vadd.f32 %v945_v1, %v944_v0  ;;  %v960_v5 = vadd.f32 %v959_v4, %v958_v63 }
 0x341   :  { %v4349_v6 = vld [vmem:[#allocation3 + $0x63] sm:$0xff]  ;;  %v4351_v7 = vld [vmem:[#allocation3 + $0x6b] sm:$0xff]  ;;  %v947_v9 = vrot.slane %v946_v2, 4  ;;  %v4355_v12 = vld [vmem:[#allocation3 + $0x73] sm:$0xff] }
 0x342   :  { %v961_v11 = vsel %vm568_vm2, %v4349_v6, 0.0  ;;  %v963_v14 = vsel %vm568_vm2, %v4351_v7, 0.0  ;;  %v4359_v15 = vld [vmem:[#allocation3 + $0x7b] sm:$0xff]  ;;  %v965_v18 = vsel %vm568_vm2, %v4355_v12, 0.0 }
 0x343   :  { %v962_v13 = vadd.f32 %v961_v11, %v960_v5  ;;  %v948_v17 = vadd.f32 %v947_v9, %v946_v2  ;;  %v967_v62 = vsel %vm568_vm2, %v4359_v15, 0.0 }
 0x345   :  { %v964_v16 = vadd.f32 %v963_v14, %v962_v13  ;;  %v949_v8 = vrot.slane %v948_v17, 2 }
 0x347   :  { %v966_v19 = vadd.f32 %v965_v18, %v964_v16  ;;  %v950_v20 = vadd.f32 %v949_v8, %v948_v17 }
 0x349   :  { %v968_v61 = vadd.f32 %v967_v62, %v966_v19  ;;  %v951_v26 = vrot.slane %v950_v20, 1 }
 0x34b   :  { %v969_v10 = vrot.slane %v968_v61, 4  ;;  %v952_v30 = vadd.f32 %v951_v26, %v950_v20 }
 0x34d   :  { %v970_v21 = vadd.f32 %v969_v10, %v968_v61 }
 0x34f   :  { %v971_v25 = vrot.slane %v970_v21, 2 }
 0x351   :  { %v972_v27 = vadd.f32 %v971_v25, %v970_v21 }
 0x353   :  { %v973_v28 = vrot.slane %v972_v27, 1 }
 0x355   :  { %v974_v31 = vadd.f32 %v973_v28, %v972_v27 }
 0x357   :  { %v975_v32 = vadd.f32 %v974_v31, %v952_v30 }
 0x359   :  { %v4365_v33 = vmul.f32 0.0078125, %v975_v32 }
 0x35b   :  { %v978_v35 = vsub.f32 %v4301_v22, %v4365_v33  ;;  %v979_v36 = vsub.f32 %v4303_v23, %v4365_v33  ;;  %v980_v37 = vsub.f32 %v4305_v24, %v4365_v33  ;;  %v981_v38 = vsub.f32 %v4311_v29, %v4365_v33 }
 0x35c   :  { %v982_v39 = vsub.f32 %v4315_v34, %v4365_v33  ;;  %v983_v44 = vsub.f32 %v4319_v41, %v4365_v33  ;;  %v984_v52 = vsub.f32 %v4321_v45, %v4365_v33  ;;  %v1016_v57 = vsub.f32 %v4325_v47, %v4365_v33 }
 0x35d   :  { %v986_v40 = vmul.f32 %v978_v35, %v978_v35  ;;  %v987_v42 = vmul.f32 %v979_v36, %v979_v36  ;;  %v988_v43 = vmul.f32 %v980_v37, %v980_v37  ;;  %v989_v46 = vmul.f32 %v981_v38, %v981_v38 }
 0x35e   :  { %v990_v53 = vmul.f32 %v982_v39, %v982_v39  ;;  %v1017_v59 = vsub.f32 %v4327_v48, %v4365_v33  ;;  %v1018_v63 = vsub.f32 %v4329_v49, %v4365_v33  ;;  %v985_v0 = vsub.f32 %v4337_v55, %v4365_v33 }
 0x35f   :  { %v994_v50 = vsel %vm568_vm2, %v986_v40, 0.0  ;;  %v995_v51 = vsel %vm568_vm2, %v987_v42, 0.0  ;;  %v997_v56 = vsel %vm568_vm2, %v988_v43, 0.0  ;;  %v1019_v2 = vsub.f32 %v4343_v60, %v4365_v33 }
 0x360   :  { %v996_v54 = vadd.f32 %v995_v51, %v994_v50  ;;  %v991_v4 = vmul.f32 %v983_v44, %v983_v44  ;;  %v999_v5 = vsel %vm568_vm2, %v989_v46, 0.0  ;;  %v1024_v9 = vmul.f32 %v1016_v57, %v1016_v57 }
 0x361   :  { %v1025_v11 = vmul.f32 %v1017_v59, %v1017_v59  ;;  %v1020_v14 = vsub.f32 %v4349_v6, %v4365_v33  ;;  %v1026_v16 = vmul.f32 %v1018_v63, %v1018_v63  ;;  %v992_v17 = vmul.f32 %v984_v52, %v984_v52 }
 0x362   :  { %v998_v1 = vadd.f32 %v997_v56, %v996_v54  ;;  %v1001_v18 = vsel %vm568_vm2, %v990_v53, 0.0  ;;  %v1032_v19 = vsel %vm568_vm2, %v1024_v9, 0.0  ;;  %v1021_v61 = vsub.f32 %v4351_v7, %v4365_v33 }
 0x363   :  { %v1027_v8 = vmul.f32 %v1019_v2, %v1019_v2  ;;  %v1033_v10 = vsel %vm568_vm2, %v1025_v11, 0.0  ;;  %v993_v20 = vmul.f32 %v985_v0, %v985_v0  ;;  %v1003_v21 = vsel %vm568_vm2, %v991_v4, 0.0 }
 0x364   :  { %v1000_v13 = vadd.f32 %v999_v5, %v998_v1  ;;  %v1034_v25 = vadd.f32 %v1033_v10, %v1032_v19  ;;  %v1022_v27 = vsub.f32 %v4355_v12, %v4365_v33  ;;  %v1028_v28 = vmul.f32 %v1020_v14, %v1020_v14  ;;  %v1059_v10 = vld [vmem:[%s5459_s8] sm:$0x1]  ;;  %s3884_s8 = smov 104  }
 0x365   :  { %v1035_v30 = vsel %vm568_vm2, %v1026_v16, 0.0  ;;  %v1005_v31 = vsel %vm568_vm2, %v992_v17, 0.0  ;;  %v1023_v36 = vsub.f32 %v4359_v15, %v4365_v33  ;;  %v1029_v37 = vmul.f32 %v1021_v61, %v1021_v61 }
 0x366   :  { %v1002_v62 = vadd.f32 %v1001_v18, %v1000_v13  ;;  %v1036_v32 = vadd.f32 %v1035_v30, %v1034_v25  ;;  %v1037_v38 = vsel %vm568_vm2, %v1027_v8, 0.0  ;;  %v1007_v39 = vsel %vm568_vm2, %v993_v20, 0.0 }
 0x367   :  { %v1030_v43 = vmul.f32 %v1022_v27, %v1022_v27  ;;  %v1039_v44 = vsel %vm568_vm2, %v1028_v28, 0.0  ;;  %v1031_v51 = vmul.f32 %v1023_v36, %v1023_v36  ;;  %v1041_v52 = vsel %vm568_vm2, %v1029_v37, 0.0 }
 0x368   :  { %v1004_v26 = vadd.f32 %v1003_v21, %v1002_v62  ;;  %v1038_v40 = vadd.f32 %v1037_v38, %v1036_v32  ;;  %v1057_v62 = vld [vmem:[%s5458_s7] sm:$0x1]  ;;  %s3883_s7 = smov 120  }
 0x369   :  { %v1043_v56 = vsel %vm568_vm2, %v1030_v43, 0.0  ;;  %v1045_v63 = vsel %vm568_vm2, %v1031_v51, 0.0 }
 0x36a   :  { %v1006_v35 = vadd.f32 %v1005_v31, %v1004_v26  ;;  %v1040_v46 = vadd.f32 %v1039_v44, %v1038_v40 }
 0x36c   :  { %v1008_v42 = vadd.f32 %v1007_v39, %v1006_v35  ;;  %v1042_v53 = vadd.f32 %v1041_v52, %v1040_v46 }
 0x36e   :  { %v1009_v50 = vrot.slane %v1008_v42, 4  ;;  %v1044_v57 = vadd.f32 %v1043_v56, %v1042_v53 }
 0x370   :  { %v1010_v54 = vadd.f32 %v1009_v50, %v1008_v42  ;;  %v1046_v0 = vadd.f32 %v1045_v63, %v1044_v57 }
 0x372   :  { %v1011_v59 = vrot.slane %v1010_v54, 2  ;;  %v1047_v2 = vrot.slane %v1046_v0, 4 }
 0x374   :  { %v1012_v1 = vadd.f32 %v1011_v59, %v1010_v54  ;;  %v1048_v4 = vadd.f32 %v1047_v2, %v1046_v0 }
 0x376   :  { %v1013_v5 = vrot.slane %v1012_v1, 1  ;;  %v1049_v9 = vrot.slane %v1048_v4, 2 }
 0x378   :  { %v1050_v11 = vadd.f32 %v1049_v9, %v1048_v4  ;;  %v1014_v13 = vadd.f32 %v1013_v5, %v1012_v1 }
 0x37a   :  { %v1051_v14 = vrot.slane %v1050_v11, 1 }
 0x37c   :  { %v1052_v16 = vadd.f32 %v1051_v14, %v1050_v11 }
 0x37e   :  { %v1053_v17 = vadd.f32 %v1052_v16, %v1014_v13 }
 0x380   :  { %v1054_v18 = vmul.f32 0.0078125, %v1053_v17 }
 0x382   :  { %v1055_v19 = vadd.f32 1e-05, %v1054_v18 }
 0x384   :  { %3815 = vrsqrt.f32 %v1055_v19 }
 0x38e   :  { %v3816_v61 = vpop.eup %3815 }
 0x38f   :  { %v1058_v8 = vmul.f32 %v3816_v61, %v1057_v62 }
 0x391   :  { %v1060_v20 = vmul.f32 %v1058_v8, %v4365_v33  ;;  %v4423_v21 = vrot.slane %v1058_v8, %v4129_v58 }
 0x393   :  { %v1061_v25 = vsub.f32 %v1059_v10, %v1060_v20  ;;  %v1066_v26 = vmul.f32 %v4423_v21, %v4301_v22  ;;  %v1112_v27 = vmul.f32 %v4423_v21, %v4325_v47  ;;  %v1067_v28 = vmul.f32 %v4423_v21, %v4303_v23 }
 0x394   :  { %v1113_v30 = vmul.f32 %v4423_v21, %v4327_v48  ;;  %v1068_v31 = vmul.f32 %v4423_v21, %v4305_v24  ;;  %v1114_v33 = vmul.f32 %v4423_v21, %v4329_v49  ;;  %v1069_v32 = vmul.f32 %v4423_v21, %v4311_v29 }
 0x395   :  { %v4440_v22 = vrot.slane %v1061_v25, %v4129_v58  ;;  %v1115_v47 = vmul.f32 %v4423_v21, %v4343_v60  ;;  %v1070_v23 = vmul.f32 %v4423_v21, %v4315_v34  ;;  %v1116_v48 = vmul.f32 %v4423_v21, %v4349_v6 }
 0x396   :  { %v1071_v24 = vmul.f32 %v4423_v21, %v4319_v41  ;;  %v1117_v49 = vmul.f32 %v4423_v21, %v4351_v7  ;;  %v1072_v29 = vmul.f32 %v4423_v21, %v4321_v45  ;;  %v1118_v35 = vmul.f32 %v4423_v21, %v4355_v12 }
 0x397   :  { %v1080_v60 = vadd.f32 %v4440_v22, %v1066_v26  ;;  %v1120_v36 = vadd.f32 %v1112_v27, %v4440_v22  ;;  %v1081_v34 = vadd.f32 %v4440_v22, %v1067_v28  ;;  %v1121_v6 = vadd.f32 %v1113_v30, %v4440_v22  ;;  %v1352_v30 = vld [vmem:[#allocation4 + $0x20] ss:$4 sm:$0xff] }
 0x398   :  { %v1082_v37 = vadd.f32 %v4440_v22, %v1068_v31  ;;  %v1122_v41 = vadd.f32 %v1114_v33, %v4440_v22  ;;  %v1083_v7 = vadd.f32 %v4440_v22, %v1069_v32  ;;  %v1123_v38 = vadd.f32 %v1115_v47, %v4440_v22  ;;  %v1803_v31 = vld [vmem:[#allocation4 + $0x122] ss:$4 sm:$0xff]  ;;  %v1350_v32 = vld [vmem:[#allocation4] ss:$4 sm:$0xff] }
 0x399   :  { %vm1088_vm9 = vcmp.ge.f32.partialorder %v1080_v60, 0.0  ;;  %v1096_v45 = vmul.f32 0.01, %v1080_v60  ;;  %vm1128_vm10 = vcmp.ge.f32.partialorder %v1120_v36, 0.0  ;;  %v1136_v12 = vmul.f32 0.01, %v1120_v36 }
 0x39a   :  { %vm1089_vm11 = vcmp.ge.f32.partialorder %v1081_v34, 0.0  ;;  %v1097_v39 = vmul.f32 0.01, %v1081_v34  ;;  %vm1129_vm12 = vcmp.ge.f32.partialorder %v1121_v6, 0.0  ;;  %v1137_v40 = vmul.f32 0.01, %v1121_v6 }
 0x39b   :  { %v1104_v42 = vsel %vm1088_vm9, %v1080_v60, %v1096_v45  ;;  %v1144_v43 = vsel %vm1128_vm10, %v1120_v36, %v1136_v12  ;;  %vm1090_vm13 = vcmp.ge.f32.partialorder %v1082_v37, 0.0  ;;  %v1098_v44 = vmul.f32 0.01, %v1082_v37  ;;  %v1801_v33 = vld [vmem:[#allocation4 + $0x102] ss:$4 sm:$0xff] }
 0x39c   :  { %3621 = vmatprep.mubr.msk.f32.mxu0 %vm568_vm2, %v1104_v42  ;;  %3637 = vmatprep.mubr.msk.f32.mxu1 %vm568_vm2, %v1144_v43  ;;  %v1105_v46 = vsel %vm1089_vm11, %v1081_v34, %v1097_v39  ;;  %v1145_v50 = vsel %vm1129_vm12, %v1121_v6, %v1137_v40  ;;  %vm1130_vm14 = vcmp.ge.f32.partialorder %v1122_v41, 0.0  ;;  %v1138_v51 = vmul.f32 0.01, %v1122_v41  ;;  %v1807_v60 = vld [vmem:[#allocation4 + $0x162] ss:$4 sm:$0xff] }
 0x39d   :  { %3622 = vmatmul.mubr.msk.f32.vlgmr.msra.gmra.mrb[6].mxu0 %vm568_vm2, %v1105_v46  ;;  %3638 = vmatmul.mubr.msk.f32.vlgmr.msra.gmra.mrb[6].mxu1 %vm568_vm2, %v1145_v50  ;;  %v1106_v52 = vsel %vm1090_vm13, %v1082_v37, %v1098_v44  ;;  %vm1091_vm15 = vcmp.ge.f32.partialorder %v1083_v7, 0.0  ;;  %v1099_v53 = vmul.f32 0.01, %v1083_v7  ;;  %vm1131_vm0 = vcmp.ge.f32.partialorder %v1123_v38, 0.0  ;;  %v1805_v36 = vld [vmem:[#allocation4 + $0x142] ss:$4 sm:$0xff] }
 0x39e   :  { %3624 = vmatprep.mubr.msk.f32.mxu0 %vm568_vm2, %v1106_v52  ;;  %v1146_v54 = vsel %vm1130_vm14, %v1122_v41, %v1138_v51  ;;  %v1139_v56 = vmul.f32 0.01, %v1123_v38  ;;  %v1084_v57 = vadd.f32 %v4440_v22, %v1070_v23  ;;  %v1124_v59 = vadd.f32 %v1116_v48, %v4440_v22  ;;  %v1354_v34 = vld [vmem:[#allocation4 + $0x40] ss:$4 sm:$0xff]  ;;  %v1811_v42 = vld [vmem:[#allocation4 + $0x1a2] ss:$4 sm:$0xff] }
 0x39f   :  { %3640 = vmatprep.mubr.msk.f32.mxu1 %vm568_vm2, %v1146_v54  ;;  %v1107_v63 = vsel %vm1091_vm15, %v1083_v7, %v1099_v53  ;;  %v1085_v0 = vadd.f32 %v4440_v22, %v1071_v24  ;;  %v1125_v1 = vadd.f32 %v1117_v49, %v4440_v22  ;;  %v1086_v2 = vadd.f32 %v4440_v22, %v1072_v29  ;;  %v1360_v40 = vld [vmem:[#allocation4 + $0xa0] ss:$4 sm:$0xff]  ;;  %v1809_v43 = vld [vmem:[#allocation4 + $0x182] ss:$4 sm:$0xff]  ;;  %vm5220_vm15 = vmpackc.low %vm1152_vm8, %vm1152_vm8 }
 0x3a0   :  { %v1147_v4 = vsel %vm1131_vm0, %v1123_v38, %v1139_v56  ;;  %vm1092_vm1 = vcmp.ge.f32.partialorder %v1084_v57, 0.0  ;;  %v1100_v5 = vmul.f32 0.01, %v1084_v57  ;;  %vm1132_vm3 = vcmp.ge.f32.partialorder %v1124_v59, 0.0  ;;  %v1358_v44 = vld [vmem:[#allocation4 + $0x80] ss:$4 sm:$0xff] }
 0x3a1   :  { %3625 = vmatmul.mubr.msk.f32.gmra.mrb[8].mxu0 %vm568_vm2, %v1107_v63  ;;  %3641 = vmatmul.mubr.msk.f32.gmra.mrb[8].mxu1 %vm568_vm2, %v1147_v4  ;;  %v1140_v9 = vmul.f32 0.01, %v1124_v59  ;;  %vm1093_vm4 = vcmp.ge.f32.partialorder %v1085_v0, 0.0  ;;  %v1101_v11 = vmul.f32 0.01, %v1085_v0  ;;  %vm1133_vm5 = vcmp.ge.f32.partialorder %v1125_v1, 0.0 }
 0x3a2   :  { %v1108_v13 = vsel %vm1092_vm1, %v1084_v57, %v1100_v5  ;;  %v1141_v14 = vmul.f32 0.01, %v1125_v1  ;;  %vm1094_vm6 = vcmp.ge.f32.partialorder %v1086_v2, 0.0  ;;  %v1102_v16 = vmul.f32 0.01, %v1086_v2 }
 0x3a3   :  { %3627 = vmatprep.mubr.msk.f32.mxu0 %vm568_vm2, %v1108_v13  ;;  %v1148_v17 = vsel %vm1132_vm3, %v1124_v59, %v1140_v9  ;;  %v1126_v18 = vadd.f32 %v1118_v35, %v4440_v22  ;;  %v1073_v19 = vmul.f32 %v4423_v21, %v4337_v55  ;;  %v1109_v62 = vsel %vm1093_vm4, %v1085_v0, %v1101_v11  ;;  %v1356_v35 = vld [vmem:[#allocation4 + $0x60] ss:$4 sm:$0xff]  ;;  %v1815_v63 = vld [vmem:[#allocation4 + $0x1e2] ss:$4 sm:$0xff] }
 0x3a4   :  { %3643 = vmatprep.mubr.msk.f32.mxu1 %vm568_vm2, %v1148_v17  ;;  %v1149_v61 = vsel %vm1133_vm5, %v1125_v1, %v1141_v14  ;;  %v1119_v8 = vmul.f32 %v4423_v21, %v4359_v15  ;;  %v1110_v10 = vsel %vm1094_vm6, %v1086_v2, %v1102_v16  ;;  %vm1217_vm11 = vcmask 60416   ;;  %v1364_v59 = vld [vmem:[#allocation4 + $0xe0] ss:$4 sm:$0xff]  ;;  %v1813_v2 = vld [vmem:[#allocation4 + $0x1c2] ss:$4 sm:$0xff] }
 0x3a5   :  { %3628 = vmatmul.mubr.msk.f32.gmra.mrb[10].mxu0 %vm568_vm2, %v1109_v62  ;;  %3644 = vmatmul.mubr.msk.f32.gmra.mrb[10].mxu1 %vm568_vm2, %v1149_v61  ;;  %vm1134_vm7 = vcmp.ge.f32.partialorder %v1126_v18, 0.0  ;;  %v1142_v20 = vmul.f32 0.01, %v1126_v18  ;;  %v1087_v25 = vadd.f32 %v4440_v22, %v1073_v19  ;;  %1218 = vst.msk [vmem:[#allocation4 + $0x200] sm:$0xf] %vm1217_vm11, %v3876_v3 }
 0x3a6   :  { %3630 = vmatprep.mubr.msk.f32.mxu0 %vm568_vm2, %v1110_v10  ;;  %v1127_v55 = vadd.f32 %v1119_v8, %v4440_v22  ;;  %v1362_v0 = vld [vmem:[#allocation4 + $0xc0] ss:$4 sm:$0xff]  ;;  %v1448_v17 = vld [vmem:[#allocation4 + $0x22] ss:$4 sm:$0xff]  ;;  %v1835_v10 = vld [vmem:[#allocation4 + $0x123] ss:$4 sm:$0xff] }
 0x3a7   :  { %v1150_v26 = vsel %vm1134_vm7, %v1126_v18, %v1142_v20  ;;  %vm1095_vm9 = vcmp.ge.f32.partialorder %v1087_v25, 0.0  ;;  %v1103_v27 = vmul.f32 0.01, %v1087_v25  ;;  %v1384_v18 = vld [vmem:[#allocation4 + $0x21] ss:$4 sm:$0xff] }
 0x3a8   :  { %3646 = vmatprep.mubr.msk.f32.mxu1 %vm568_vm2, %v1150_v26  ;;  %vm1135_vm10 = vcmp.ge.f32.partialorder %v1127_v55, 0.0  ;;  %v1143_v15 = vmul.f32 0.01, %v1127_v55 }
 0x3a9   :  { %v1111_v21 = vsel %vm1095_vm9, %v1087_v25, %v1103_v27 }
 0x3aa   :  { %3631 = vmatmul.mubr.msk.f32.gmra.mrb[12].mxu0 %vm568_vm2, %v1111_v21  ;;  %v1151_v28 = vsel %vm1135_vm10, %v1127_v55, %v1143_v15  ;;  %v1899_v15 = vld [vmem:[#allocation4 + $0x124] ss:$4 sm:$0xff]  ;;  %v1504_v21 = vld [vmem:[#allocation4 + $0x23] ss:$4 sm:$0xff] }
 0x3ab   :  { %3647 = vmatmul.mubr.msk.f32.gmra.mrb[12].mxu1 %vm568_vm2, %v1151_v28 }
 0x470   :  { %v3623_v22 = vpop.f32.mrb[6].mxu0  ;;  %v4493_v47 = vpop.f32.mrb[6].mxu1 }
 0x471   :  { %v1366_v23 = vadd.f32 %v3623_v22, %v1352_v30  ;;  %v1817_v48 = vadd.f32 %v4493_v47, %v1803_v31  ;;  %v4496_v24 = vpop.f32.mrb[7].mxu1  ;;  %1463 = vrot.lane.b32.xlu0 %v3623_v22, %s3880_s5  ;;  %1407 = vrot.lane.b32.xlu1 %v3623_v22, %s3883_s7  ;;  %v4500_v49 = vpop.f32.mrb[7].mxu0 }
 0x472   :  { %v1816_v3 = vadd.f32 %v1801_v33, %v4496_v24  ;;  %v1365_v29 = vadd.f32 %v1350_v32, %v4500_v49 }
 0x473   :  { %1374 = vst [vmem:[#allocation4 + $0x20] ss:$4 sm:$0xff] %v1366_v23  ;;  %1825 = vst [vmem:[#allocation4 + $0x122] ss:$4 sm:$0xff] %v1817_v48  ;;  %v1955_v48 = vld [vmem:[#allocation4 + $0x125] ss:$4 sm:$0xff] }
 0x474   :  { %1824 = vst [vmem:[#allocation4 + $0x102] ss:$4 sm:$0xff] %v1816_v3  ;;  %1373 = vst [vmem:[#allocation4] ss:$4 sm:$0xff] %v1365_v29  ;;  %v4504_v6 = vpop.f32.mrb[8].mxu0  ;;  %v4506_v37 = vpop.f32.mrb[8].mxu1 }
 0x475   :  { %v1368_v41 = vadd.f32 %v4504_v6, %v1356_v35  ;;  %v1819_v7 = vadd.f32 %v4506_v37, %v1807_v60  ;;  %v4510_v38 = vpop.f32.mrb[9].mxu1  ;;  %1575 = vrot.lane.b32.xlu0 %v3623_v22, %s3878_s15  ;;  %1858 = vrot.lane.b32.xlu1 %v4493_v47, %s3883_s7  ;;  %v4515_v45 = vpop.f32.mrb[9].mxu0  ;;  %v1833_v60 = vld [vmem:[#allocation4 + $0x103] ss:$4 sm:$0xff] }
 0x476   :  { %v1818_v12 = vadd.f32 %v1805_v36, %v4510_v38  ;;  %v1367_v39 = vadd.f32 %v1354_v34, %v4515_v45 }
 0x477   :  { %1376 = vst [vmem:[#allocation4 + $0x60] ss:$4 sm:$0xff] %v1368_v41  ;;  %1827 = vst [vmem:[#allocation4 + $0x162] ss:$4 sm:$0xff] %v1819_v7  ;;  %v1446_v41 = vld [vmem:[#allocation4 + $0x2] ss:$4 sm:$0xff] }
 0x478   :  { %1826 = vst [vmem:[#allocation4 + $0x142] ss:$4 sm:$0xff] %v1818_v12  ;;  %1375 = vst [vmem:[#allocation4 + $0x40] ss:$4 sm:$0xff] %v1367_v39  ;;  %v4519_v46 = vpop.f32.mrb[10].mxu0  ;;  %v4521_v50 = vpop.f32.mrb[10].mxu1 }
 0x479   :  { %v1370_v51 = vadd.f32 %v4519_v46, %v1360_v40  ;;  %v1821_v52 = vadd.f32 %v4521_v50, %v1811_v42  ;;  %v4525_v53 = vpop.f32.mrb[11].mxu1  ;;  %1914 = vrot.lane.b32.xlu0 %v4493_v47, %s3880_s5  ;;  %1519 = vrot.lane.b32.xlu1 %v3623_v22, %s3884_s8  ;;  %v4530_v54 = vpop.f32.mrb[11].mxu0 }
 0x47a   :  { %v1820_v56 = vadd.f32 %v1809_v43, %v4525_v53  ;;  %v1369_v57 = vadd.f32 %v1358_v44, %v4530_v54 }
 0x47b   :  { %1378 = vst [vmem:[#allocation4 + $0xa0] ss:$4 sm:$0xff] %v1370_v51  ;;  %1829 = vst [vmem:[#allocation4 + $0x1a2] ss:$4 sm:$0xff] %v1821_v52  ;;  %v1558_v43 = vld [vmem:[#allocation4 + $0x4] ss:$4 sm:$0xff] }
 0x47c   :  { %1828 = vst [vmem:[#allocation4 + $0x182] ss:$4 sm:$0xff] %v1820_v56  ;;  %1377 = vst [vmem:[#allocation4 + $0x80] ss:$4 sm:$0xff] %v1369_v57  ;;  %v1897_v51 = vld [vmem:[#allocation4 + $0x104] ss:$4 sm:$0xff] }
 0x47d   :  { %v4534_v1 = vpop.f32.mrb[12].mxu0  ;;  %2026 = vrot.lane.b32.xlu0 %v4493_v47, %s3878_s15  ;;  %1631 = vrot.lane.b32.xlu1 %v3623_v22, %s3885_s0 }
 0x47e   :  { %v1372_v4 = vadd.f32 %v4534_v1, %v1364_v59  ;;  %v4540_v5 = vpop.f32.mrb[12].mxu1  ;;  %v4542_v9 = vpop.f32.mrb[13].mxu0 }
 0x47f   :  { %v1823_v11 = vadd.f32 %v4540_v5, %v1815_v63  ;;  %v4545_v13 = vpop.f32.mrb[13].mxu1  ;;  %v1371_v14 = vadd.f32 %v1362_v0, %v4542_v9  ;;  %v1560_v25 = vld [vmem:[#allocation4 + $0x24] ss:$4 sm:$0xff]  ;;  %v2011_v32 = vld [vmem:[#allocation4 + $0x126] ss:$4 sm:$0xff] }
 0x480   :  { %1380 = vst [vmem:[#allocation4 + $0xe0] ss:$4 sm:$0xff] %v1372_v4  ;;  %v1822_v16 = vadd.f32 %v1813_v2, %v4545_v13  ;;  %v2009_v63 = vld [vmem:[#allocation4 + $0x106] ss:$4 sm:$0xff]  ;;  %v1839_v4 = vld [vmem:[#allocation4 + $0x163] ss:$4 sm:$0xff] }
 0x481   :  { %1831 = vst [vmem:[#allocation4 + $0x1e2] ss:$4 sm:$0xff] %v1823_v11  ;;  %1379 = vst [vmem:[#allocation4 + $0xc0] ss:$4 sm:$0xff] %v1371_v14  ;;  %1970 = vrot.lane.b32.xlu1 %v4493_v47, %s3884_s8  ;;  %1405 = vrot.lane.b32.xlu0 %v4500_v49, %s3883_s7 }
 0x482   :  { %1830 = vst [vmem:[#allocation4 + $0x1c2] ss:$4 sm:$0xff] %v1822_v16 }
 0x485   :  { %2082 = vrot.lane.b32.xlu1 %v4493_v47, %s3885_s0  ;;  %1856 = vrot.lane.b32.xlu0 %v4496_v24, %s3883_s7 }
 0x489   :  { %1517 = vrot.lane.b32.xlu1 %v4500_v49, %s3884_s8  ;;  %1461 = vrot.lane.b32.xlu0 %v4500_v49, %s3880_s5 }
 0x48d   :  { %1629 = vrot.lane.b32.xlu1 %v4500_v49, %s3885_s0  ;;  %1573 = vrot.lane.b32.xlu0 %v4500_v49, %s3878_s15 }
 0x491   :  { %1968 = vrot.lane.b32.xlu1 %v4496_v24, %s3884_s8  ;;  %1912 = vrot.lane.b32.xlu0 %v4496_v24, %s3880_s5 }
 0x495   :  { %2080 = vrot.lane.b32.xlu1 %v4496_v24, %s3885_s0  ;;  %2024 = vrot.lane.b32.xlu0 %v4496_v24, %s3878_s15  ;;  %v1382_v24 = vld [vmem:[#allocation4 + $0x1] ss:$4 sm:$0xff] }
 0x499   :  { %1862 = vrot.lane.b32.xlu1 %v4506_v37, %s3883_s7  ;;  %1411 = vrot.lane.b32.xlu0 %v4504_v6, %s3883_s7 }
 0x49d   :  { %1523 = vrot.lane.b32.xlu1 %v4504_v6, %s3884_s8  ;;  %1467 = vrot.lane.b32.xlu0 %v4504_v6, %s3880_s5 }
 0x4a1   :  { %1635 = vrot.lane.b32.xlu1 %v4504_v6, %s3885_s0  ;;  %1579 = vrot.lane.b32.xlu0 %v4504_v6, %s3878_s15 }
 0x4a5   :  { %1974 = vrot.lane.b32.xlu1 %v4506_v37, %s3884_s8  ;;  %1918 = vrot.lane.b32.xlu0 %v4506_v37, %s3880_s5 }
 0x4a9   :  { %2086 = vrot.lane.b32.xlu1 %v4506_v37, %s3885_s0  ;;  %2030 = vrot.lane.b32.xlu0 %v4506_v37, %s3878_s15  ;;  %v1502_v37 = vld [vmem:[#allocation4 + $0x3] ss:$4 sm:$0xff] }
 0x4ad   :  { %1860 = vrot.lane.b32.xlu1 %v4510_v38, %s3883_s7  ;;  %1409 = vrot.lane.b32.xlu0 %v4515_v45, %s3883_s7 }
 0x4b1   :  { %1521 = vrot.lane.b32.xlu1 %v4515_v45, %s3884_s8  ;;  %1465 = vrot.lane.b32.xlu0 %v4515_v45, %s3880_s5 }
 0x4b5   :  { %1633 = vrot.lane.b32.xlu1 %v4515_v45, %s3885_s0  ;;  %1577 = vrot.lane.b32.xlu0 %v4515_v45, %s3878_s15 }
 0x4b9   :  { %1972 = vrot.lane.b32.xlu1 %v4510_v38, %s3884_s8  ;;  %1916 = vrot.lane.b32.xlu0 %v4510_v38, %s3880_s5 }
 0x4bd   :  { %2084 = vrot.lane.b32.xlu1 %v4510_v38, %s3885_s0  ;;  %2028 = vrot.lane.b32.xlu0 %v4510_v38, %s3878_s15 }
 0x4c1   :  { %1866 = vrot.lane.b32.xlu1 %v4521_v50, %s3883_s7  ;;  %1415 = vrot.lane.b32.xlu0 %v4519_v46, %s3883_s7 }
 0x4c5   :  { %1527 = vrot.lane.b32.xlu1 %v4519_v46, %s3884_s8  ;;  %1471 = vrot.lane.b32.xlu0 %v4519_v46, %s3880_s5 }
 0x4c9   :  { %1639 = vrot.lane.b32.xlu1 %v4519_v46, %s3885_s0  ;;  %1583 = vrot.lane.b32.xlu0 %v4519_v46, %s3878_s15 }
 0x4cd   :  { %1978 = vrot.lane.b32.xlu1 %v4521_v50, %s3884_s8  ;;  %1922 = vrot.lane.b32.xlu0 %v4521_v50, %s3880_s5 }
 0x4d1   :  { %2090 = vrot.lane.b32.xlu1 %v4521_v50, %s3885_s0  ;;  %2034 = vrot.lane.b32.xlu0 %v4521_v50, %s3878_s15  ;;  %v1953_v50 = vld [vmem:[#allocation4 + $0x105] ss:$4 sm:$0xff] }
 0x4d5   :  { %1864 = vrot.lane.b32.xlu1 %v4525_v53, %s3883_s7  ;;  %1413 = vrot.lane.b32.xlu0 %v4530_v54, %s3883_s7 }
 0x4d9   :  { %1525 = vrot.lane.b32.xlu1 %v4530_v54, %s3884_s8  ;;  %1469 = vrot.lane.b32.xlu0 %v4530_v54, %s3880_s5 }
 0x4dd   :  { %1637 = vrot.lane.b32.xlu1 %v4530_v54, %s3885_s0  ;;  %1581 = vrot.lane.b32.xlu0 %v4530_v54, %s3878_s15 }
 0x4e1   :  { %1976 = vrot.lane.b32.xlu1 %v4525_v53, %s3884_s8  ;;  %1920 = vrot.lane.b32.xlu0 %v4525_v53, %s3880_s5 }
 0x4e3   :  { %v1464_v19 = vpop.permute.xlu0 %1463  ;;  %v1408_v62 = vpop.permute.xlu1 %1407 }
 0x4e4   :  { %v1486_v61 = vadd.f32 %v1464_v19, %v1448_v17  ;;  %v1430_v8 = vadd.f32 %v1408_v62, %v1384_v18  ;;  %v1508_v17 = vld [vmem:[#allocation4 + $0x63] ss:$4 sm:$0xff]  ;;  %v1452_v18 = vld [vmem:[#allocation4 + $0x62] ss:$4 sm:$0xff] }
 0x4e5   :  { %2088 = vrot.lane.b32.xlu1 %v4525_v53, %s3885_s0  ;;  %2032 = vrot.lane.b32.xlu0 %v4525_v53, %s3878_s15 }
 0x4e6   :  { %1494 = vst [vmem:[#allocation4 + $0x22] ss:$4 sm:$0xff] %v1486_v61  ;;  %1438 = vst [vmem:[#allocation4 + $0x21] ss:$4 sm:$0xff] %v1430_v8 }
 0x4e7   :  { %v1576_v20 = vpop.permute.xlu0 %1575  ;;  %v1859_v55 = vpop.permute.xlu1 %1858 }
 0x4e8   :  { %v1598_v26 = vadd.f32 %v1576_v20, %v1560_v25  ;;  %v1881_v27 = vadd.f32 %v1859_v55, %v1835_v10  ;;  %v1564_v25 = vld [vmem:[#allocation4 + $0x64] ss:$4 sm:$0xff] }
 0x4e9   :  { %1870 = vrot.lane.b32.xlu1 %v4540_v5, %s3883_s7  ;;  %1419 = vrot.lane.b32.xlu0 %v4534_v1, %s3883_s7 }
 0x4ea   :  { %1606 = vst [vmem:[#allocation4 + $0x24] ss:$4 sm:$0xff] %v1598_v26  ;;  %1889 = vst [vmem:[#allocation4 + $0x123] ss:$4 sm:$0xff] %v1881_v27  ;;  %v1959_v26 = vld [vmem:[#allocation4 + $0x165] ss:$4 sm:$0xff] }
 0x4eb   :  { %v1915_v28 = vpop.permute.xlu0 %1914  ;;  %v1520_v30 = vpop.permute.xlu1 %1519  ;;  %v1903_v27 = vld [vmem:[#allocation4 + $0x164] ss:$4 sm:$0xff] }
 0x4ec   :  { %v1937_v31 = vadd.f32 %v1915_v28, %v1899_v15  ;;  %v1542_v33 = vadd.f32 %v1520_v30, %v1504_v21 }
 0x4ed   :  { %1531 = vrot.lane.b32.xlu1 %v4534_v1, %s3884_s8  ;;  %1475 = vrot.lane.b32.xlu0 %v4534_v1, %s3880_s5 }
 0x4ee   :  { %1945 = vst [vmem:[#allocation4 + $0x124] ss:$4 sm:$0xff] %v1937_v31  ;;  %1550 = vst [vmem:[#allocation4 + $0x23] ss:$4 sm:$0xff] %v1542_v33  ;;  %v2015_v31 = vld [vmem:[#allocation4 + $0x166] ss:$4 sm:$0xff] }
 0x4ef   :  { %v2027_v22 = vpop.permute.xlu0 %2026  ;;  %v4661_v47 = vpop.permute.xlu1 %1631 }
 0x4f0   :  { %v2049_v23 = vadd.f32 %v2027_v22, %v2011_v32  ;;  %v1837_v22 = vld [vmem:[#allocation4 + $0x143] ss:$4 sm:$0xff] }
 0x4f1   :  { %1868 = vrot.lane.b32.xlu1 %v4545_v13, %s3883_s7  ;;  %1417 = vrot.lane.b32.xlu0 %v4542_v9, %s3883_s7 }
 0x4f2   :  { %2057 = vst [vmem:[#allocation4 + $0x126] ss:$4 sm:$0xff] %v2049_v23  ;;  %v1386_v23 = vld [vmem:[#allocation4 + $0x41] ss:$4 sm:$0xff] }
 0x4f3   :  { %v1971_v49 = vpop.permute.xlu1 %1970  ;;  %v1406_v3 = vpop.permute.xlu0 %1405 }
 0x4f4   :  { %v1993_v29 = vadd.f32 %v1971_v49, %v1955_v48  ;;  %v1429_v35 = vadd.f32 %v1406_v3, %v1382_v24 }
 0x4f5   :  { %1643 = vrot.lane.b32.xlu1 %v4534_v1, %s3885_s0  ;;  %1587 = vrot.lane.b32.xlu0 %v4534_v1, %s3878_s15 }
 0x4f6   :  { %2001 = vst [vmem:[#allocation4 + $0x125] ss:$4 sm:$0xff] %v1993_v29  ;;  %1437 = vst [vmem:[#allocation4 + $0x1] ss:$4 sm:$0xff] %v1429_v35  ;;  %v1506_v29 = vld [vmem:[#allocation4 + $0x43] ss:$4 sm:$0xff] }
 0x4f7   :  { %v4671_v36 = vpop.permute.xlu1 %2082  ;;  %v1857_v34 = vpop.permute.xlu0 %1856  ;;  %v1450_v35 = vld [vmem:[#allocation4 + $0x42] ss:$4 sm:$0xff] }
 0x4f8   :  { %v1880_v6 = vadd.f32 %v1857_v34, %v1833_v60 }
 0x4f9   :  { %1529 = vrot.lane.b32.xlu1 %v4542_v9, %s3884_s8  ;;  %1473 = vrot.lane.b32.xlu0 %v4542_v9, %s3880_s5 }
 0x4fa   :  { %1888 = vst [vmem:[#allocation4 + $0x103] ss:$4 sm:$0xff] %v1880_v6 }
 0x4fb   :  { %v1518_v7 = vpop.permute.xlu1 %1517  ;;  %v1462_v38 = vpop.permute.xlu0 %1461 }
 0x4fc   :  { %v1541_v45 = vadd.f32 %v1518_v7, %v1502_v37  ;;  %v1485_v12 = vadd.f32 %v1462_v38, %v1446_v41  ;;  %v1562_v38 = vld [vmem:[#allocation4 + $0x44] ss:$4 sm:$0xff] }
 0x4fd   :  { %1641 = vrot.lane.b32.xlu1 %v4542_v9, %s3885_s0  ;;  %1585 = vrot.lane.b32.xlu0 %v4542_v9, %s3878_s15  ;;  %v1614_v40 = vld [vmem:[#allocation4 + $0x5] ss:$4 sm:$0xff] }
 0x4fe   :  { %1549 = vst [vmem:[#allocation4 + $0x3] ss:$4 sm:$0xff] %v1541_v45  ;;  %1493 = vst [vmem:[#allocation4 + $0x2] ss:$4 sm:$0xff] %v1485_v12  ;;  %v1388_v9 = vld [vmem:[#allocation4 + $0x61] ss:$4 sm:$0xff] }
 0x4ff   :  { %v1630_v39 = vpop.permute.xlu1 %1629  ;;  %v1574_v42 = vpop.permute.xlu0 %1573  ;;  %v1957_v12 = vld [vmem:[#allocation4 + $0x145] ss:$4 sm:$0xff] }
 0x500   :  { %v1653_v44 = vadd.f32 %v1630_v39, %v1614_v40  ;;  %v1597_v46 = vadd.f32 %v1574_v42, %v1558_v43  ;;  %v1901_v39 = vld [vmem:[#allocation4 + $0x144] ss:$4 sm:$0xff] }
 0x501   :  { %1980 = vrot.lane.b32.xlu1 %v4545_v13, %s3884_s8  ;;  %1924 = vrot.lane.b32.xlu0 %v4545_v13, %s3880_s5  ;;  %v2065_v59 = vld [vmem:[#allocation4 + $0x107] ss:$4 sm:$0xff] }
 0x502   :  { %1661 = vst [vmem:[#allocation4 + $0x5] ss:$4 sm:$0xff] %v1653_v44  ;;  %1605 = vst [vmem:[#allocation4 + $0x4] ss:$4 sm:$0xff] %v1597_v46 }
 0x503   :  { %v1969_v52 = vpop.permute.xlu1 %1968  ;;  %v1913_v53 = vpop.permute.xlu0 %1912 }
 0x504   :  { %v1992_v54 = vadd.f32 %v1969_v52, %v1953_v50  ;;  %v1936_v56 = vadd.f32 %v1913_v53, %v1897_v51 }
 0x505   :  { %2092 = vrot.lane.b32.xlu1 %v4545_v13, %s3885_s0  ;;  %2036 = vrot.lane.b32.xlu0 %v4545_v13, %s3878_s15 }
 0x506   :  { %2000 = vst [vmem:[#allocation4 + $0x105] ss:$4 sm:$0xff] %v1992_v54  ;;  %1944 = vst [vmem:[#allocation4 + $0x104] ss:$4 sm:$0xff] %v1936_v56  ;;  %v2013_v56 = vld [vmem:[#allocation4 + $0x146] ss:$4 sm:$0xff] }
 0x507   :  { %v2081_v57 = vpop.permute.xlu1 %2080  ;;  %v2025_v0 = vpop.permute.xlu0 %2024 }
 0x508   :  { %v2104_v1 = vadd.f32 %v2081_v57, %v2065_v59  ;;  %v2048_v2 = vadd.f32 %v2025_v0, %v2009_v63 }
 0x509   :  { %1982 = vrot.lane.b32.xlu1 %v4540_v5, %s3884_s8  ;;  %1926 = vrot.lane.b32.xlu0 %v4540_v5, %s3880_s5 }
 0x50a   :  { %2112 = vst [vmem:[#allocation4 + $0x107] ss:$4 sm:$0xff] %v2104_v1  ;;  %2056 = vst [vmem:[#allocation4 + $0x106] ss:$4 sm:$0xff] %v2048_v2  ;;  %v4709_v1 = vld [vmem:[#allocation4 + $0x9] sm:$0xff] }
 0x50b   :  { %v1863_v11 = vpop.permute.xlu1 %1862  ;;  %v1412_v13 = vpop.permute.xlu0 %1411 }
 0x50c   :  { %v1883_v14 = vadd.f32 %v1863_v11, %v1839_v4  ;;  %v1432_v16 = vadd.f32 %v1412_v13, %v1388_v9  ;;  %v1843_v9 = vld [vmem:[#allocation4 + $0x1a3] ss:$4 sm:$0xff] }
 0x50d   :  { %2094 = vrot.lane.b32.xlu1 %v4540_v5, %s3885_s0  ;;  %2038 = vrot.lane.b32.xlu0 %v4540_v5, %s3878_s15 }
 0x50e   :  { %1891 = vst [vmem:[#allocation4 + $0x163] ss:$4 sm:$0xff] %v1883_v14  ;;  %1440 = vst [vmem:[#allocation4 + $0x61] ss:$4 sm:$0xff] %v1432_v16  ;;  %v1392_v14 = vld [vmem:[#allocation4 + $0xa1] ss:$4 sm:$0xff] }
 0x50f   :  { %v1524_v19 = vpop.permute.xlu1 %1523  ;;  %v1468_v62 = vpop.permute.xlu0 %1467 }
 0x510   :  { %v1544_v61 = vadd.f32 %v1524_v19, %v1508_v17  ;;  %v1488_v8 = vadd.f32 %v1468_v62, %v1452_v18  ;;  %v2185_v17 = vsel %vm1152_vm8, %v4709_v1, 0.0 }
 0x511   :  { %v4703_v57 = vld [vmem:[#allocation4 + $0x103] sm:$0xff]  ;;  %v4705_v59 = vld [vmem:[#allocation4 + $0x10b] sm:$0xff] }
 0x512   :  { %1552 = vst [vmem:[#allocation4 + $0x63] ss:$4 sm:$0xff] %v1544_v61  ;;  %1496 = vst [vmem:[#allocation4 + $0x62] ss:$4 sm:$0xff] %v1488_v8  ;;  %v2254_v11 = vsel %vm1152_vm8, %v4703_v57, 0.0  ;;  %v2255_v13 = vsel %vm1152_vm8, %v4705_v59, 0.0 }
 0x513   :  { %v4697_v10 = vpop.permute.xlu1 %1635  ;;  %v1580_v20 = vpop.permute.xlu0 %1579  ;;  %v4719_v61 = vld [vmem:[#allocation4 + $0x113] sm:$0xff]  ;;  %v2256_v8 = vadd.f32 %v2255_v13, %v2254_v11 }
 0x514   :  { %v1600_v55 = vadd.f32 %v1580_v20, %v1564_v25  ;;  %v1512_v25 = vld [vmem:[#allocation4 + $0xa3] ss:$4 sm:$0xff]  ;;  %v1390_v13 = vld [vmem:[#allocation4 + $0x81] ss:$4 sm:$0xff] }
 0x515   :  { %v1841_v11 = vld [vmem:[#allocation4 + $0x183] ss:$4 sm:$0xff] }
 0x516   :  { %1608 = vst [vmem:[#allocation4 + $0x64] ss:$4 sm:$0xff] %v1600_v55  ;;  %v1456_v55 = vld [vmem:[#allocation4 + $0xa2] ss:$4 sm:$0xff] }
 0x517   :  { %v1975_v15 = vpop.permute.xlu1 %1974  ;;  %v1919_v5 = vpop.permute.xlu0 %1918 }
 0x518   :  { %v1995_v21 = vadd.f32 %v1975_v15, %v1959_v26  ;;  %v1939_v28 = vadd.f32 %v1919_v5, %v1903_v27  ;;  %v4721_v26 = vld [vmem:[#allocation4 + $0x11] sm:$0xff] }
 0x51a   :  { %2003 = vst [vmem:[#allocation4 + $0x165] ss:$4 sm:$0xff] %v1995_v21  ;;  %1947 = vst [vmem:[#allocation4 + $0x164] ss:$4 sm:$0xff] %v1939_v28  ;;  %v2257_v21 = vsel %vm1152_vm8, %v4719_v61, 0.0 }
 0x51b   :  { %v4699_v30 = vpop.permute.xlu1 %2086  ;;  %v2031_v33 = vpop.permute.xlu0 %2030 }
 0x51c   :  { %v2051_v32 = vadd.f32 %v2031_v33, %v2015_v31  ;;  %v2187_v33 = vsel %vm1152_vm8, %v4721_v26, 0.0 }
 0x51e   :  { %2059 = vst [vmem:[#allocation4 + $0x166] ss:$4 sm:$0xff] %v2051_v32  ;;  %v4727_v32 = vld [vmem:[#allocation4 + $0x11b] sm:$0xff] }
 0x51f   :  { %v1861_v48 = vpop.permute.xlu1 %1860  ;;  %v1410_v24 = vpop.permute.xlu0 %1409 }
 0x520   :  { %v1882_v49 = vadd.f32 %v1861_v48, %v1837_v22  ;;  %v1431_v3 = vadd.f32 %v1410_v24, %v1386_v23  ;;  %v2258_v22 = vadd.f32 %v2257_v21, %v2256_v8  ;;  %v4731_v48 = vld [vmem:[#allocation4 + $0x19] sm:$0xff] }
 0x522   :  { %1890 = vst [vmem:[#allocation4 + $0x143] ss:$4 sm:$0xff] %v1882_v49  ;;  %1439 = vst [vmem:[#allocation4 + $0x41] ss:$4 sm:$0xff] %v1431_v3 }
 0x523   :  { %v1522_v60 = vpop.permute.xlu1 %1521  ;;  %v1466_v34 = vpop.permute.xlu0 %1465 }
 0x524   :  { %v1543_v6 = vadd.f32 %v1522_v60, %v1506_v29  ;;  %v1487_v37 = vadd.f32 %v1466_v34, %v1450_v35  ;;  %v1568_v35 = vld [vmem:[#allocation4 + $0xa4] ss:$4 sm:$0xff]  ;;  %v2259_v60 = vsel %vm1152_vm8, %v4727_v32, 0.0 }
 0x526   :  { %1551 = vst [vmem:[#allocation4 + $0x43] ss:$4 sm:$0xff] %v1543_v6  ;;  %1495 = vst [vmem:[#allocation4 + $0x42] ss:$4 sm:$0xff] %v1487_v37  ;;  %v2189_v37 = vsel %vm1152_vm8, %v4731_v48, 0.0 }
 0x527   :  { %v1634_v41 = vpop.permute.xlu1 %1633  ;;  %v1578_v7 = vpop.permute.xlu0 %1577 }
 0x528   :  { %v1599_v45 = vadd.f32 %v1578_v7, %v1562_v38  ;;  %v1963_v7 = vld [vmem:[#allocation4 + $0x1a5] ss:$4 sm:$0xff]  ;;  %v1907_v38 = vld [vmem:[#allocation4 + $0x1a4] ss:$4 sm:$0xff] }
 0x529   :  { %v2067_v40 = vld [vmem:[#allocation4 + $0x127] ss:$4 sm:$0xff]  ;;  %v1616_v42 = vld [vmem:[#allocation4 + $0x25] ss:$4 sm:$0xff] }
 0x52a   :  { %v1618_v43 = vld [vmem:[#allocation4 + $0x45] ss:$4 sm:$0xff]  ;;  %v2105_v44 = vadd.f32 %v4671_v36, %v2067_v40  ;;  %v1654_v46 = vadd.f32 %v4661_v47, %v1616_v42  ;;  %1607 = vst [vmem:[#allocation4 + $0x44] ss:$4 sm:$0xff] %v1599_v45  ;;  %v2069_v63 = vld [vmem:[#allocation4 + $0x147] ss:$4 sm:$0xff] }
 0x52b   :  { %v1655_v50 = vadd.f32 %v1634_v41, %v1618_v43  ;;  %v1973_v51 = vpop.permute.xlu1 %1972  ;;  %v1917_v52 = vpop.permute.xlu0 %1916  ;;  %v4707_v47 = vld [vmem:[#allocation4 + $0x1] sm:$0xff]  ;;  %v2260_v41 = vadd.f32 %v2259_v60, %v2258_v22 }
 0x52c   :  { %2113 = vst [vmem:[#allocation4 + $0x127] ss:$4 sm:$0xff] %v2105_v44  ;;  %1662 = vst [vmem:[#allocation4 + $0x25] ss:$4 sm:$0xff] %v1654_v46  ;;  %v1994_v53 = vadd.f32 %v1973_v51, %v1957_v12  ;;  %v1938_v54 = vadd.f32 %v1917_v52, %v1901_v39  ;;  %v2184_v16 = vsel %vm1152_vm8, %v4707_v47, 0.0 }
 0x52d   :  { %1663 = vst [vmem:[#allocation4 + $0x45] ss:$4 sm:$0xff] %v1655_v50  ;;  %v2186_v27 = vadd.f32 %v2185_v17, %v2184_v16 }
 0x52e   :  { %2002 = vst [vmem:[#allocation4 + $0x145] ss:$4 sm:$0xff] %v1994_v53  ;;  %1946 = vst [vmem:[#allocation4 + $0x144] ss:$4 sm:$0xff] %v1938_v54 }
 0x52f   :  { %v2085_v36 = vpop.permute.xlu1 %2084  ;;  %v2029_v0 = vpop.permute.xlu0 %2028  ;;  %v2188_v24 = vadd.f32 %v2187_v33, %v2186_v27  ;;  %v1510_v27 = vld [vmem:[#allocation4 + $0x83] ss:$4 sm:$0xff] }
 0x530   :  { %v2106_v2 = vadd.f32 %v2085_v36, %v2069_v63  ;;  %v2050_v4 = vadd.f32 %v2029_v0, %v2013_v56  ;;  %v2019_v63 = vld [vmem:[#allocation4 + $0x1a6] ss:$4 sm:$0xff] }
 0x531   :  { %v2190_v12 = vadd.f32 %v2189_v37, %v2188_v24 }
 0x532   :  { %2114 = vst [vmem:[#allocation4 + $0x147] ss:$4 sm:$0xff] %v2106_v2  ;;  %2058 = vst [vmem:[#allocation4 + $0x146] ss:$4 sm:$0xff] %v2050_v4 }
 0x533   :  { %v1867_v18 = vpop.permute.xlu1 %1866  ;;  %v1416_v19 = vpop.permute.xlu0 %1415  ;;  %v4729_v23 = vld [vmem:[#allocation4 + $0x123] sm:$0xff]  ;;  %v4745_v39 = vld [vmem:[#allocation4 + $0x12b] sm:$0xff]  ;;  %v4751_v53 = vld [vmem:[#allocation4 + $0x133] sm:$0xff] }
 0x534   :  { %v1885_v62 = vadd.f32 %v1867_v18, %v1843_v9  ;;  %v1434_v20 = vadd.f32 %v1416_v19, %v1392_v14  ;;  %v4733_v49 = vld [vmem:[#allocation4 + $0x21] sm:$0xff]  ;;  %v2261_v34 = vsel %vm1152_vm8, %v4729_v23, 0.0  ;;  %v4747_v44 = vld [vmem:[#allocation4 + $0x29] sm:$0xff]  ;;  %v2263_v52 = vsel %vm1152_vm8, %v4745_v39, 0.0  ;;  %v4757_v4 = vld [vmem:[#allocation4 + $0x31] sm:$0xff] }
 0x535   :  { %v2191_v45 = vsel %vm1152_vm8, %v4733_v49, 0.0  ;;  %v2262_v40 = vadd.f32 %v2261_v34, %v2260_v41  ;;  %v2193_v0 = vsel %vm1152_vm8, %v4747_v44, 0.0  ;;  %v2265_v14 = vsel %vm1152_vm8, %v4751_v53, 0.0  ;;  %v4761_v16 = vld [vmem:[#allocation4 + $0x13b] sm:$0xff] }
 0x536   :  { %1893 = vst [vmem:[#allocation4 + $0x1a3] ss:$4 sm:$0xff] %v1885_v62  ;;  %1442 = vst [vmem:[#allocation4 + $0xa1] ss:$4 sm:$0xff] %v1434_v20  ;;  %v2192_v51 = vadd.f32 %v2191_v45, %v2190_v12  ;;  %v2195_v62 = vsel %vm1152_vm8, %v4757_v4, 0.0 }
 0x537   :  { %v1528_v15 = vpop.permute.xlu1 %1527  ;;  %v1472_v5 = vpop.permute.xlu0 %1471  ;;  %v2264_v54 = vadd.f32 %v2263_v52, %v2262_v40  ;;  %v1961_v40 = vld [vmem:[#allocation4 + $0x185] ss:$4 sm:$0xff] }
 0x538   :  { %v1546_v28 = vadd.f32 %v1528_v15, %v1512_v25  ;;  %v1490_v31 = vadd.f32 %v1472_v5, %v1456_v55  ;;  %v2194_v9 = vadd.f32 %v2193_v0, %v2192_v51  ;;  %v4765_v25 = vld [vmem:[#allocation4 + $0x39] sm:$0xff]  ;;  %v2267_v5 = vsel %vm1152_vm8, %v4761_v16, 0.0 }
 0x539   :  { %v2266_v17 = vadd.f32 %v2265_v14, %v2264_v54  ;;  %v1454_v15 = vld [vmem:[#allocation4 + $0x82] ss:$4 sm:$0xff]  ;;  %v2197_v22 = vsel %vm1152_vm8, %v4765_v25, 0.0 }
 0x53a   :  { %1554 = vst [vmem:[#allocation4 + $0xa3] ss:$4 sm:$0xff] %v1546_v28  ;;  %1498 = vst [vmem:[#allocation4 + $0xa2] ss:$4 sm:$0xff] %v1490_v31  ;;  %v2196_v55 = vadd.f32 %v2195_v62, %v2194_v9  ;;  %v4769_v28 = vld [vmem:[#allocation4 + $0x143] sm:$0xff]  ;;  %v4795_v62 = vld [vmem:[#allocation4 + $0x15b] sm:$0xff] }
 0x53b   :  { %v4735_v3 = vpop.permute.xlu1 %1639  ;;  %v1584_v29 = vpop.permute.xlu0 %1583  ;;  %v2268_v21 = vadd.f32 %v2267_v5, %v2266_v17  ;;  %v2269_v34 = vsel %vm1152_vm8, %v4769_v28, 0.0 }
 0x53c   :  { %v1602_v6 = vadd.f32 %v1584_v29, %v1568_v35  ;;  %v4773_v35 = vld [vmem:[#allocation4 + $0x41] sm:$0xff]  ;;  %v2198_v60 = vadd.f32 %v2197_v22, %v2196_v55 }
 0x53d   :  { %v2270_v37 = vadd.f32 %v2269_v34, %v2268_v21  ;;  %v2199_v45 = vsel %vm1152_vm8, %v4773_v35, 0.0 }
 0x53e   :  { %1610 = vst [vmem:[#allocation4 + $0xa4] ss:$4 sm:$0xff] %v1602_v6  ;;  %v4777_v6 = vld [vmem:[#allocation4 + $0x14b] sm:$0xff] }
 0x53f   :  { %v1979_v42 = vpop.permute.xlu1 %1978  ;;  %v1923_v43 = vpop.permute.xlu0 %1922  ;;  %v2271_v54 = vsel %vm1152_vm8, %v4777_v6, 0.0 }
 0x540   :  { %v1997_v46 = vadd.f32 %v1979_v42, %v1963_v7  ;;  %v1941_v50 = vadd.f32 %v1923_v43, %v1907_v38  ;;  %v1566_v38 = vld [vmem:[#allocation4 + $0x84] ss:$4 sm:$0xff]  ;;  %v2272_v9 = vadd.f32 %v2271_v54, %v2270_v37  ;;  %v1516_v54 = vld [vmem:[#allocation4 + $0xe3] ss:$4 sm:$0xff] }
 0x541   :  { %v1905_v42 = vld [vmem:[#allocation4 + $0x184] ss:$4 sm:$0xff] }
 0x542   :  { %2005 = vst [vmem:[#allocation4 + $0x1a5] ss:$4 sm:$0xff] %v1997_v46  ;;  %1949 = vst [vmem:[#allocation4 + $0x1a4] ss:$4 sm:$0xff] %v1941_v50  ;;  %v4781_v43 = vld [vmem:[#allocation4 + $0x49] sm:$0xff]  ;;  %v2200_v46 = vadd.f32 %v2199_v45, %v2198_v60 }
 0x543   :  { %v4753_v56 = vpop.permute.xlu1 %2090  ;;  %v2035_v36 = vpop.permute.xlu0 %2034  ;;  %v2201_v14 = vsel %vm1152_vm8, %v4781_v43, 0.0  ;;  %v1396_v60 = vld [vmem:[#allocation4 + $0xe1] ss:$4 sm:$0xff] }
 0x544   :  { %v2053_v2 = vadd.f32 %v2035_v36, %v2019_v63 }
 0x546   :  { %2061 = vst [vmem:[#allocation4 + $0x1a6] ss:$4 sm:$0xff] %v2053_v2  ;;  %v4787_v2 = vld [vmem:[#allocation4 + $0x153] sm:$0xff] }
 0x547   :  { %v1865_v18 = vpop.permute.xlu1 %1864  ;;  %v1414_v19 = vpop.permute.xlu0 %1413 }
 0x548   :  { %v1884_v8 = vadd.f32 %v1865_v18, %v1841_v11  ;;  %v1433_v20 = vadd.f32 %v1414_v19, %v1390_v13  ;;  %v4791_v19 = vld [vmem:[#allocation4 + $0x51] sm:$0xff] }
 0x549   :  { %v2203_v5 = vsel %vm1152_vm8, %v4791_v19, 0.0 }
 0x54a   :  { %1892 = vst [vmem:[#allocation4 + $0x183] ss:$4 sm:$0xff] %v1884_v8  ;;  %1441 = vst [vmem:[#allocation4 + $0x81] ss:$4 sm:$0xff] %v1433_v20 }
 0x54b   :  { %v1526_v31 = vpop.permute.xlu1 %1525  ;;  %v1470_v33 = vpop.permute.xlu0 %1469 }
 0x54c   :  { %v1545_v24 = vadd.f32 %v1526_v31, %v1510_v27  ;;  %v1489_v29 = vadd.f32 %v1470_v33, %v1454_v15  ;;  %v2017_v27 = vld [vmem:[#allocation4 + $0x186] ss:$4 sm:$0xff] }
 0x54d   :  { %v4799_v33 = vld [vmem:[#allocation4 + $0x59] sm:$0xff] }
 0x54e   :  { %1553 = vst [vmem:[#allocation4 + $0x83] ss:$4 sm:$0xff] %v1545_v24  ;;  %1497 = vst [vmem:[#allocation4 + $0x82] ss:$4 sm:$0xff] %v1489_v29  ;;  %v1847_v24 = vld [vmem:[#allocation4 + $0x1e3] ss:$4 sm:$0xff] }
 0x54f   :  { %v1638_v41 = vpop.permute.xlu1 %1637  ;;  %v1582_v7 = vpop.permute.xlu0 %1581  ;;  %v2275_v29 = vsel %vm1152_vm8, %v4795_v62, 0.0  ;;  %v2205_v45 = vsel %vm1152_vm8, %v4799_v33, 0.0 }
 0x550   :  { %v1601_v12 = vadd.f32 %v1582_v7, %v1566_v38 }
 0x551   :  { %v2071_v50 = vld [vmem:[#allocation4 + $0x167] ss:$4 sm:$0xff]  ;;  %v1620_v51 = vld [vmem:[#allocation4 + $0x65] ss:$4 sm:$0xff] }
 0x552   :  { %v1622_v52 = vld [vmem:[#allocation4 + $0x85] ss:$4 sm:$0xff]  ;;  %v2107_v63 = vadd.f32 %v4699_v30, %v2071_v50  ;;  %v1656_v36 = vadd.f32 %v4697_v10, %v1620_v51  ;;  %1609 = vst [vmem:[#allocation4 + $0x84] ss:$4 sm:$0xff] %v1601_v12  ;;  %v2202_v30 = vadd.f32 %v2201_v14, %v2200_v46  ;;  %v2273_v10 = vsel %vm1152_vm8, %v4787_v2, 0.0 }
 0x553   :  { %v1657_v0 = vadd.f32 %v1638_v41, %v1622_v52  ;;  %v1977_v11 = vpop.permute.xlu1 %1976  ;;  %v1921_v13 = vpop.permute.xlu0 %1920  ;;  %v2274_v8 = vadd.f32 %v2273_v10, %v2272_v9  ;;  %v2073_v20 = vld [vmem:[#allocation4 + $0x187] ss:$4 sm:$0xff] }
 0x554   :  { %2115 = vst [vmem:[#allocation4 + $0x167] ss:$4 sm:$0xff] %v2107_v63  ;;  %1664 = vst [vmem:[#allocation4 + $0x65] ss:$4 sm:$0xff] %v1656_v36  ;;  %v1996_v17 = vadd.f32 %v1977_v11, %v1961_v40  ;;  %v1940_v18 = vadd.f32 %v1921_v13, %v1905_v42  ;;  %v2204_v22 = vadd.f32 %v2203_v5, %v2202_v30  ;;  %v1460_v63 = vld [vmem:[#allocation4 + $0xe2] ss:$4 sm:$0xff] }
 0x555   :  { %1665 = vst [vmem:[#allocation4 + $0x85] ss:$4 sm:$0xff] %v1657_v0  ;;  %v2276_v34 = vadd.f32 %v2275_v29, %v2274_v8 }
 0x556   :  { %2004 = vst [vmem:[#allocation4 + $0x185] ss:$4 sm:$0xff] %v1996_v17  ;;  %1948 = vst [vmem:[#allocation4 + $0x184] ss:$4 sm:$0xff] %v1940_v18  ;;  %v2206_v50 = vadd.f32 %v2205_v45, %v2204_v22 }
 0x557   :  { %v2089_v55 = vpop.permute.xlu1 %2088  ;;  %v2033_v15 = vpop.permute.xlu0 %2032 }
 0x558   :  { %v2108_v21 = vadd.f32 %v2089_v55, %v2073_v20  ;;  %v2052_v31 = vadd.f32 %v2033_v15, %v2017_v27  ;;  %v1845_v55 = vld [vmem:[#allocation4 + $0x1c3] ss:$4 sm:$0xff]  ;;  %v1394_v27 = vld [vmem:[#allocation4 + $0xc1] ss:$4 sm:$0xff] }
 0x55a   :  { %2116 = vst [vmem:[#allocation4 + $0x187] ss:$4 sm:$0xff] %v2108_v21  ;;  %2060 = vst [vmem:[#allocation4 + $0x186] ss:$4 sm:$0xff] %v2052_v31 }
 0x55b   :  { %v4803_v37 = vld [vmem:[#allocation4 + $0x163] sm:$0xff]  ;;  %v4805_v41 = vld [vmem:[#allocation4 + $0x16b] sm:$0xff]  ;;  %v1871_v7 = vpop.permute.xlu1 %1870  ;;  %v1420_v38 = vpop.permute.xlu0 %1419  ;;  %v4819_v11 = vld [vmem:[#allocation4 + $0x173] sm:$0xff] }
 0x55c   :  { %v2277_v12 = vsel %vm1152_vm8, %v4803_v37, 0.0  ;;  %v1887_v40 = vadd.f32 %v1871_v7, %v1847_v24  ;;  %v4811_v42 = vld [vmem:[#allocation4 + $0x61] sm:$0xff]  ;;  %v4813_v46 = vld [vmem:[#allocation4 + $0x69] sm:$0xff]  ;;  %v1436_v52 = vadd.f32 %v1420_v38, %v1396_v60  ;;  %v2279_v0 = vsel %vm1152_vm8, %v4805_v41, 0.0  ;;  %v4823_v8 = vld [vmem:[#allocation4 + $0x71] sm:$0xff] }
 0x55d   :  { %v2278_v51 = vadd.f32 %v2277_v12, %v2276_v34  ;;  %v2207_v36 = vsel %vm1152_vm8, %v4811_v42, 0.0  ;;  %v2209_v18 = vsel %vm1152_vm8, %v4813_v46, 0.0  ;;  %5497 = vst [vmem:[#allocation6_spill] sm:$0xff] %v4823_v8  ;;  %v2281_v15 = vsel %vm1152_vm8, %v4819_v11, 0.0  ;;  %v4827_v5 = vld [vmem:[#allocation4 + $0x17b] sm:$0xff] }
 0x55e   :  { %1895 = vst [vmem:[#allocation4 + $0x1e3] ss:$4 sm:$0xff] %v1887_v40  ;;  %v2208_v9 = vadd.f32 %v2207_v36, %v2206_v50  ;;  %1444 = vst [vmem:[#allocation4 + $0xe1] ss:$4 sm:$0xff] %v1436_v52  ;;  %v2211_v24 = vsel %vm1152_vm8, %v4823_v8, 0.0  ;;  %v4831_v34 = vld [vmem:[#allocation4 + $0x79] sm:$0xff] }
 0x55f   :  { %v2280_v13 = vadd.f32 %v2279_v0, %v2278_v51  ;;  %v1532_v14 = vpop.permute.xlu1 %1531  ;;  %v1476_v17 = vpop.permute.xlu0 %1475  ;;  %5498 = vst [vmem:[#allocation7_spill] sm:$0xff] %v4831_v34  ;;  %v2283_v38 = vsel %vm1152_vm8, %v4827_v5, 0.0  ;;  %v1572_v51 = vld [vmem:[#allocation4 + $0xe4] ss:$4 sm:$0xff] }
 0x560   :  { %v1548_v30 = vadd.f32 %v1532_v14, %v1516_v54  ;;  %v1492_v10 = vadd.f32 %v1476_v17, %v1460_v63  ;;  %v2210_v20 = vadd.f32 %v2209_v18, %v2208_v9  ;;  %v2213_v54 = vsel %vm1152_vm8, %v4831_v34, 0.0  ;;  %v4839_v0 = vld [vmem:[#allocation4 + $0x81] sm:$0xff] }
 0x561   :  { %v2282_v21 = vadd.f32 %v2281_v15, %v2280_v13  ;;  %v4835_v12 = vld [vmem:[#allocation4 + $0x183] sm:$0xff]  ;;  %5499 = vst [vmem:[#allocation8_spill] sm:$0xff] %v4839_v0  ;;  %v4843_v18 = vld [vmem:[#allocation4 + $0x18b] sm:$0xff] }
 0x562   :  { %1556 = vst [vmem:[#allocation4 + $0xe3] ss:$4 sm:$0xff] %v1548_v30  ;;  %1500 = vst [vmem:[#allocation4 + $0xe2] ss:$4 sm:$0xff] %v1492_v10  ;;  %v2212_v7 = vadd.f32 %v2211_v24, %v2210_v20  ;;  %v1514_v13 = vld [vmem:[#allocation4 + $0xc3] ss:$4 sm:$0xff] }
 0x563   :  { %v1869_v31 = vpop.permute.xlu1 %1868  ;;  %v1418_v22 = vpop.permute.xlu0 %1417  ;;  %v2284_v45 = vadd.f32 %v2283_v38, %v2282_v21  ;;  %v1458_v14 = vld [vmem:[#allocation4 + $0xc2] ss:$4 sm:$0xff]  ;;  %v2285_v17 = vsel %vm1152_vm8, %v4835_v12, 0.0 }
 0x564   :  { %v1886_v29 = vadd.f32 %v1869_v31, %v1845_v55  ;;  %v1435_v60 = vadd.f32 %v1418_v22, %v1394_v27  ;;  %v2214_v9 = vadd.f32 %v2213_v54, %v2212_v7  ;;  %v2215_v55 = vsel %vm1152_vm8, %v4839_v0, 0.0  ;;  %v4847_v21 = vld [vmem:[#allocation4 + $0x89] sm:$0xff]  ;;  %v4853_v38 = vld [vmem:[#allocation4 + $0x193] sm:$0xff] }
 0x565   :  { %v1628_v50 = vld [vmem:[#allocation4 + $0xe5] ss:$4 sm:$0xff]  ;;  %v2286_v30 = vadd.f32 %v2285_v17, %v2284_v45  ;;  %5500 = vst [vmem:[#allocation9_spill] sm:$0xff] %v4847_v21  ;;  %v2217_v54 = vsel %vm1152_vm8, %v4847_v21, 0.0 }
 0x566   :  { %1894 = vst [vmem:[#allocation4 + $0x1c3] ss:$4 sm:$0xff] %v1886_v29  ;;  %1443 = vst [vmem:[#allocation4 + $0xc1] ss:$4 sm:$0xff] %v1435_v60  ;;  %v2216_v31 = vadd.f32 %v2215_v55, %v2214_v9  ;;  %v2287_v29 = vsel %vm1152_vm8, %v4843_v18, 0.0  ;;  %v4857_v9 = vld [vmem:[#allocation4 + $0x91] sm:$0xff] }
 0x567   :  { %v1644_v40 = vpop.permute.xlu1 %1643  ;;  %v1588_v52 = vpop.permute.xlu0 %1587  ;;  %v2288_v45 = vadd.f32 %v2287_v29, %v2286_v30  ;;  %5501 = vst [vmem:[#allocation10_spill] sm:$0xff] %v4857_v9  ;;  %v4861_v17 = vld [vmem:[#allocation4 + $0x19b] sm:$0xff]  ;;  %v2219_v55 = vsel %vm1152_vm8, %v4857_v9, 0.0 }
 0x568   :  { %v1660_v63 = vadd.f32 %v1644_v40, %v1628_v50  ;;  %v1604_v36 = vadd.f32 %v1588_v52, %v1572_v51  ;;  %v1570_v52 = vld [vmem:[#allocation4 + $0xc4] ss:$4 sm:$0xff] }
 0x56a   :  { %1668 = vst [vmem:[#allocation4 + $0xe5] ss:$4 sm:$0xff] %v1660_v63  ;;  %1612 = vst [vmem:[#allocation4 + $0xe4] ss:$4 sm:$0xff] %v1604_v36 }
 0x56b   :  { %v1530_v10 = vpop.permute.xlu1 %1529  ;;  %v1474_v20 = vpop.permute.xlu0 %1473 }
 0x56c   :  { %v1547_v27 = vadd.f32 %v1530_v10, %v1514_v13  ;;  %v1491_v15 = vadd.f32 %v1474_v20, %v1458_v14  ;;  %v1909_v13 = vld [vmem:[#allocation4 + $0x1c4] ss:$4 sm:$0xff]  ;;  %v2289_v14 = vsel %vm1152_vm8, %v4853_v38, 0.0 }
 0x56d   :  { %v2075_v22 = vld [vmem:[#allocation4 + $0x1a7] ss:$4 sm:$0xff]  ;;  %v1624_v24 = vld [vmem:[#allocation4 + $0xa5] ss:$4 sm:$0xff]  ;;  %v2290_v30 = vadd.f32 %v2289_v14, %v2288_v45 }
 0x56e   :  { %v2109_v60 = vadd.f32 %v4753_v56, %v2075_v22  ;;  %v1658_v7 = vadd.f32 %v4735_v3, %v1624_v24  ;;  %1555 = vst [vmem:[#allocation4 + $0xc3] ss:$4 sm:$0xff] %v1547_v27  ;;  %1499 = vst [vmem:[#allocation4 + $0xc2] ss:$4 sm:$0xff] %v1491_v15  ;;  %v1626_v50 = vld [vmem:[#allocation4 + $0xc5] ss:$4 sm:$0xff]  ;;  %v2218_v56 = vadd.f32 %v2217_v54, %v2216_v31 }
 0x56f   :  { %v1642_v40 = vpop.permute.xlu1 %1641  ;;  %v1586_v51 = vpop.permute.xlu0 %1585  ;;  %v1965_v3 = vld [vmem:[#allocation4 + $0x1c5] ss:$4 sm:$0xff]  ;;  %v2291_v24 = vsel %vm1152_vm8, %v4861_v17, 0.0  ;;  %v2077_v45 = vld [vmem:[#allocation4 + $0x1c7] ss:$4 sm:$0xff] }
 0x570   :  { %2117 = vst [vmem:[#allocation4 + $0x1a7] ss:$4 sm:$0xff] %v2109_v60  ;;  %1666 = vst [vmem:[#allocation4 + $0xa5] ss:$4 sm:$0xff] %v1658_v7  ;;  %v1659_v63 = vadd.f32 %v1642_v40, %v1626_v50  ;;  %v1603_v36 = vadd.f32 %v1586_v51, %v1570_v52  ;;  %v4865_v22 = vld [vmem:[#allocation4 + $0x99] sm:$0xff]  ;;  %v2220_v31 = vadd.f32 %v2219_v55, %v2218_v56 }
 0x571   :  { %5502 = vst [vmem:[#allocation11_spill] sm:$0xff] %v4865_v22  ;;  %v2292_v29 = vadd.f32 %v2291_v24, %v2290_v30  ;;  %v2221_v51 = vsel %vm1152_vm8, %v4865_v22, 0.0  ;;  %v1967_v30 = vld [vmem:[#allocation4 + $0x1e5] ss:$4 sm:$0xff] }
 0x572   :  { %1667 = vst [vmem:[#allocation4 + $0xc5] ss:$4 sm:$0xff] %v1659_v63  ;;  %1611 = vst [vmem:[#allocation4 + $0xc4] ss:$4 sm:$0xff] %v1603_v36  ;;  %v2021_v63 = vld [vmem:[#allocation4 + $0x1c6] ss:$4 sm:$0xff]  ;;  %v2222_v36 = vadd.f32 %v2221_v51, %v2220_v31 }
 0x573   :  { %v1981_v10 = vpop.permute.xlu1 %1980  ;;  %v1925_v20 = vpop.permute.xlu0 %1924 }
 0x574   :  { %v1998_v27 = vadd.f32 %v1981_v10, %v1965_v3  ;;  %v1942_v15 = vadd.f32 %v1925_v20, %v1909_v13  ;;  %v1911_v10 = vld [vmem:[#allocation4 + $0x1e4] ss:$4 sm:$0xff] }
 0x576   :  { %2006 = vst [vmem:[#allocation4 + $0x1c5] ss:$4 sm:$0xff] %v1998_v27  ;;  %1950 = vst [vmem:[#allocation4 + $0x1c4] ss:$4 sm:$0xff] %v1942_v15 }
 0x577   :  { %v4869_v60 = vld [vmem:[#allocation4 + $0x1a3] sm:$0xff]  ;;  %v4871_v7 = vld [vmem:[#allocation4 + $0x1ab] sm:$0xff]  ;;  %v2093_v40 = vpop.permute.xlu1 %2092  ;;  %v2037_v50 = vpop.permute.xlu0 %2036  ;;  %v4883_v55 = vld [vmem:[#allocation4 + $0x1b3] sm:$0xff] }
 0x578   :  { %v2293_v52 = vsel %vm1152_vm8, %v4869_v60, 0.0  ;;  %v2110_v54 = vadd.f32 %v2093_v40, %v2077_v45  ;;  %v4877_v56 = vld [vmem:[#allocation4 + $0xa1] sm:$0xff]  ;;  %v4879_v3 = vld [vmem:[#allocation4 + $0xa9] sm:$0xff]  ;;  %v2054_v14 = vadd.f32 %v2037_v50, %v2021_v63  ;;  %v2295_v27 = vsel %vm1152_vm8, %v4871_v7, 0.0  ;;  %v4887_v15 = vld [vmem:[#allocation4 + $0xb1] sm:$0xff] }
 0x579   :  { %5503 = vst [vmem:[#allocation12_spill] sm:$0xff] %v4877_v56  ;;  %5504 = vst [vmem:[#allocation13_spill] sm:$0xff] %v4879_v3  ;;  %v2294_v13 = vadd.f32 %v2293_v52, %v2292_v29  ;;  %v2223_v20 = vsel %vm1152_vm8, %v4877_v56, 0.0  ;;  %v2225_v29 = vsel %vm1152_vm8, %v4879_v3, 0.0  ;;  %v4891_v52 = vld [vmem:[#allocation4 + $0xb9] sm:$0xff]  ;;  %v2297_v58 = vsel %vm1152_vm8, %v4883_v55, 0.0 }
 0x57a   :  { %2118 = vst [vmem:[#allocation4 + $0x1c7] ss:$4 sm:$0xff] %v2110_v54  ;;  %5505 = vst [vmem:[#allocation14_spill] sm:$0xff] %v4887_v15  ;;  %v2224_v31 = vadd.f32 %v2223_v20, %v2222_v36  ;;  %v2227_v54 = vsel %vm1152_vm8, %v4887_v15, 0.0  ;;  %v4897_v56 = vld [vmem:[#allocation4 + $0x1bb] sm:$0xff] }
 0x57b   :  { %v2296_v24 = vadd.f32 %v2295_v27, %v2294_v13  ;;  %2062 = vst [vmem:[#allocation4 + $0x1c6] ss:$4 sm:$0xff] %v2054_v14  ;;  %v1983_v45 = vpop.permute.xlu1 %1982  ;;  %v1927_v40 = vpop.permute.xlu0 %1926  ;;  %5506 = vst [vmem:[#allocation15_spill] sm:$0xff] %v4891_v52  ;;  %v4899_v13 = vld [vmem:[#allocation4 + $0xc1] sm:$0xff] }
 0x57c   :  { %v1999_v50 = vadd.f32 %v1983_v45, %v1967_v30  ;;  %v1943_v51 = vadd.f32 %v1927_v40, %v1911_v10  ;;  %v2226_v63 = vadd.f32 %v2225_v29, %v2224_v31  ;;  %5507 = vst [vmem:[#allocation16_spill] sm:$0xff] %v4899_v13  ;;  %v2079_v20 = vld [vmem:[#allocation4 + $0x1e7] ss:$4 sm:$0xff]  ;;  %v2023_v10 = vld [vmem:[#allocation4 + $0x1e6] ss:$4 sm:$0xff]  ;;  %v2229_v31 = vsel %vm1152_vm8, %v4891_v52, 0.0 }
 0x57d   :  { %v2298_v36 = vadd.f32 %v2297_v58, %v2296_v24  ;;  %v4903_v29 = vld [vmem:[#allocation4 + $0xc9] sm:$0xff]  ;;  %v2299_v58 = vsel %vm1152_vm8, %v4897_v56, 0.0  ;;  %v2231_v24 = vsel %vm1152_vm8, %v4899_v13, 0.0 }
 0x57e   :  { %2007 = vst [vmem:[#allocation4 + $0x1e5] ss:$4 sm:$0xff] %v1999_v50  ;;  %1951 = vst [vmem:[#allocation4 + $0x1e4] ss:$4 sm:$0xff] %v1943_v51  ;;  %v2228_v14 = vadd.f32 %v2227_v54, %v2226_v63  ;;  %v4913_v54 = vld [vmem:[#allocation4 + $0xd1] sm:$0xff] }
 0x57f   :  { %v2095_v30 = vpop.permute.xlu1 %2094  ;;  %v2039_v27 = vpop.permute.xlu0 %2038  ;;  %5508 = vst [vmem:[#allocation17_spill] sm:$0xff] %v4903_v29  ;;  %v2300_v50 = vadd.f32 %v2299_v58, %v2298_v36  ;;  %5509 = vst [vmem:[#allocation18_spill] sm:$0xff] %v4913_v54 }
 0x580   :  { %v2111_v45 = vadd.f32 %v2095_v30, %v2079_v20  ;;  %v2055_v40 = vadd.f32 %v2039_v27, %v2023_v10  ;;  %v2230_v15 = vadd.f32 %v2229_v31, %v2228_v14  ;;  %v2233_v14 = vsel %vm1152_vm8, %v4903_v29, 0.0  ;;  %v4919_v10 = vld [vmem:[#allocation4 + $0xd9] sm:$0xff] }
 0x581   :  { %5510 = vst [vmem:[#allocation19_spill] sm:$0xff] %v4919_v10  ;;  %v2237_v52 = vsel %vm1152_vm8, %v4919_v10, 0.0 }
 0x582   :  { %v4909_v51 = vld [vmem:[#allocation4 + $0x1c3] sm:$0xff]  ;;  %v4911_v63 = vld [vmem:[#allocation4 + $0x1cb] sm:$0xff]  ;;  %2119 = vst [vmem:[#allocation4 + $0x1e7] ss:$4 sm:$0xff] %v2111_v45  ;;  %2063 = vst [vmem:[#allocation4 + $0x1e6] ss:$4 sm:$0xff] %v2055_v40  ;;  %v2232_v20 = vadd.f32 %v2231_v24, %v2230_v15 }
 0x583   :  { %v2301_v30 = vsel %vm1152_vm8, %v4909_v51, 0.0  ;;  %v4921_v27 = vld [vmem:[#allocation4 + $0x1d3] sm:$0xff]  ;;  %v2303_v58 = vsel %vm1152_vm8, %v4911_v63, 0.0  ;;  %v2235_v45 = vsel %vm1152_vm8, %v4913_v54, 0.0  ;;  %v4927_v40 = vld [vmem:[#allocation4 + $0xe1] sm:$0xff] }
 0x584   :  { %v2302_v36 = vadd.f32 %v2301_v30, %v2300_v50  ;;  %v2234_v31 = vadd.f32 %v2233_v14, %v2232_v20  ;;  %5511 = vst [vmem:[#allocation20_spill] sm:$0xff] %v4927_v40  ;;  %v4929_v15 = vld [vmem:[#allocation4 + $0x1db] sm:$0xff]  ;;  %v2305_v29 = vsel %vm1152_vm8, %v4921_v27, 0.0  ;;  %v4935_v50 = vld [vmem:[#allocation4 + $0xe9] sm:$0xff]  ;;  %v2239_v54 = vsel %vm1152_vm8, %v4927_v40, 0.0 }
 0x585   :  { %5512 = vst [vmem:[#allocation21_spill] sm:$0xff] %v4929_v15  ;;  %5513 = vst [vmem:[#allocation22_spill] sm:$0xff] %v4935_v50  ;;  %v2307_v14 = vsel %vm1152_vm8, %v4929_v15, 0.0 }
 0x586   :  { %v2304_v24 = vadd.f32 %v2303_v58, %v2302_v36  ;;  %v2236_v13 = vadd.f32 %v2235_v45, %v2234_v31  ;;  %v4943_v36 = vld [vmem:[#allocation4 + $0xf1] sm:$0xff] }
 0x587   :  { %5515 = vst [vmem:[#allocation24_spill] sm:$0xff] %v4943_v36  ;;  %v2243_v22 = vsel %vm1152_vm8, %v4943_v36, 0.0 }
 0x588   :  { %v2306_v20 = vadd.f32 %v2305_v29, %v2304_v24  ;;  %v2238_v30 = vadd.f32 %v2237_v52, %v2236_v13  ;;  %v2241_v52 = vsel %vm1152_vm8, %v4935_v50, 0.0  ;;  %v4951_v13 = vld [vmem:[#allocation4 + $0xf9] sm:$0xff] }
 0x589   :  { %v4941_v3 = vld [vmem:[#allocation4 + $0x1e3] sm:$0xff]  ;;  %v4945_v58 = vld [vmem:[#allocation4 + $0x1eb] sm:$0xff]  ;;  %5517 = vst [vmem:[#allocation26_spill] sm:$0xff] %v4951_v13  ;;  %v4953_v29 = vld [vmem:[#allocation4 + $0x1f3] sm:$0xff]  ;;  %v2245_v9 = vsel %vm1152_vm8, %v4951_v13, 0.0 }
 0x58a   :  { %5514 = vst [vmem:[#allocation23_spill] sm:$0xff] %v4941_v3  ;;  %v2308_v31 = vadd.f32 %v2307_v14, %v2306_v20  ;;  %5516 = vst [vmem:[#allocation25_spill] sm:$0xff] %v4945_v58  ;;  %v2240_v45 = vadd.f32 %v2239_v54, %v2238_v30  ;;  %v2309_v10 = vsel %vm1152_vm8, %v4941_v3, 0.0  ;;  %v2311_v20 = vsel %vm1152_vm8, %v4945_v58, 0.0  ;;  %v4959_v14 = vld [vmem:[#allocation4 + $0x1fb] sm:$0xff] }
 0x58b   :  { %5518 = vst [vmem:[#allocation27_spill] sm:$0xff] %v4953_v29  ;;  %v2313_v50 = vsel %vm1152_vm8, %v4953_v29, 0.0 }
 0x58c   :  { %v2242_v24 = vadd.f32 %v2241_v52, %v2240_v45  ;;  %v2310_v40 = vadd.f32 %v2309_v10, %v2308_v31  ;;  %v2315_v10 = vsel %vm1152_vm8, %v4959_v14, 0.0 }
 0x58e   :  { %v2244_v54 = vadd.f32 %v2243_v22, %v2242_v24  ;;  %v2312_v30 = vadd.f32 %v2311_v20, %v2310_v40 }
 0x590   :  { %v2246_v3 = vadd.f32 %v2245_v9, %v2244_v54  ;;  %v2314_v21 = vadd.f32 %v2313_v50, %v2312_v30 }
 0x592   :  { %v2247_v31 = vrot.slane %v2246_v3, 4  ;;  %v2316_v45 = vadd.f32 %v2315_v10, %v2314_v21 }
 0x594   :  { %v2248_v52 = vadd.f32 %v2247_v31, %v2246_v3  ;;  %v2317_v36 = vrot.slane %v2316_v45, 4 }
 0x596   :  { %v2249_v58 = vrot.slane %v2248_v52, 2  ;;  %v2318_v0 = vadd.f32 %v2317_v36, %v2316_v45 }
 0x598   :  { %v2319_v15 = vrot.slane %v2318_v0, 2  ;;  %v2250_v22 = vadd.f32 %v2249_v58, %v2248_v52 }
 0x59a   :  { %v2320_v40 = vadd.f32 %v2319_v15, %v2318_v0  ;;  %v2251_v20 = vrot.slane %v2250_v22, 1 }
 0x59c   :  { %v2321_v24 = vrot.slane %v2320_v40, 1  ;;  %v2252_v34 = vadd.f32 %v2251_v20, %v2250_v22 }
 0x59e   :  { %v2322_v13 = vadd.f32 %v2321_v24, %v2320_v40 }
 0x5a0   :  { %v2323_v8 = vadd.f32 %v2322_v13, %v2252_v34 }
 0x5a2   :  { %v4967_v29 = vmul.f32 0.001953125, %v2323_v8 }
 0x5a4   :  { %v2460_v9 = vsub.f32 %v4703_v57, %v4967_v29  ;;  %v2461_v21 = vsub.f32 %v4705_v59, %v4967_v29  ;;  %v2462_v3 = vsub.f32 %v4719_v61, %v4967_v29  ;;  %v2463_v50 = vsub.f32 %v4727_v32, %v4967_v29 }
 0x5a5   :  { %v2464_v36 = vsub.f32 %v4729_v23, %v4967_v29  ;;  %v2465_v8 = vsub.f32 %v4745_v39, %v4967_v29  ;;  %v2466_v61 = vsub.f32 %v4751_v53, %v4967_v29  ;;  %v2467_v23 = vsub.f32 %v4761_v16, %v4967_v29 }
 0x5a6   :  { %v2492_v0 = vmul.f32 %v2460_v9, %v2460_v9  ;;  %v2493_v15 = vmul.f32 %v2461_v21, %v2461_v21  ;;  %v2494_v34 = vmul.f32 %v2462_v3, %v2462_v3  ;;  %v2495_v58 = vmul.f32 %v2463_v50, %v2463_v50 }
 0x5a7   :  { %v2496_v54 = vmul.f32 %v2464_v36, %v2464_v36  ;;  %v2497_v10 = vmul.f32 %v2465_v8, %v2465_v8  ;;  %v2468_v45 = vsub.f32 %v4769_v28, %v4967_v29  ;;  %v2498_v52 = vmul.f32 %v2466_v61, %v2466_v61 }
 0x5a8   :  { %v2524_v57 = vsel %vm1152_vm8, %v2492_v0, 0.0  ;;  %v2525_v59 = vsel %vm1152_vm8, %v2493_v15, 0.0  ;;  %v2527_v32 = vsel %vm1152_vm8, %v2494_v34, 0.0  ;;  %v2529_v31 = vsel %vm1152_vm8, %v2495_v58, 0.0 }
 0x5a9   :  { %v2526_v13 = vadd.f32 %v2525_v59, %v2524_v57  ;;  %v2531_v22 = vsel %vm1152_vm8, %v2496_v54, 0.0  ;;  %v2469_v53 = vsub.f32 %v4777_v6, %v4967_v29  ;;  %v2499_v24 = vmul.f32 %v2467_v23, %v2467_v23 }
 0x5aa   :  { %v2533_v20 = vsel %vm1152_vm8, %v2497_v10, 0.0  ;;  %v2470_v16 = vsub.f32 %v4787_v2, %v4967_v29  ;;  %v2500_v21 = vmul.f32 %v2468_v45, %v2468_v45  ;;  %v2535_v3 = vsel %vm1152_vm8, %v2498_v52, 0.0 }
 0x5ab   :  { %v2528_v30 = vadd.f32 %v2527_v32, %v2526_v13  ;;  %v2471_v28 = vsub.f32 %v4795_v62, %v4967_v29  ;;  %v2501_v0 = vmul.f32 %v2469_v53, %v2469_v53  ;;  %v2537_v15 = vsel %vm1152_vm8, %v2499_v24, 0.0 }
 0x5ac   :  { %v2472_v6 = vsub.f32 %v4803_v37, %v4967_v29  ;;  %v2502_v34 = vmul.f32 %v2470_v16, %v2470_v16  ;;  %v2539_v8 = vsel %vm1152_vm8, %v2500_v21, 0.0  ;;  %v2473_v2 = vsub.f32 %v4805_v41, %v4967_v29 }
 0x5ad   :  { %v2530_v39 = vadd.f32 %v2529_v31, %v2528_v30  ;;  %v2503_v57 = vmul.f32 %v2471_v28, %v2471_v28  ;;  %v2541_v59 = vsel %vm1152_vm8, %v2501_v0, 0.0  ;;  %v2474_v62 = vsub.f32 %v4819_v11, %v4967_v29 }
 0x5ae   :  { %v2504_v61 = vmul.f32 %v2472_v6, %v2472_v6  ;;  %v2543_v54 = vsel %vm1152_vm8, %v2502_v34, 0.0  ;;  %v2326_v37 = vsub.f32 %v4707_v47, %v4967_v29  ;;  %v2327_v30 = vsub.f32 %v4709_v1, %v4967_v29 }
 0x5af   :  { %v2532_v40 = vadd.f32 %v2531_v22, %v2530_v39  ;;  %v2475_v41 = vsub.f32 %v4827_v5, %v4967_v29  ;;  %v2505_v23 = vmul.f32 %v2473_v2, %v2473_v2  ;;  %v2545_v10 = vsel %vm1152_vm8, %v2503_v57, 0.0 }
 0x5b0   :  { %v2328_v11 = vsub.f32 %v4721_v26, %v4967_v29  ;;  %v2476_v39 = vsub.f32 %v4835_v12, %v4967_v29  ;;  %v2506_v45 = vmul.f32 %v2474_v62, %v2474_v62  ;;  %v2547_v52 = vsel %vm1152_vm8, %v2504_v61, 0.0 }
 0x5b1   :  { %v2534_v9 = vadd.f32 %v2533_v20, %v2532_v40  ;;  %v2329_v1 = vsub.f32 %v4731_v48, %v4967_v29  ;;  %v2358_v22 = vmul.f32 %v2326_v37, %v2326_v37  ;;  %v2359_v40 = vmul.f32 %v2327_v30, %v2327_v30 }
 0x5b2   :  { %v2477_v5 = vsub.f32 %v4843_v18, %v4967_v29  ;;  %v2507_v53 = vmul.f32 %v2475_v41, %v2475_v41  ;;  %v2549_v24 = vsel %vm1152_vm8, %v2505_v23, 0.0  ;;  %v2330_v26 = vsub.f32 %v4733_v49, %v4967_v29 }
 0x5b3   :  { %v2536_v50 = vadd.f32 %v2535_v3, %v2534_v9  ;;  %v2360_v9 = vmul.f32 %v2328_v11, %v2328_v11  ;;  %v2478_v16 = vsub.f32 %v4853_v38, %v4967_v29  ;;  %v2508_v21 = vmul.f32 %v2476_v39, %v2476_v39 }
 0x5b4   :  { %v2551_v3 = vsel %vm1152_vm8, %v2506_v45, 0.0  ;;  %v2331_v48 = vsub.f32 %v4747_v44, %v4967_v29  ;;  %v2361_v28 = vmul.f32 %v2329_v1, %v2329_v1  ;;  %v2390_v0 = vsel %vm1152_vm8, %v2358_v22, 0.0 }
 0x5b5   :  { %v2538_v36 = vadd.f32 %v2537_v15, %v2536_v50  ;;  %v2391_v15 = vsel %vm1152_vm8, %v2359_v40, 0.0  ;;  %v2509_v49 = vmul.f32 %v2477_v5, %v2477_v5  ;;  %v2553_v6 = vsel %vm1152_vm8, %v2507_v53, 0.0 }
 0x5b6   :  { %v2392_v34 = vadd.f32 %v2391_v15, %v2390_v0  ;;  %v2362_v2 = vmul.f32 %v2330_v26, %v2330_v26  ;;  %v2393_v44 = vsel %vm1152_vm8, %v2360_v9, 0.0  ;;  %v2480_v57 = vsub.f32 %v4869_v60, %v4967_v29 }
 0x5b7   :  { %v2540_v58 = vadd.f32 %v2539_v8, %v2538_v36  ;;  %v2479_v36 = vsub.f32 %v4861_v17, %v4967_v29  ;;  %v2395_v37 = vsel %vm1152_vm8, %v2361_v28, 0.0  ;;  %v2557_v41 = vsel %vm1152_vm8, %v2509_v49, 0.0 }
 0x5b8   :  { %v2394_v62 = vadd.f32 %v2393_v44, %v2392_v34  ;;  %v2397_v39 = vsel %vm1152_vm8, %v2362_v2, 0.0  ;;  %v2512_v45 = vmul.f32 %v2480_v57, %v2480_v57  ;;  %v2335_v22 = vsub.f32 %v4781_v43, %v4967_v29 }
 0x5b9   :  { %v2542_v13 = vadd.f32 %v2541_v59, %v2540_v58  ;;  %v2332_v58 = vsub.f32 %v4757_v4, %v4967_v29  ;;  %v2510_v59 = vmul.f32 %v2478_v16, %v2478_v16  ;;  %v2481_v4 = vsub.f32 %v4871_v7, %v4967_v29 }
 0x5ba   :  { %v2511_v30 = vmul.f32 %v2479_v36, %v2479_v36  ;;  %v2396_v23 = vadd.f32 %v2395_v37, %v2394_v62  ;;  %v2336_v9 = vsub.f32 %v4791_v19, %v4967_v29  ;;  %v2484_v43 = vsub.f32 %v4909_v51, %v4967_v29  ;;  %v5519_v37 = vld [vmem:[#allocation6_spill] sm:$0xff] }
 0x5bb   :  { %v2544_v32 = vadd.f32 %v2543_v54, %v2542_v13  ;;  %v2555_v13 = vsel %vm1152_vm8, %v2508_v21, 0.0  ;;  %v2333_v54 = vsub.f32 %v4765_v25, %v4967_v29  ;;  %v2364_v11 = vmul.f32 %v2332_v58, %v2332_v58 }
 0x5bc   :  { %v2482_v25 = vsub.f32 %v4883_v55, %v4967_v29  ;;  %v2513_v53 = vmul.f32 %v2481_v4, %v2481_v4  ;;  %v2367_v0 = vmul.f32 %v2335_v22, %v2335_v22  ;;  %v2485_v19 = vsub.f32 %v4911_v63, %v4967_v29  ;;  %v5522_v22 = vld [vmem:[#allocation8_spill] sm:$0xff] }
 0x5bd   :  { %v2546_v31 = vadd.f32 %v2545_v10, %v2544_v32  ;;  %v2363_v32 = vmul.f32 %v2331_v48, %v2331_v48  ;;  %v2365_v40 = vmul.f32 %v2333_v54, %v2333_v54  ;;  %v2401_v21 = vsel %vm1152_vm8, %v2364_v11, 0.0 }
 0x5be   :  { %v2563_v48 = vsel %vm1152_vm8, %v2512_v45, 0.0  ;;  %v2565_v49 = vsel %vm1152_vm8, %v2513_v53, 0.0  ;;  %v2338_v51 = vsub.f32 %v4811_v42, %v4967_v29  ;;  %v2516_v2 = vmul.f32 %v2484_v43, %v2484_v43 }
 0x5bf   :  { %v2548_v47 = vadd.f32 %v2547_v52, %v2546_v31  ;;  %v2334_v31 = vsub.f32 %v4773_v35, %v4967_v29  ;;  %v2559_v52 = vsel %vm1152_vm8, %v2510_v59, 0.0  ;;  %v2399_v5 = vsel %vm1152_vm8, %v2363_v32, 0.0 }
 0x5c0   :  { %v2483_v35 = vsub.f32 %v4897_v56, %v4967_v29  ;;  %v2337_v56 = vsub.f32 %v4799_v33, %v4967_v29  ;;  %v2403_v15 = vsel %vm1152_vm8, %v2365_v40, 0.0  ;;  %v2339_v59 = vsub.f32 %v4813_v46, %v4967_v29 }
 0x5c1   :  { %v2550_v20 = vadd.f32 %v2549_v24, %v2548_v47  ;;  %v2398_v47 = vadd.f32 %v2397_v39, %v2396_v23  ;;  %v2561_v24 = vsel %vm1152_vm8, %v2511_v30, 0.0  ;;  %v2366_v16 = vmul.f32 %v2334_v31, %v2334_v31  ;;  %v5520_v31 = vld [vmem:[#allocation7_spill] sm:$0xff] }
 0x5c2   :  { %v2515_v36 = vmul.f32 %v2483_v35, %v2483_v35  ;;  %v2369_v63 = vmul.f32 %v2337_v56, %v2337_v56  ;;  %v2486_v62 = vsub.f32 %v4921_v27, %v4967_v29  ;;  %v2340_v4 = vsub.f32 %v5519_v37, %v4967_v29 }
 0x5c3   :  { %v2552_v50 = vadd.f32 %v2551_v3, %v2550_v20  ;;  %v2400_v20 = vadd.f32 %v2399_v5, %v2398_v47  ;;  %v2514_v3 = vmul.f32 %v2482_v25, %v2482_v25  ;;  %v2405_v58 = vsel %vm1152_vm8, %v2366_v16, 0.0  ;;  %v5521_v25 = vld [vmem:[#allocation21_spill] sm:$0xff] }
 0x5c4   :  { %v2569_v42 = vsel %vm1152_vm8, %v2515_v36, 0.0  ;;  %v2370_v30 = vmul.f32 %v2338_v51, %v2338_v51  ;;  %v2571_v23 = vsel %vm1152_vm8, %v2516_v2, 0.0  ;;  %v2341_v11 = vsub.f32 %v5520_v31, %v4967_v29 }
 0x5c5   :  { %v2554_v8 = vadd.f32 %v2553_v6, %v2552_v50  ;;  %v2402_v50 = vadd.f32 %v2401_v21, %v2400_v20  ;;  %v2567_v33 = vsel %vm1152_vm8, %v2514_v3, 0.0  ;;  %v2371_v39 = vmul.f32 %v2339_v59, %v2339_v59  ;;  %v5523_v20 = vld [vmem:[#allocation9_spill] sm:$0xff]  ;;  %v5524_v21 = vld [vmem:[#allocation23_spill] sm:$0xff] }
 0x5c6   :  { %v2411_v27 = vsel %vm1152_vm8, %v2369_v63, 0.0  ;;  %v2487_v45 = vsub.f32 %v5521_v25, %v4967_v29  ;;  %v2342_v40 = vsub.f32 %v5522_v22, %v4967_v29  ;;  %v2372_v5 = vmul.f32 %v2340_v4, %v2340_v4  ;;  %v5530_v4 = vld [vmem:[#allocation27_spill] sm:$0xff] }
 0x5c7   :  { %v2556_v61 = vadd.f32 %v2555_v13, %v2554_v8  ;;  %v2404_v6 = vadd.f32 %v2403_v15, %v2402_v50  ;;  %v2368_v8 = vmul.f32 %v2336_v9, %v2336_v9  ;;  %v2407_v13 = vsel %vm1152_vm8, %v2367_v0, 0.0 }
 0x5c8   :  { %v2413_v35 = vsel %vm1152_vm8, %v2370_v30, 0.0  ;;  %v2373_v9 = vmul.f32 %v2341_v11, %v2341_v11  ;;  %v2415_v16 = vsel %vm1152_vm8, %v2371_v39, 0.0  ;;  %v2488_v43 = vsub.f32 %v5524_v21, %v4967_v29 }
 0x5c9   :  { %v2558_v10 = vadd.f32 %v2557_v41, %v2556_v61  ;;  %v2406_v44 = vadd.f32 %v2405_v58, %v2404_v6  ;;  %v2517_v61 = vmul.f32 %v2485_v19, %v2485_v19  ;;  %v2409_v41 = vsel %vm1152_vm8, %v2368_v8, 0.0  ;;  %v5527_v8 = vld [vmem:[#allocation25_spill] sm:$0xff] }
 0x5ca   :  { %v2519_v3 = vmul.f32 %v2487_v45, %v2487_v45  ;;  %v2374_v0 = vmul.f32 %v2342_v40, %v2342_v40  ;;  %v2417_v15 = vsel %vm1152_vm8, %v2372_v5, 0.0  ;;  %v2419_v51 = vsel %vm1152_vm8, %v2373_v9, 0.0  ;;  %v5532_v45 = vld [vmem:[#allocation15_spill] sm:$0xff] }
 0x5cb   :  { %v2560_v1 = vadd.f32 %v2559_v52, %v2558_v10  ;;  %v2408_v54 = vadd.f32 %v2407_v13, %v2406_v44  ;;  %v2518_v52 = vmul.f32 %v2486_v62, %v2486_v62  ;;  %v2489_v58 = vsub.f32 %v5527_v8, %v4967_v29 }
 0x5cc   :  { %v2520_v2 = vmul.f32 %v2488_v43, %v2488_v43  ;;  %v2577_v44 = vsel %vm1152_vm8, %v2519_v3, 0.0  ;;  %v2421_v13 = vsel %vm1152_vm8, %v2374_v0, 0.0  ;;  %v2490_v30 = vsub.f32 %v5530_v4, %v4967_v29  ;;  %v5534_v3 = vld [vmem:[#allocation17_spill] sm:$0xff]  ;;  %v5538_v4 = vld [vmem:[#allocation22_spill] sm:$0xff] }
 0x5cd   :  { %v2562_v26 = vadd.f32 %v2561_v24, %v2560_v1  ;;  %v2410_v46 = vadd.f32 %v2409_v41, %v2408_v54  ;;  %v2573_v1 = vsel %vm1152_vm8, %v2517_v61, 0.0  ;;  %v2575_v50 = vsel %vm1152_vm8, %v2518_v52, 0.0 }
 0x5ce   :  { %v2521_v41 = vmul.f32 %v2489_v58, %v2489_v58  ;;  %v2349_v52 = vsub.f32 %v5532_v45, %v4967_v29  ;;  %v2491_v40 = vsub.f32 %v4959_v14, %v4967_v29  ;;  %v2522_v5 = vmul.f32 %v2490_v30, %v2490_v30  ;;  %v5536_v58 = vld [vmem:[#allocation19_spill] sm:$0xff] }
 0x5cf   :  { %v2564_v28 = vadd.f32 %v2563_v48, %v2562_v26  ;;  %v2412_v47 = vadd.f32 %v2411_v27, %v2410_v46  ;;  %v2343_v26 = vsub.f32 %v5523_v20, %v4967_v29  ;;  %v2579_v46 = vsel %vm1152_vm8, %v2520_v2, 0.0 }
 0x5d0   :  { %v2523_v0 = vmul.f32 %v2491_v40, %v2491_v40  ;;  %v2353_v2 = vsub.f32 %v5536_v58, %v4967_v29  ;;  %v2355_v30 = vsub.f32 %v5538_v4, %v4967_v29 }
 0x5d1   :  { %v2566_v34 = vadd.f32 %v2565_v49, %v2564_v28  ;;  %v2414_v24 = vadd.f32 %v2413_v35, %v2412_v47  ;;  %v5525_v28 = vld [vmem:[#allocation10_spill] sm:$0xff]  ;;  %v5526_v49 = vld [vmem:[#allocation11_spill] sm:$0xff] }
 0x5d2   :  { %v2344_v56 = vsub.f32 %v5525_v28, %v4967_v29  ;;  %v2345_v6 = vsub.f32 %v5526_v49, %v4967_v29  ;;  %v2387_v40 = vmul.f32 %v2355_v30, %v2355_v30 }
 0x5d3   :  { %v2568_v57 = vadd.f32 %v2567_v33, %v2566_v34  ;;  %v2416_v48 = vadd.f32 %v2415_v16, %v2414_v24  ;;  %v2375_v34 = vmul.f32 %v2343_v26, %v2343_v26  ;;  %v5533_v24 = vld [vmem:[#allocation16_spill] sm:$0xff] }
 0x5d4   :  { %v2376_v63 = vmul.f32 %v2344_v56, %v2344_v56  ;;  %v2350_v26 = vsub.f32 %v5533_v24, %v4967_v29 }
 0x5d5   :  { %v2570_v32 = vadd.f32 %v2569_v42, %v2568_v57  ;;  %v2418_v36 = vadd.f32 %v2417_v15, %v2416_v48  ;;  %v5528_v57 = vld [vmem:[#allocation12_spill] sm:$0xff]  ;;  %v5529_v42 = vld [vmem:[#allocation13_spill] sm:$0xff]  ;;  %v2423_v37 = vsel %vm1152_vm8, %v2375_v34, 0.0  ;;  %v2351_v48 = vsub.f32 %v5534_v3, %v4967_v29 }
 0x5d6   :  { %v2346_v59 = vsub.f32 %v5528_v57, %v4967_v29  ;;  %v2347_v54 = vsub.f32 %v5529_v42, %v4967_v29  ;;  %v2425_v39 = vsel %vm1152_vm8, %v2376_v63, 0.0  ;;  %v2583_v15 = vsel %vm1152_vm8, %v2522_v5, 0.0 }
 0x5d7   :  { %v2572_v10 = vadd.f32 %v2571_v23, %v2570_v32  ;;  %v2420_v33 = vadd.f32 %v2419_v51, %v2418_v36  ;;  %v2377_v32 = vmul.f32 %v2345_v6, %v2345_v6  ;;  %v2382_v6 = vmul.f32 %v2350_v26, %v2350_v26 }
 0x5d8   :  { %v2378_v11 = vmul.f32 %v2346_v59, %v2346_v59  ;;  %v2379_v47 = vmul.f32 %v2347_v54, %v2347_v54  ;;  %v2585_v63 = vsel %vm1152_vm8, %v2523_v0, 0.0 }
 0x5d9   :  { %v2574_v53 = vadd.f32 %v2573_v1, %v2572_v10  ;;  %v2422_v61 = vadd.f32 %v2421_v13, %v2420_v33  ;;  %v5531_v10 = vld [vmem:[#allocation14_spill] sm:$0xff]  ;;  %v2427_v1 = vsel %vm1152_vm8, %v2377_v32, 0.0  ;;  %v2383_v33 = vmul.f32 %v2351_v48, %v2351_v48  ;;  %v5537_v13 = vld [vmem:[#allocation20_spill] sm:$0xff] }
 0x5da   :  { %v2348_v31 = vsub.f32 %v5531_v10, %v4967_v29  ;;  %v2429_v16 = vsel %vm1152_vm8, %v2378_v11, 0.0  ;;  %v2431_v56 = vsel %vm1152_vm8, %v2379_v47, 0.0  ;;  %v2437_v54 = vsel %vm1152_vm8, %v2382_v6, 0.0  ;;  %v5540_v47 = vld [vmem:[#allocation26_spill] sm:$0xff] }
 0x5db   :  { %v2576_v19 = vadd.f32 %v2575_v50, %v2574_v53  ;;  %v2424_v23 = vadd.f32 %v2423_v37, %v2422_v61  ;;  %v2581_v53 = vsel %vm1152_vm8, %v2521_v41, 0.0  ;;  %v2381_v50 = vmul.f32 %v2349_v52, %v2349_v52 }
 0x5dc   :  { %v2380_v9 = vmul.f32 %v2348_v31, %v2348_v31  ;;  %v2385_v41 = vmul.f32 %v2353_v2, %v2353_v2  ;;  %v5539_v31 = vld [vmem:[#allocation24_spill] sm:$0xff] }
 0x5dd   :  { %v2578_v62 = vadd.f32 %v2577_v44, %v2576_v19  ;;  %v2426_v25 = vadd.f32 %v2425_v39, %v2424_v23  ;;  %v5535_v19 = vld [vmem:[#allocation18_spill] sm:$0xff]  ;;  %v2435_v44 = vsel %vm1152_vm8, %v2381_v50, 0.0  ;;  %v2439_v23 = vsel %vm1152_vm8, %v2383_v33, 0.0 }
 0x5de   :  { %v2352_v36 = vsub.f32 %v5535_v19, %v4967_v29  ;;  %v2433_v34 = vsel %vm1152_vm8, %v2380_v9, 0.0  ;;  %v2356_v11 = vsub.f32 %v5539_v31, %v4967_v29  ;;  %v2443_v5 = vsel %vm1152_vm8, %v2385_v41, 0.0  ;;  %v5164_v19 = vld [vmem:[%s5460_s4] sm:$0x3f] }
 0x5df   :  { %v2580_v27 = vadd.f32 %v2579_v46, %v2578_v62  ;;  %v2428_v35 = vadd.f32 %v2427_v1, %v2426_v25  ;;  %v2354_v62 = vsub.f32 %v5537_v13, %v4967_v29  ;;  %v2357_v1 = vsub.f32 %v5540_v47, %v4967_v29  ;;  %3593 = vmatprep.mubr.msk.f32.mxu1 %vm1152_vm8, %v5164_v19  ;;  %v2597_v13 = vld [vmem:[%s5461_s9] sm:$0x1]  ;;  %v3830_v47 = vld [vmem:[#allocation4 + $0x10b] sm:$0xff]  ;;  %s3887_s9 = smov 1  }
 0x5e0   :  { %v2384_v61 = vmul.f32 %v2352_v36, %v2352_v36 }
 0x5e1   :  { %v2582_v21 = vadd.f32 %v2581_v53, %v2580_v27  ;;  %v2430_v43 = vadd.f32 %v2429_v16, %v2428_v35  ;;  %v2386_v39 = vmul.f32 %v2354_v62, %v2354_v62  ;;  %v2388_v53 = vmul.f32 %v2356_v11, %v2356_v11  ;;  %v3827_v11 = vld [vmem:[#allocation4 + $0x1] sm:$0xff] }
 0x5e2   :  { %v2441_v27 = vsel %vm1152_vm8, %v2384_v61, 0.0  ;;  %v2389_v16 = vmul.f32 %v2357_v1, %v2357_v1 }
 0x5e3   :  { %v2432_v14 = vadd.f32 %v2431_v56, %v2430_v43  ;;  %v2584_v51 = vadd.f32 %v2583_v15, %v2582_v21  ;;  %v2445_v24 = vsel %vm1152_vm8, %v2386_v39, 0.0  ;;  %v2447_v21 = vsel %vm1152_vm8, %v2387_v40, 0.0 }
 0x5e4   :  { %v2449_v3 = vsel %vm1152_vm8, %v2388_v53, 0.0  ;;  %v2451_v56 = vsel %vm1152_vm8, %v2389_v16, 0.0  ;;  %v3832_v53 = vld [vmem:[#allocation4 + $0x19] sm:$0xff] }
 0x5e5   :  { %v2434_v8 = vadd.f32 %v2433_v34, %v2432_v14  ;;  %v2586_v32 = vadd.f32 %v2585_v63, %v2584_v51 }
 0x5e7   :  { %v2436_v59 = vadd.f32 %v2435_v44, %v2434_v8  ;;  %v2587_v25 = vrot.slane %v2586_v32, 4  ;;  %v5171_v8 = vld [vmem:[%s5460_s4] sm:$0x3f]  ;;  %s3886_s4 = smov 127  }
 0x5e8   :  { %3559 = vmatprep.mubr.msk.f32.mxu0 %vm1152_vm8, %v5171_v8 }
 0x5e9   :  { %v2438_v37 = vadd.f32 %v2437_v54, %v2436_v59  ;;  %v2588_v26 = vadd.f32 %v2587_v25, %v2586_v32  ;;  %v2599_v54 = vld [vmem:[%s5462_s10] sm:$0x1]  ;;  %v3829_v25 = vld [vmem:[#allocation4 + $0x103] sm:$0xff] }
 0x5eb   :  { %v2440_v46 = vadd.f32 %v2439_v23, %v2438_v37  ;;  %v2589_v48 = vrot.slane %v2588_v26, 2  ;;  %v5541_v37 = vld [vmem:[#allocation5_spill] sm:$0xff] }
 0x5ed   :  { %v2442_v52 = vadd.f32 %v2441_v27, %v2440_v46  ;;  %v2590_v14 = vadd.f32 %v2589_v48, %v2588_v26 }
 0x5ef   :  { %v2444_v35 = vadd.f32 %v2443_v5, %v2442_v52  ;;  %v2591_v6 = vrot.slane %v2590_v14, 1  ;;  %v3831_v5 = vld [vmem:[#allocation4 + $0x11] sm:$0xff] }
 0x5f1   :  { %v2446_v9 = vadd.f32 %v2445_v24, %v2444_v35  ;;  %v2592_v58 = vadd.f32 %v2591_v6, %v2590_v14 }
 0x5f3   :  { %v2448_v43 = vadd.f32 %v2447_v21, %v2446_v9 }
 0x5f5   :  { %v2450_v50 = vadd.f32 %v2449_v3, %v2448_v43 }
 0x5f7   :  { %v2452_v0 = vadd.f32 %v2451_v56, %v2450_v50 }
 0x5f9   :  { %v2453_v15 = vrot.slane %v2452_v0, 4 }
 0x5fb   :  { %v2454_v36 = vadd.f32 %v2453_v15, %v2452_v0 }
 0x5fd   :  { %v2455_v34 = vrot.slane %v2454_v36, 2 }
 0x5ff   :  { %v2456_v51 = vadd.f32 %v2455_v34, %v2454_v36 }
 0x601   :  { %v2457_v2 = vrot.slane %v2456_v51, 1 }
 0x603   :  { %v2458_v33 = vadd.f32 %v2457_v2, %v2456_v51 }
 0x605   :  { %v2593_v44 = vadd.f32 %v2592_v58, %v2458_v33 }
 0x607   :  { %v2594_v59 = vmul.f32 0.001953125, %v2593_v44 }
 0x609   :  { %v2595_v63 = vadd.f32 1e-05, %v2594_v59 }
 0x60b   :  { %3817 = vrsqrt.f32 %v2595_v63 }
 0x615   :  { %v3818_v62 = vpop.eup %3817 }
 0x616   :  { %v2598_v61 = vmul.f32 %v3818_v62, %v2597_v13 }
 0x618   :  { %v2600_v32 = vmul.f32 %v2598_v61, %v4967_v29  ;;  %v5183_v4 = vrot.slane %v2598_v61, %v5541_v37  ;;  %v3828_v29 = vld [vmem:[#allocation4 + $0x9] sm:$0xff] }
 0x61a   :  { %v2601_v30 = vsub.f32 %v2599_v54, %v2600_v32  ;;  %v2622_v41 = vmul.f32 %v5183_v4, %v5522_v22  ;;  %v2623_v23 = vmul.f32 %v5183_v4, %v5523_v20  ;;  %v2788_v46 = vmul.f32 %v5183_v4, %v4835_v12 }
 0x61b   :  { %v2789_v31 = vmul.f32 %v5183_v4, %v4843_v18  ;;  %v2606_v39 = vmul.f32 %v3827_v11, %v5183_v4  ;;  %v2607_v27 = vmul.f32 %v3828_v29, %v5183_v4  ;;  %v2772_v52 = vmul.f32 %v3829_v25, %v5183_v4 }
 0x61c   :  { %v5197_v22 = vrot.slane %v2601_v30, %v5541_v37  ;;  %v2773_v20 = vmul.f32 %v3830_v47, %v5183_v4  ;;  %v2624_v12 = vmul.f32 %v5183_v4, %v5525_v28  ;;  %v2625_v18 = vmul.f32 %v5183_v4, %v5526_v49 }
 0x61d   :  { %v2790_v1 = vmul.f32 %v5183_v4, %v4853_v38  ;;  %v2791_v40 = vmul.f32 %v5183_v4, %v4861_v17  ;;  %v2608_v35 = vmul.f32 %v3831_v5, %v5183_v4  ;;  %v2609_v24 = vmul.f32 %v3832_v53, %v5183_v4  ;;  %v3834_v5 = vld [vmem:[#allocation4 + $0x11b] sm:$0xff] }
 0x61e   :  { %v2660_v26 = vadd.f32 %v5197_v22, %v2622_v41  ;;  %v2661_v9 = vadd.f32 %v5197_v22, %v2623_v23  ;;  %v2820_v28 = vadd.f32 %v2788_v46, %v5197_v22  ;;  %v2821_v49 = vadd.f32 %v2789_v31, %v5197_v22 }
 0x61f   :  { %v2644_v16 = vadd.f32 %v5197_v22, %v2606_v39  ;;  %v2645_v38 = vadd.f32 %v5197_v22, %v2607_v27  ;;  %v2804_v17 = vadd.f32 %v2772_v52, %v5197_v22  ;;  %v2805_v21 = vadd.f32 %v2773_v20, %v5197_v22  ;;  %v3833_v20 = vld [vmem:[#allocation4 + $0x113] sm:$0xff] }
 0x620   :  { %vm2692_vm2 = vcmp.ge.f32.partialorder %v2660_v26, 0.0  ;;  %vm2693_vm12 = vcmp.ge.f32.partialorder %v2661_v9, 0.0  ;;  %v2724_v43 = vmul.f32 0.01, %v2660_v26  ;;  %v2725_v3 = vmul.f32 0.01, %v2661_v9 }
 0x621   :  { %vm2852_vm13 = vcmp.ge.f32.partialorder %v2820_v28, 0.0  ;;  %vm2853_vm14 = vcmp.ge.f32.partialorder %v2821_v49, 0.0  ;;  %v2884_v48 = vmul.f32 0.01, %v2820_v28  ;;  %v2885_v50 = vmul.f32 0.01, %v2821_v49 }
 0x622   :  { %v2756_v56 = vsel %vm2692_vm2, %v2660_v26, %v2724_v43  ;;  %v2757_v0 = vsel %vm2693_vm12, %v2661_v9, %v2725_v3  ;;  %vm2676_vm0 = vcmp.ge.f32.partialorder %v2644_v16, 0.0  ;;  %vm2677_vm1 = vcmp.ge.f32.partialorder %v2645_v38, 0.0 }
 0x623   :  { %v3705_v15 = vpack.c.bf16 %v2757_v0, %v2756_v56  ;;  %v2916_v36 = vsel %vm2852_vm13, %v2820_v28, %v2884_v48  ;;  %v2917_v6 = vsel %vm2853_vm14, %v2821_v49, %v2885_v50  ;;  %v2708_v34 = vmul.f32 0.01, %v2644_v16 }
 0x624   :  { %v3753_v51 = vpack.c.bf16 %v2917_v6, %v2916_v36  ;;  %v2709_v58 = vmul.f32 0.01, %v2645_v38  ;;  %vm2836_vm3 = vcmp.ge.f32.partialorder %v2804_v17, 0.0  ;;  %vm2837_vm4 = vcmp.ge.f32.partialorder %v2805_v21, 0.0 }
 0x625   :  { %3707 = vmatprep.subr.msk.bf16.mxu0 %vm5220_vm15, %v3705_v15  ;;  %v2740_v2 = vsel %vm2676_vm0, %v2644_v16, %v2708_v34  ;;  %v2868_v33 = vmul.f32 0.01, %v2804_v17  ;;  %v2869_v44 = vmul.f32 0.01, %v2805_v21  ;;  %v2662_v59 = vadd.f32 %v5197_v22, %v2624_v12 }
 0x626   :  { %3755 = vmatprep.subr.msk.bf16.mxu1 %vm5220_vm15, %v3753_v51  ;;  %v2741_v63 = vsel %vm2677_vm1, %v2645_v38, %v2709_v58  ;;  %v2663_v13 = vadd.f32 %v5197_v22, %v2625_v18  ;;  %v2822_v62 = vadd.f32 %v2790_v1, %v5197_v22  ;;  %v2823_v61 = vadd.f32 %v2791_v40, %v5197_v22 }
 0x627   :  { %v3708_v54 = vpack.c.bf16 %v2741_v63, %v2740_v2  ;;  %v2900_v32 = vsel %vm2836_vm3, %v2804_v17, %v2868_v33  ;;  %v2901_v37 = vsel %vm2837_vm4, %v2805_v21, %v2869_v44  ;;  %vm2694_vm5 = vcmp.ge.f32.partialorder %v2662_v59, 0.0  ;;  %v3835_v2 = vld [vmem:[#allocation4 + $0x21] sm:$0xff]  ;;  %v3836_v44 = vld [vmem:[#allocation4 + $0x29] sm:$0xff] }
 0x628   :  { %v3756_v30 = vpack.c.bf16 %v2901_v37, %v2900_v32  ;;  %vm2695_vm6 = vcmp.ge.f32.partialorder %v2663_v13, 0.0  ;;  %v2726_v41 = vmul.f32 0.01, %v2662_v59  ;;  %v2727_v23 = vmul.f32 0.01, %v2663_v13 }
 0x629   :  { %3710 = vmatpush3.bf16.xpose.msk.msra.mxu0 %vm5220_vm15, %v3708_v54  ;;  %vm2854_vm7 = vcmp.ge.f32.partialorder %v2822_v62, 0.0  ;;  %vm2855_vm9 = vcmp.ge.f32.partialorder %v2823_v61, 0.0  ;;  %v2886_v46 = vmul.f32 0.01, %v2822_v62  ;;  %v2887_v31 = vmul.f32 0.01, %v2823_v61 }
 0x62a   :  { %3758 = vmatpush3.bf16.xpose.msk.msra.mxu1 %vm5220_vm15, %v3756_v30  ;;  %v2758_v11 = vsel %vm2694_vm5, %v2662_v59, %v2726_v41  ;;  %v2759_v39 = vsel %vm2695_vm6, %v2663_v13, %v2727_v23  ;;  %v2646_v29 = vadd.f32 %v5197_v22, %v2608_v35  ;;  %v2647_v27 = vadd.f32 %v5197_v22, %v2609_v24  ;;  %v3837_v13 = vld [vmem:[#allocation4 + $0x123] sm:$0xff] }
 0x62b   :  { %v3711_v25 = vpack.c.bf16 %v2759_v39, %v2758_v11  ;;  %v2918_v52 = vsel %vm2854_vm7, %v2822_v62, %v2886_v46  ;;  %v2919_v47 = vsel %vm2855_vm9, %v2823_v61, %v2887_v31  ;;  %v2774_v12 = vmul.f32 %v3833_v20, %v5183_v4  ;;  %v3838_v61 = vld [vmem:[#allocation4 + $0x12b] sm:$0xff] }
 0x62c   :  { %v3759_v18 = vpack.c.bf16 %v2919_v47, %v2918_v52  ;;  %vm2678_vm10 = vcmp.ge.f32.partialorder %v2646_v29, 0.0  ;;  %vm2679_vm11 = vcmp.ge.f32.partialorder %v2647_v27, 0.0  ;;  %v2710_v1 = vmul.f32 0.01, %v2646_v29 }
 0x62d   :  { %3713 = vmatprep.subr.msk.bf16.mxu0 %vm5220_vm15, %v3711_v25  ;;  %v2711_v40 = vmul.f32 0.01, %v2647_v27  ;;  %v2775_v53 = vmul.f32 %v3834_v5, %v5183_v4  ;;  %v2806_v35 = vadd.f32 %v2774_v12, %v5197_v22  ;;  %v2626_v24 = vmul.f32 %v5183_v4, %v5528_v57  ;;  %v3839_v5 = vld [vmem:[#allocation4 + $0x1bb] sm:$0xff] }
 0x62e   :  { %3761 = vmatprep.subr.msk.bf16.mxu1 %vm5220_vm15, %v3759_v18  ;;  %v2742_v26 = vsel %vm2678_vm10, %v2646_v29, %v2710_v1  ;;  %v2627_v9 = vmul.f32 %v5183_v4, %v5529_v42  ;;  %v2792_v28 = vmul.f32 %v5183_v4, %v4869_v60  ;;  %v2793_v49 = vmul.f32 %v5183_v4, %v4871_v7 }
 0x62f   :  { %v2743_v16 = vsel %vm2679_vm11, %v2647_v27, %v2711_v40  ;;  %v2807_v38 = vadd.f32 %v2775_v53, %v5197_v22  ;;  %vm2838_vm2 = vcmp.ge.f32.partialorder %v2806_v35, 0.0  ;;  %v2870_v17 = vmul.f32 0.01, %v2806_v35 }
 0x630   :  { %v3714_v21 = vpack.c.bf16 %v2743_v16, %v2742_v26  ;;  %v2664_v57 = vadd.f32 %v5197_v22, %v2626_v24  ;;  %v2665_v43 = vadd.f32 %v5197_v22, %v2627_v9  ;;  %v2824_v3 = vadd.f32 %v2792_v28, %v5197_v22  ;;  %v3840_v26 = vld [vmem:[#allocation4 + $0x31] sm:$0xff]  ;;  %v3841_v28 = vld [vmem:[#allocation4 + $0x39] sm:$0xff] }
 0x631   :  { %vm2839_vm12 = vcmp.ge.f32.partialorder %v2807_v38, 0.0  ;;  %v2871_v42 = vmul.f32 0.01, %v2807_v38  ;;  %v2902_v48 = vsel %vm2838_vm2, %v2806_v35, %v2870_v17  ;;  %v2825_v60 = vadd.f32 %v2793_v49, %v5197_v22  ;;  %v3842_v17 = vld [vmem:[#allocation4 + $0x133] sm:$0xff] }
 0x632   :  { %3716 = vmatpush3.bf16.xpose.msk.msra.mxu0 %vm5220_vm15, %v3714_v21  ;;  %vm2696_vm13 = vcmp.ge.f32.partialorder %v2664_v57, 0.0  ;;  %vm2697_vm14 = vcmp.ge.f32.partialorder %v2665_v43, 0.0  ;;  %v2728_v7 = vmul.f32 0.01, %v2664_v57  ;;  %v2729_v50 = vmul.f32 0.01, %v2665_v43 }
 0x633   :  { %v2903_v56 = vsel %vm2839_vm12, %v2807_v38, %v2871_v42  ;;  %vm2856_vm0 = vcmp.ge.f32.partialorder %v2824_v3, 0.0  ;;  %vm2857_vm1 = vcmp.ge.f32.partialorder %v2825_v60, 0.0  ;;  %v2888_v0 = vmul.f32 0.01, %v2824_v3 }
 0x634   :  { %v3762_v15 = vpack.c.bf16 %v2903_v56, %v2902_v48  ;;  %v2760_v36 = vsel %vm2696_vm13, %v2664_v57, %v2728_v7  ;;  %v2761_v6 = vsel %vm2697_vm14, %v2665_v43, %v2729_v50  ;;  %v2889_v34 = vmul.f32 0.01, %v2825_v60  ;;  %v3843_v57 = vld [vmem:[#allocation4 + $0x13b] sm:$0xff] }
 0x635   :  { %v3717_v51 = vpack.c.bf16 %v2761_v6, %v2760_v36  ;;  %v2920_v58 = vsel %vm2856_vm0, %v2824_v3, %v2888_v0  ;;  %v2610_v33 = vmul.f32 %v3835_v2, %v5183_v4  ;;  %v2611_v59 = vmul.f32 %v3836_v44, %v5183_v4  ;;  %v3844_v44 = vld [vmem:[#allocation4 + $0xc1] sm:$0xff] }
 0x636   :  { %3764 = vmatpush3.bf16.xpose.msk.msra.mxu1 %vm5220_vm15, %v3762_v15  ;;  %v2921_v63 = vsel %vm2857_vm1, %v2825_v60, %v2889_v34  ;;  %v2776_v62 = vmul.f32 %v3837_v13, %v5183_v4  ;;  %v2777_v54 = vmul.f32 %v3838_v61, %v5183_v4  ;;  %v2628_v32 = vmul.f32 %v5183_v4, %v5531_v10 }
 0x637   :  { %3719 = vmatprep.subr.msk.bf16.mxu0 %vm5220_vm15, %v3717_v51  ;;  %v3765_v37 = vpack.c.bf16 %v2921_v63, %v2920_v58  ;;  %v2648_v30 = vadd.f32 %v5197_v22, %v2610_v33  ;;  %v2649_v41 = vadd.f32 %v5197_v22, %v2611_v59  ;;  %v2629_v23 = vmul.f32 %v5183_v4, %v5532_v45  ;;  %v3845_v63 = vld [vmem:[#allocation4 + $0xc9] sm:$0xff] }
 0x638   :  { %v2808_v46 = vadd.f32 %v2776_v62, %v5197_v22  ;;  %v2809_v31 = vadd.f32 %v2777_v54, %v5197_v22  ;;  %v2666_v11 = vadd.f32 %v5197_v22, %v2628_v32  ;;  %v2794_v10 = vmul.f32 %v5183_v4, %v4883_v55  ;;  %v3846_v54 = vld [vmem:[#allocation4 + $0x1c3] sm:$0xff] }
 0x639   :  { %3767 = vmatprep.subr.msk.bf16.mxu1 %vm5220_vm15, %v3765_v37  ;;  %vm2680_vm3 = vcmp.ge.f32.partialorder %v2648_v30, 0.0  ;;  %vm2681_vm4 = vcmp.ge.f32.partialorder %v2649_v41, 0.0  ;;  %v2712_v39 = vmul.f32 0.01, %v2648_v30  ;;  %v2713_v29 = vmul.f32 0.01, %v2649_v41 }
 0x63a   :  { %vm2840_vm5 = vcmp.ge.f32.partialorder %v2808_v46, 0.0  ;;  %vm2841_vm6 = vcmp.ge.f32.partialorder %v2809_v31, 0.0  ;;  %v2872_v27 = vmul.f32 0.01, %v2808_v46  ;;  %v2873_v45 = vmul.f32 0.01, %v2809_v31 }
 0x63b   :  { %v2744_v25 = vsel %vm2680_vm3, %v2648_v30, %v2712_v39  ;;  %v2745_v52 = vsel %vm2681_vm4, %v2649_v41, %v2713_v29  ;;  %v2667_v47 = vadd.f32 %v5197_v22, %v2629_v23  ;;  %vm2698_vm7 = vcmp.ge.f32.partialorder %v2666_v11, 0.0  ;;  %v3847_v37 = vld [vmem:[#allocation4 + $0x1cb] sm:$0xff] }
 0x63c   :  { %v3720_v20 = vpack.c.bf16 %v2745_v52, %v2744_v25  ;;  %v2904_v12 = vsel %vm2840_vm5, %v2808_v46, %v2872_v27  ;;  %v2905_v18 = vsel %vm2841_vm6, %v2809_v31, %v2873_v45  ;;  %v2730_v55 = vmul.f32 0.01, %v2666_v11  ;;  %v3848_v31 = vld [vmem:[#allocation4 + $0x41] sm:$0xff]  ;;  %v3849_v27 = vld [vmem:[#allocation4 + $0x49] sm:$0xff] }
 0x63d   :  { %v3768_v1 = vpack.c.bf16 %v2905_v18, %v2904_v12  ;;  %vm2699_vm9 = vcmp.ge.f32.partialorder %v2667_v47, 0.0  ;;  %v2731_v40 = vmul.f32 0.01, %v2667_v47  ;;  %v2795_v53 = vmul.f32 %v3839_v5, %v5183_v4 }
 0x63e   :  { %3722 = vmatpush3.bf16.xpose.msk.msra.mxu0 %vm5220_vm15, %v3720_v20  ;;  %v2762_v35 = vsel %vm2698_vm7, %v2666_v11, %v2730_v55  ;;  %v2826_v24 = vadd.f32 %v2794_v10, %v5197_v22  ;;  %v2612_v9 = vmul.f32 %v3840_v26, %v5183_v4  ;;  %v2613_v49 = vmul.f32 %v3841_v28, %v5183_v4 }
 0x63f   :  { %3770 = vmatpush3.bf16.xpose.msk.msra.mxu1 %vm5220_vm15, %v3768_v1  ;;  %v2763_v16 = vsel %vm2699_vm9, %v2667_v47, %v2731_v40  ;;  %v2827_v38 = vadd.f32 %v2795_v53, %v5197_v22  ;;  %v2778_v21 = vmul.f32 %v3842_v17, %v5183_v4  ;;  %v2779_v43 = vmul.f32 %v3843_v57, %v5183_v4  ;;  %v3852_v17 = vld [vmem:[#allocation4 + $0xd1] sm:$0xff] }
 0x640   :  { %v3723_v3 = vpack.c.bf16 %v2763_v16, %v2762_v35  ;;  %vm2858_vm10 = vcmp.ge.f32.partialorder %v2826_v24, 0.0  ;;  %v2890_v42 = vmul.f32 0.01, %v2826_v24  ;;  %v2650_v48 = vadd.f32 %v5197_v22, %v2612_v9  ;;  %v3850_v35 = vld [vmem:[#allocation4 + $0x143] sm:$0xff] }
 0x641   :  { %vm2859_vm11 = vcmp.ge.f32.partialorder %v2827_v38, 0.0  ;;  %v2891_v60 = vmul.f32 0.01, %v2827_v38  ;;  %v2651_v7 = vadd.f32 %v5197_v22, %v2613_v49  ;;  %v2810_v50 = vadd.f32 %v2778_v21, %v5197_v22  ;;  %v3851_v49 = vld [vmem:[#allocation4 + $0x14b] sm:$0xff] }
 0x642   :  { %3725 = vmatprep.subr.msk.bf16.mxu0 %vm5220_vm15, %v3723_v3  ;;  %v2922_v56 = vsel %vm2858_vm10, %v2826_v24, %v2890_v42  ;;  %vm2682_vm2 = vcmp.ge.f32.partialorder %v2650_v48, 0.0  ;;  %v2714_v0 = vmul.f32 0.01, %v2650_v48  ;;  %v2811_v15 = vadd.f32 %v2779_v43, %v5197_v22  ;;  %v3853_v43 = vld [vmem:[#allocation4 + $0xd9] sm:$0xff] }
 0x643   :  { %v2923_v36 = vsel %vm2859_vm11, %v2827_v38, %v2891_v60  ;;  %vm2683_vm12 = vcmp.ge.f32.partialorder %v2651_v7, 0.0  ;;  %v2715_v6 = vmul.f32 0.01, %v2651_v7  ;;  %vm2842_vm13 = vcmp.ge.f32.partialorder %v2810_v50, 0.0  ;;  %v3854_v42 = vld [vmem:[#allocation4 + $0x1d3] sm:$0xff]  ;;  %v3855_v60 = vld [vmem:[#allocation4 + $0x1db] sm:$0xff] }
 0x644   :  { %v3771_v34 = vpack.c.bf16 %v2923_v36, %v2922_v56  ;;  %v2746_v51 = vsel %vm2682_vm2, %v2650_v48, %v2714_v0  ;;  %vm2843_vm14 = vcmp.ge.f32.partialorder %v2811_v15, 0.0  ;;  %v2874_v58 = vmul.f32 0.01, %v2810_v50 }
 0x645   :  { %v2747_v2 = vsel %vm2683_vm12, %v2651_v7, %v2715_v6  ;;  %v2875_v33 = vmul.f32 0.01, %v2811_v15  ;;  %v2630_v59 = vmul.f32 %v3844_v44, %v5183_v4  ;;  %v2631_v13 = vmul.f32 %v3845_v63, %v5183_v4 }
 0x646   :  { %3773 = vmatprep.subr.msk.bf16.mxu1 %vm5220_vm15, %v3771_v34  ;;  %v3726_v62 = vpack.c.bf16 %v2747_v2, %v2746_v51  ;;  %v2906_v61 = vsel %vm2842_vm13, %v2810_v50, %v2874_v58  ;;  %v2796_v32 = vmul.f32 %v3846_v54, %v5183_v4  ;;  %v2797_v30 = vmul.f32 %v3847_v37, %v5183_v4 }
 0x647   :  { %v2907_v41 = vsel %vm2843_vm14, %v2811_v15, %v2875_v33  ;;  %v2668_v23 = vadd.f32 %v5197_v22, %v2630_v59  ;;  %v2669_v46 = vadd.f32 %v5197_v22, %v2631_v13  ;;  %v2614_v11 = vmul.f32 %v3848_v31, %v5183_v4 }
 0x648   :  { %3728 = vmatpush3.bf16.xpose.msk.msra.mxu0 %vm5220_vm15, %v3726_v62  ;;  %v3774_v10 = vpack.c.bf16 %v2907_v41, %v2906_v61  ;;  %v2828_v39 = vadd.f32 %v2796_v32, %v5197_v22  ;;  %v2829_v29 = vadd.f32 %v2797_v30, %v5197_v22  ;;  %v2615_v45 = vmul.f32 %v3849_v27, %v5183_v4  ;;  %v3856_v30 = vld [vmem:[#allocation4 + $0x51] sm:$0xff]  ;;  %v3860_v27 = vld [vmem:[#allocation4 + $0xe1] sm:$0xff] }
 0x649   :  { %vm2700_vm0 = vcmp.ge.f32.partialorder %v2668_v23, 0.0  ;;  %vm2701_vm1 = vcmp.ge.f32.partialorder %v2669_v46, 0.0  ;;  %v2732_v25 = vmul.f32 0.01, %v2668_v23  ;;  %v2733_v52 = vmul.f32 0.01, %v2669_v46 }
 0x64a   :  { %3776 = vmatpush3.bf16.xpose.msk.msra.mxu1 %vm5220_vm15, %v3774_v10  ;;  %vm2860_vm3 = vcmp.ge.f32.partialorder %v2828_v39, 0.0  ;;  %vm2861_vm4 = vcmp.ge.f32.partialorder %v2829_v29, 0.0  ;;  %v2892_v47 = vmul.f32 0.01, %v2828_v39  ;;  %v2893_v20 = vmul.f32 0.01, %v2829_v29 }
 0x64b   :  { %v2764_v12 = vsel %vm2700_vm0, %v2668_v23, %v2732_v25  ;;  %v2765_v18 = vsel %vm2701_vm1, %v2669_v46, %v2733_v52  ;;  %v2652_v55 = vadd.f32 %v5197_v22, %v2614_v11  ;;  %v2653_v1 = vadd.f32 %v5197_v22, %v2615_v45  ;;  %v3857_v23 = vld [vmem:[#allocation4 + $0x59] sm:$0xff] }
 0x64c   :  { %v3729_v40 = vpack.c.bf16 %v2765_v18, %v2764_v12  ;;  %v2924_v5 = vsel %vm2860_vm3, %v2828_v39, %v2892_v47  ;;  %v2925_v53 = vsel %vm2861_vm4, %v2829_v29, %v2893_v20  ;;  %v2780_v24 = vmul.f32 %v3850_v35, %v5183_v4  ;;  %v3858_v11 = vld [vmem:[#allocation4 + $0x153] sm:$0xff]  ;;  %v3859_v39 = vld [vmem:[#allocation4 + $0x15b] sm:$0xff]  ;;  %v3861_v20 = vld [vmem:[#allocation4 + $0xe9] sm:$0xff] }
 0x64d   :  { %v3777_v26 = vpack.c.bf16 %v2925_v53, %v2924_v5  ;;  %vm2684_vm5 = vcmp.ge.f32.partialorder %v2652_v55, 0.0  ;;  %vm2685_vm6 = vcmp.ge.f32.partialorder %v2653_v1, 0.0  ;;  %v2716_v9 = vmul.f32 0.01, %v2652_v55 }
 0x64e   :  { %3731 = vmatprep.subr.msk.bf16.mxu0 %vm5220_vm15, %v3729_v40  ;;  %v2717_v28 = vmul.f32 0.01, %v2653_v1  ;;  %v2781_v16 = vmul.f32 %v3851_v49, %v5183_v4  ;;  %v2812_v38 = vadd.f32 %v2780_v24, %v5197_v22  ;;  %v2632_v21 = vmul.f32 %v3852_v17, %v5183_v4  ;;  %v3862_v40 = vld [vmem:[#allocation4 + $0x1e3] sm:$0xff] }
 0x64f   :  { %3779 = vmatprep.subr.msk.bf16.mxu1 %vm5220_vm15, %v3777_v26  ;;  %v2748_v57 = vsel %vm2684_vm5, %v2652_v55, %v2716_v9  ;;  %v2633_v3 = vmul.f32 %v3853_v43, %v5183_v4  ;;  %v2798_v48 = vmul.f32 %v3854_v42, %v5183_v4  ;;  %v2799_v7 = vmul.f32 %v3855_v60, %v5183_v4 }
 0x650   :  { %v2749_v50 = vsel %vm2685_vm6, %v2653_v1, %v2717_v28  ;;  %v2813_v56 = vadd.f32 %v2781_v16, %v5197_v22  ;;  %vm2844_vm7 = vcmp.ge.f32.partialorder %v2812_v38, 0.0  ;;  %v2876_v0 = vmul.f32 0.01, %v2812_v38 }
 0x651   :  { %v3732_v15 = vpack.c.bf16 %v2749_v50, %v2748_v57  ;;  %v2670_v36 = vadd.f32 %v5197_v22, %v2632_v21  ;;  %v2671_v6 = vadd.f32 %v5197_v22, %v2633_v3  ;;  %v2830_v34 = vadd.f32 %v2798_v48, %v5197_v22  ;;  %v3863_v3 = vld [vmem:[#allocation4 + $0x1eb] sm:$0xff] }
 0x652   :  { %vm2845_vm9 = vcmp.ge.f32.partialorder %v2813_v56, 0.0  ;;  %v2877_v51 = vmul.f32 0.01, %v2813_v56  ;;  %v2908_v58 = vsel %vm2844_vm7, %v2812_v38, %v2876_v0  ;;  %v2831_v2 = vadd.f32 %v2799_v7, %v5197_v22  ;;  %v3864_v7 = vld [vmem:[#allocation4 + $0x61] sm:$0xff] }
 0x653   :  { %3734 = vmatpush3.bf16.xpose.msk.msra.mxu0 %vm5220_vm15, %v3732_v15  ;;  %vm2702_vm10 = vcmp.ge.f32.partialorder %v2670_v36, 0.0  ;;  %vm2703_vm11 = vcmp.ge.f32.partialorder %v2671_v6, 0.0  ;;  %v2734_v33 = vmul.f32 0.01, %v2670_v36  ;;  %v2735_v44 = vmul.f32 0.01, %v2671_v6 }
 0x654   :  { %v2909_v59 = vsel %vm2845_vm9, %v2813_v56, %v2877_v51  ;;  %vm2862_vm2 = vcmp.ge.f32.partialorder %v2830_v34, 0.0  ;;  %vm2863_vm12 = vcmp.ge.f32.partialorder %v2831_v2, 0.0  ;;  %v2894_v63 = vmul.f32 0.01, %v2830_v34  ;;  %v3865_v56 = vld [vmem:[#allocation4 + $0x69] sm:$0xff] }
 0x655   :  { %v3780_v13 = vpack.c.bf16 %v2909_v59, %v2908_v58  ;;  %v2766_v62 = vsel %vm2702_vm10, %v2670_v36, %v2734_v33  ;;  %v2767_v61 = vsel %vm2703_vm11, %v2671_v6, %v2735_v44  ;;  %v2895_v54 = vmul.f32 0.01, %v2831_v2  ;;  %v3866_v6 = vld [vmem:[#allocation4 + $0x163] sm:$0xff]  ;;  %v3867_v51 = vld [vmem:[#allocation4 + $0x16b] sm:$0xff] }
 0x656   :  { %v3735_v32 = vpack.c.bf16 %v2767_v61, %v2766_v62  ;;  %v2926_v37 = vsel %vm2862_vm2, %v2830_v34, %v2894_v63  ;;  %v2616_v41 = vmul.f32 %v3856_v30, %v5183_v4  ;;  %v2617_v46 = vmul.f32 %v3857_v23, %v5183_v4 }
 0x657   :  { %3782 = vmatpush3.bf16.xpose.msk.msra.mxu1 %vm5220_vm15, %v3780_v13  ;;  %v2927_v31 = vsel %vm2863_vm12, %v2831_v2, %v2895_v54  ;;  %v2782_v10 = vmul.f32 %v3858_v11, %v5183_v4  ;;  %v2783_v29 = vmul.f32 %v3859_v39, %v5183_v4  ;;  %v2634_v45 = vmul.f32 %v3860_v27, %v5183_v4  ;;  %v3868_v11 = vld [vmem:[#allocation4 + $0xf1] sm:$0xff]  ;;  %v3869_v39 = vld [vmem:[#allocation4 + $0xf9] sm:$0xff] }
 0x658   :  { %3737 = vmatprep.subr.msk.bf16.mxu0 %vm5220_vm15, %v3735_v32  ;;  %v3783_v25 = vpack.c.bf16 %v2927_v31, %v2926_v37  ;;  %v2654_v52 = vadd.f32 %v5197_v22, %v2616_v41  ;;  %v2655_v47 = vadd.f32 %v5197_v22, %v2617_v46  ;;  %v2635_v12 = vmul.f32 %v3861_v20, %v5183_v4 }
 0x659   :  { %v2814_v18 = vadd.f32 %v2782_v10, %v5197_v22  ;;  %v2815_v55 = vadd.f32 %v2783_v29, %v5197_v22  ;;  %v2672_v1 = vadd.f32 %v5197_v22, %v2634_v45  ;;  %v2800_v5 = vmul.f32 %v3862_v40, %v5183_v4 }
 0x65a   :  { %3785 = vmatprep.subr.msk.bf16.mxu1 %vm5220_vm15, %v3783_v25  ;;  %vm2686_vm13 = vcmp.ge.f32.partialorder %v2654_v52, 0.0  ;;  %vm2687_vm14 = vcmp.ge.f32.partialorder %v2655_v47, 0.0  ;;  %v2718_v53 = vmul.f32 0.01, %v2654_v52  ;;  %v2719_v35 = vmul.f32 0.01, %v2655_v47 }
 0x65b   :  { %vm2846_vm0 = vcmp.ge.f32.partialorder %v2814_v18, 0.0  ;;  %vm2847_vm1 = vcmp.ge.f32.partialorder %v2815_v55, 0.0  ;;  %v2878_v24 = vmul.f32 0.01, %v2814_v18  ;;  %v2879_v26 = vmul.f32 0.01, %v2815_v55 }
 0x65c   :  { %v2750_v9 = vsel %vm2686_vm13, %v2654_v52, %v2718_v53  ;;  %v2751_v28 = vsel %vm2687_vm14, %v2655_v47, %v2719_v35  ;;  %v2673_v49 = vadd.f32 %v5197_v22, %v2635_v12  ;;  %vm2704_vm3 = vcmp.ge.f32.partialorder %v2672_v1, 0.0  ;;  %v3870_v25 = vld [vmem:[#allocation4 + $0x1f3] sm:$0xff]  ;;  %v3871_v47 = vld [vmem:[#allocation4 + $0x1fb] sm:$0xff] }
 0x65d   :  { %v3738_v16 = vpack.c.bf16 %v2751_v28, %v2750_v9  ;;  %v2910_v38 = vsel %vm2846_vm0, %v2814_v18, %v2878_v24  ;;  %v2911_v17 = vsel %vm2847_vm1, %v2815_v55, %v2879_v26  ;;  %v2736_v21 = vmul.f32 0.01, %v2672_v1  ;;  %v3873_v24 = vld [vmem:[#allocation4 + $0x79] sm:$0xff] }
 0x65e   :  { %v3786_v57 = vpack.c.bf16 %v2911_v17, %v2910_v38  ;;  %vm2705_vm4 = vcmp.ge.f32.partialorder %v2673_v49, 0.0  ;;  %v2737_v43 = vmul.f32 0.01, %v2673_v49  ;;  %v2801_v42 = vmul.f32 %v3863_v3, %v5183_v4 }
 0x65f   :  { %3740 = vmatpush3.bf16.xpose.msk.msra.mxu0 %vm5220_vm15, %v3738_v16  ;;  %v2768_v48 = vsel %vm2704_vm3, %v2672_v1, %v2736_v21  ;;  %v2832_v60 = vadd.f32 %v2800_v5, %v5197_v22  ;;  %v2618_v50 = vmul.f32 %v3864_v7, %v5183_v4  ;;  %v2619_v0 = vmul.f32 %v3865_v56, %v5183_v4  ;;  %v3872_v1 = vld [vmem:[#allocation4 + $0x71] sm:$0xff] }
 0x660   :  { %3788 = vmatpush3.bf16.xpose.msk.msra.mxu1 %vm5220_vm15, %v3786_v57  ;;  %v2769_v15 = vsel %vm2705_vm4, %v2673_v49, %v2737_v43  ;;  %v2833_v36 = vadd.f32 %v2801_v42, %v5197_v22  ;;  %v2784_v34 = vmul.f32 %v3866_v6, %v5183_v4  ;;  %v2785_v58 = vmul.f32 %v3867_v51, %v5183_v4 }
 0x661   :  { %v3741_v2 = vpack.c.bf16 %v2769_v15, %v2768_v48  ;;  %vm2864_vm5 = vcmp.ge.f32.partialorder %v2832_v60, 0.0  ;;  %v2896_v33 = vmul.f32 0.01, %v2832_v60  ;;  %v2656_v44 = vadd.f32 %v5197_v22, %v2618_v50  ;;  %v3874_v48 = vld [vmem:[#allocation4 + $0x173] sm:$0xff] }
 0x662   :  { %vm2865_vm6 = vcmp.ge.f32.partialorder %v2833_v36, 0.0  ;;  %v2897_v59 = vmul.f32 0.01, %v2833_v36  ;;  %v2657_v63 = vadd.f32 %v5197_v22, %v2619_v0  ;;  %v2816_v13 = vadd.f32 %v2784_v34, %v5197_v22  ;;  %v3875_v0 = vld [vmem:[#allocation4 + $0x17b] sm:$0xff] }
 0x663   :  { %3743 = vmatprep.subr.msk.bf16.mxu0 %vm5220_vm15, %v3741_v2  ;;  %v2928_v62 = vsel %vm2864_vm5, %v2832_v60, %v2896_v33  ;;  %vm2688_vm7 = vcmp.ge.f32.partialorder %v2656_v44, 0.0  ;;  %v2720_v61 = vmul.f32 0.01, %v2656_v44  ;;  %v2817_v54 = vadd.f32 %v2785_v58, %v5197_v22 }
 0x664   :  { %v2929_v32 = vsel %vm2865_vm6, %v2833_v36, %v2897_v59  ;;  %vm2689_vm9 = vcmp.ge.f32.partialorder %v2657_v63, 0.0  ;;  %v2721_v37 = vmul.f32 0.01, %v2657_v63  ;;  %vm2848_vm10 = vcmp.ge.f32.partialorder %v2816_v13, 0.0 }
 0x665   :  { %v3789_v30 = vpack.c.bf16 %v2929_v32, %v2928_v62  ;;  %v2752_v41 = vsel %vm2688_vm7, %v2656_v44, %v2720_v61  ;;  %vm2849_vm11 = vcmp.ge.f32.partialorder %v2817_v54, 0.0  ;;  %v2880_v23 = vmul.f32 0.01, %v2816_v13 }
 0x666   :  { %v2753_v46 = vsel %vm2689_vm9, %v2657_v63, %v2721_v37  ;;  %v2881_v31 = vmul.f32 0.01, %v2817_v54  ;;  %v2636_v10 = vmul.f32 %v3868_v11, %v5183_v4  ;;  %v2637_v29 = vmul.f32 %v3869_v39, %v5183_v4 }
 0x667   :  { %3791 = vmatprep.subr.msk.bf16.mxu1 %vm5220_vm15, %v3789_v30  ;;  %v3744_v27 = vpack.c.bf16 %v2753_v46, %v2752_v41  ;;  %v2912_v45 = vsel %vm2848_vm10, %v2816_v13, %v2880_v23  ;;  %v2802_v52 = vmul.f32 %v3870_v25, %v5183_v4  ;;  %v2803_v20 = vmul.f32 %v3871_v47, %v5183_v4 }
 0x668   :  { %v2913_v12 = vsel %vm2849_vm11, %v2817_v54, %v2881_v31  ;;  %v2674_v18 = vadd.f32 %v5197_v22, %v2636_v10  ;;  %v2675_v55 = vadd.f32 %v5197_v22, %v2637_v29  ;;  %v2620_v40 = vmul.f32 %v3872_v1, %v5183_v4 }
 0x669   :  { %3746 = vmatpush3.bf16.xpose.msk.msra.mxu0 %vm5220_vm15, %v3744_v27  ;;  %v3792_v5 = vpack.c.bf16 %v2913_v12, %v2912_v45  ;;  %v2834_v53 = vadd.f32 %v2802_v52, %v5197_v22  ;;  %v2835_v35 = vadd.f32 %v2803_v20, %v5197_v22  ;;  %v2621_v26 = vmul.f32 %v3873_v24, %v5183_v4 }
 0x66a   :  { %vm2706_vm2 = vcmp.ge.f32.partialorder %v2674_v18, 0.0  ;;  %vm2707_vm12 = vcmp.ge.f32.partialorder %v2675_v55, 0.0  ;;  %v2738_v9 = vmul.f32 0.01, %v2674_v18  ;;  %v2739_v28 = vmul.f32 0.01, %v2675_v55 }
 0x66b   :  { %3794 = vmatpush3.bf16.xpose.msk.msra.mxu1 %vm5220_vm15, %v3792_v5  ;;  %vm2866_vm13 = vcmp.ge.f32.partialorder %v2834_v53, 0.0  ;;  %vm2867_vm14 = vcmp.ge.f32.partialorder %v2835_v35, 0.0  ;;  %v2898_v49 = vmul.f32 0.01, %v2834_v53  ;;  %v2899_v16 = vmul.f32 0.01, %v2835_v35 }
 0x66c   :  { %v2770_v38 = vsel %vm2706_vm2, %v2674_v18, %v2738_v9  ;;  %v2771_v17 = vsel %vm2707_vm12, %v2675_v55, %v2739_v28  ;;  %v2658_v21 = vadd.f32 %v5197_v22, %v2620_v40  ;;  %v2659_v57 = vadd.f32 %v5197_v22, %v2621_v26 }
 0x66d   :  { %v3747_v43 = vpack.c.bf16 %v2771_v17, %v2770_v38  ;;  %v2930_v3 = vsel %vm2866_vm13, %v2834_v53, %v2898_v49  ;;  %v2931_v42 = vsel %vm2867_vm14, %v2835_v35, %v2899_v16  ;;  %v2786_v60 = vmul.f32 %v3874_v48, %v5183_v4 }
 0x66e   :  { %v3795_v7 = vpack.c.bf16 %v2931_v42, %v2930_v3  ;;  %vm2690_vm0 = vcmp.ge.f32.partialorder %v2658_v21, 0.0  ;;  %vm2691_vm1 = vcmp.ge.f32.partialorder %v2659_v57, 0.0  ;;  %v2722_v50 = vmul.f32 0.01, %v2658_v21 }
 0x66f   :  { %3749 = vmatprep.subr.msk.bf16.mxu0 %vm5220_vm15, %v3747_v43  ;;  %v2723_v56 = vmul.f32 0.01, %v2659_v57  ;;  %v2787_v15 = vmul.f32 %v3875_v0, %v5183_v4  ;;  %v2818_v36 = vadd.f32 %v2786_v60, %v5197_v22  ;;  %vm3153_vm5 = vcmask 1040384  }
 0x670   :  { %3797 = vmatprep.subr.msk.bf16.mxu1 %vm5220_vm15, %v3795_v7  ;;  %v2754_v6 = vsel %vm2690_vm0, %v2658_v21, %v2722_v50  ;;  %vm3156_vm6 = vcmask 1041408   ;;  %vm3159_vm7 = vcmask 1042432  }
 0x671   :  { %v2755_v34 = vsel %vm2691_vm1, %v2659_v57, %v2723_v56  ;;  %v2819_v51 = vadd.f32 %v2787_v15, %v5197_v22  ;;  %vm2850_vm3 = vcmp.ge.f32.partialorder %v2818_v36, 0.0  ;;  %v2882_v58 = vmul.f32 0.01, %v2818_v36 }
 0x672   :  { %v3750_v2 = vpack.c.bf16 %v2755_v34, %v2754_v6 }
 0x673   :  { %vm2851_vm4 = vcmp.ge.f32.partialorder %v2819_v51, 0.0  ;;  %v2883_v33 = vmul.f32 0.01, %v2819_v51  ;;  %v2914_v44 = vsel %vm2850_vm3, %v2818_v36, %v2882_v58 }
 0x674   :  { %3752 = vmatpush3.bf16.xpose.msk.msra.mxu0 %vm5220_vm15, %v3750_v2 }
 0x675   :  { %v2915_v59 = vsel %vm2851_vm4, %v2819_v51, %v2883_v33 }
 0x676   :  { %v3798_v4 = vpack.c.bf16 %v2915_v59, %v2914_v44 }
 0x678   :  { %3800 = vmatpush3.bf16.xpose.msk.msra.mxu1 %vm5220_vm15, %v3798_v4  ;;  %vm3111_vm15 = vcmask 7168  }
 0x67b   :  { %3560 = vmatmul.mubr.msk.f32.vlgmr.msra.gmra.mrb[14].mxu0 %vm1152_vm8, %v5171_v8 }
 0x67f   :  { %3594 = vmatmul.mubr.msk.f32.vlgmr.msra.gmra.mrb[14].mxu1 %vm1152_vm8, %v5164_v19  ;;  %vm3119_vm8 = vcmask 1039360  }
 0x74e   :  { %v5406_v22 = vpop.f32.mrb[14].mxu0 }
 0x74f   :  { %v5408_v63 = vpop.f32.mrb[15].mxu0  ;;  %v3105_v14 = vrot.slane %v5406_v22, 5  ;;  %v3143_v24 = vrot.slane %v5406_v22, 1 }
 0x750   :  { %v3106_v8 = vrot.slane %v5408_v63, 5  ;;  %v3144_v56 = vrot.slane %v5408_v63, 1 }
 0x752   :  { %v3332_v13 = vpop.f32.mrb[14].mxu1 }
 0x753   :  { %3348 = vrot.lane.b32.xlu0 %v3332_v13, %s3886_s4  ;;  %v3334_v62 = vpop.f32.mrb[15].mxu1  ;;  %v3339_v61 = vrot.slane %v3332_v13, 5  ;;  %v3375_v18 = vrot.slane %v3332_v13, 1 }
 0x754   :  { %3350 = vrot.lane.b32.xlu1 %v3334_v62, %s3886_s4  ;;  %v3340_v54 = vrot.slane %v3334_v62, 5  ;;  %v3376_v5 = vrot.slane %v3334_v62, 1 }
 0x757   :  { %3341 = vrot.lane.b32.xlu0 %v3339_v61, %s3887_s9 }
 0x758   :  { %3343 = vrot.lane.b32.xlu1 %v3340_v54, %s3887_s9 }
 0x75b   :  { %3107 = vrot.lane.b32.xlu0 %v3105_v14, %s3887_s9 }
 0x75c   :  { %3109 = vrot.lane.b32.xlu1 %v3106_v8, %s3887_s9 }
 0x75f   :  { %3115 = vrot.lane.b32.xlu0 %v5406_v22, %s3886_s4 }
 0x760   :  { %3117 = vrot.lane.b32.xlu1 %v5408_v63, %s3886_s4 }
 0x7c5   :  { %v3349_v19 = vpop.permute.xlu0 %3348 }
 0x7c6   :  { %v3351_v32 = vpop.permute.xlu1 %3350 }
 0x7c7   :  { %v3352_v37 = vsel %vm3119_vm8, %v3349_v19, %v3351_v32  ;;  %v3354_v30 = vsel %vm3119_vm8, %v3351_v32, 0.0 }
 0x7c8   :  { %v3363_v41 = vrot.slane %v3352_v37, 4  ;;  %v3364_v46 = vrot.slane %v3354_v30, 4 }
 0x7c9   :  { %v3342_v23 = vpop.permute.xlu0 %3341 }
 0x7ca   :  { %v3347_v31 = vsel %vm3111_vm15, 0.0, %v3342_v23  ;;  %v3344_v11 = vpop.permute.xlu1 %3343  ;;  %v3367_v27 = vadd.f32 %v3363_v41, %v3332_v13  ;;  %v3368_v52 = vadd.f32 %v3364_v46, %v3334_v62 }
 0x7cb   :  { %v3356_v10 = vrot.slane %v3347_v31, 7  ;;  %v3345_v39 = vsel %vm3111_vm15, %v3342_v23, %v3344_v11 }
 0x7cc   :  { %v3357_v29 = vrot.slane %v3345_v39, 7  ;;  %v3381_v26 = vrot.slane %v3367_v27, 1  ;;  %v3382_v16 = vrot.slane %v3368_v52, 1 }
 0x7cd   :  { %v3360_v45 = vadd.f32 %v3356_v10, %v3332_v13  ;;  %v3108_v25 = vpop.permute.xlu0 %3107 }
 0x7ce   :  { %v3361_v47 = vadd.f32 %v3357_v29, %v3334_v62  ;;  %v3114_v20 = vsel %vm3111_vm15, 0.0, %v3108_v25  ;;  %v3110_v12 = vpop.permute.xlu1 %3109 }
 0x7cf   :  { %v3371_v55 = vrot.slane %v3360_v45, 1  ;;  %v3124_v1 = vrot.slane %v3114_v20, 7  ;;  %v3112_v40 = vsel %vm3111_vm15, %v3108_v25, %v3110_v12 }
 0x7d0   :  { %v3372_v53 = vrot.slane %v3361_v47, 1  ;;  %v3125_v35 = vrot.slane %v3112_v40, 7 }
 0x7d1   :  { %v3385_v9 = vsel %vm3153_vm5, %v3371_v55, %v3375_v18  ;;  %v3128_v28 = vadd.f32 %v3124_v1, %v5406_v22  ;;  %v3116_v49 = vpop.permute.xlu0 %3115 }
 0x7d2   :  { %v3387_v38 = vsel %vm3156_vm6, %v3385_v9, %v3375_v18  ;;  %v3386_v17 = vsel %vm3153_vm5, %v3372_v53, %v3376_v5  ;;  %v3129_v21 = vadd.f32 %v3125_v35, %v5408_v63  ;;  %v3118_v57 = vpop.permute.xlu1 %3117 }
 0x7d3   :  { %v3388_v43 = vsel %vm3156_vm6, %v3386_v17, %v3376_v5  ;;  %v3139_v3 = vrot.slane %v3128_v28, 1  ;;  %v3389_v42 = vsel %vm3159_vm7, %v3387_v38, %v3381_v26  ;;  %v3120_v48 = vsel %vm3119_vm8, %v3116_v49, %v3118_v57 }
 0x7d4   :  { %v3140_v60 = vrot.slane %v3129_v21, 1  ;;  %v3390_v7 = vsel %vm3159_vm7, %v3388_v43, %v3382_v16  ;;  %3819 = vtanh.f32 %v3389_v42  ;;  %v3122_v50 = vsel %vm3119_vm8, %v3118_v57, 0.0 }
 0x7d5   :  { %3821 = vtanh.f32 %v3390_v7  ;;  %v3131_v0 = vrot.slane %v3120_v48, 4  ;;  %v3132_v15 = vrot.slane %v3122_v50, 4  ;;  %v3154_v36 = vsel %vm3153_vm5, %v3139_v3, %v3143_v24 }
 0x7d6   :  { %v3155_v6 = vsel %vm3153_vm5, %v3140_v60, %v3144_v56  ;;  %v3157_v33 = vsel %vm3156_vm6, %v3154_v36, %v3143_v24 }
 0x7d7   :  { %v3135_v34 = vadd.f32 %v3131_v0, %v5406_v22  ;;  %v3136_v51 = vadd.f32 %v3132_v15, %v5408_v63  ;;  %v3158_v44 = vsel %vm3156_vm6, %v3155_v6, %v3144_v56 }
 0x7d9   :  { %v3149_v58 = vrot.slane %v3135_v34, 1  ;;  %v3150_v2 = vrot.slane %v3136_v51, 1 }
 0x7db   :  { %v3160_v59 = vsel %vm3159_vm7, %v3157_v33, %v3149_v58  ;;  %v3161_v4 = vsel %vm3159_vm7, %v3158_v44, %v3150_v2 }
 0x7dc   :  { %3823 = vtanh.f32 %v3160_v59 }
 0x7dd   :  { %3825 = vtanh.f32 %v3161_v4 }
 0x7de   :  { %v3820_v13 = vpop.eup %3819 }
 0x7df   :  { %v3822_v62 = vpop.eup %3821  ;;  %v3395_v61 = vrot.slane %v3820_v13, 4 }
 0x7e0   :  { %v3396_v54 = vrot.slane %v3822_v62, 4 }
 0x7e1   :  { %3399 = vst [vmem:[%s5463_s11] sm:$0xf0] %v3395_v61 }
 0x7e2   :  { %3400 = vst [vmem:[%s5463_s11 + $0x8] sm:$0xf0] %v3396_v54 }
 0x7e6   :  { %v3824_v22 = vpop.eup %3823 }
 0x7e7   :  { %v3826_v63 = vpop.eup %3825  ;;  %3164 = vst [vmem:[%s5463_s11] sm:$0xf] %v3824_v22 }
 0x7e8   :  { %3165 = vst [vmem:[%s5463_s11 + $0x8] sm:$0xf] %v3826_v63 }

</bundles_post_ra>
